<compile_context>
chip_gen: v7x
topology: tpu7x:2x2x1
jax: 0.10.0
libtpu: 0.0.40
codegen_flags: <defaults>
</compile_context>

<pallas_src>
import functools
import math

import jax
import jax.numpy as jnp
from jax.experimental import pallas as pl
from jax.experimental.pallas import tpu as pltpu

_EPS = 1e-5  # nn.BatchNorm1d default eps


def _attention_transformer_kernel(a_ref, priors_ref, w_ref, gamma_ref, beta_ref,
                                  mask_ref, priors_out_ref,
                                  *, relax, n_iters, n_sub, vb, d_valid):
    """Fused fc + GBN(batch stats) + sparsemax(.* priors) + prior update.

    a_ref:          [n_sub*vb, d_a]
    priors_ref:     [n_sub*vb, d_pad]
    w_ref:          [d_a, d_pad]
    gamma_ref:      [1, d_pad]
    beta_ref:       [1, d_pad]
    mask_ref:       [n_sub*vb, d_pad]   (out)
    priors_out_ref: [n_sub*vb, d_pad]   (out)
    """
    d_pad = w_ref.shape[1]
    need_lane_mask = d_valid < d_pad
    if need_lane_mask:
        lane = jax.lax.broadcasted_iota(jnp.int32, (1, d_pad), 1)
        valid = lane < d_valid

    def process(s):
        r0 = s * vb
        if not isinstance(r0, int):
            r0 = pl.multiple_of(r0, vb)
        rows = pl.ds(r0, vb)

        # fc. Bias omitted: under training-mode (batch-stat) BatchNorm it cancels
        # exactly, (aW + b) - mean(aW + b) == aW - mean(aW).
        h = jnp.dot(a_ref[rows, :], w_ref[...], preferred_element_type=jnp.float32)

        # Ghost-BatchNorm on this vbs-row sub-chunk: batch mean / biased variance.
        mean = jnp.mean(h, axis=0, keepdims=True)
        centered = h - mean
        var = jnp.mean(centered * centered, axis=0, keepdims=True)
        scale = gamma_ref[...] * jax.lax.rsqrt(var + _EPS)   # gamma folded into scale
        hn = centered * scale + beta_ref[...]

        # sparsemax(hn * priors) along the feature (lane) axis.
        z = hn * priors_ref[rows, :].astype(jnp.float32)
        if need_lane_mask:
            z = jnp.where(valid, z, jnp.float32(-1e30))      # padded lanes inert
        z = z - jnp.max(z, axis=-1, keepdims=True)           # shift-invariant; max -> 0

        # Michelot / Newton fixed-point iteration for the sparsemax threshold:
        #   tau <- (sum_{z > tau} z - 1) / |{z > tau}|
        # Starting from tau0 = max(z) - 1 = -1 (a provable lower bound of tau*), tau
        # is monotonically non-decreasing, the active set only shrinks, and the fixed
        # point is the exact sparsemax threshold.  Typical convergence is ~4-8 steps
        # for D ~ O(100); n_iters=12 (unrolled) gives ample margin while using ~2x
        # fewer lane reductions than the previous 40-step bisection.
        tau0 = jnp.full((vb, 1), -1.0, jnp.float32)

        def newton_step(_, tau):
            active = z > tau
            cnt = jnp.sum(active.astype(jnp.float32), axis=-1, keepdims=True)
            ssum = jnp.sum(jnp.where(active, z, 0.0), axis=-1, keepdims=True)
            return (ssum - 1.0) / cnt        # cnt >= 1 always: the max element stays active

        tau = jax.lax.fori_loop(0, n_iters, newton_step, tau0, unroll=True)

        mask = jnp.maximum(z - tau, 0.0)
        mask_ref[rows, :] = mask.astype(mask_ref.dtype)
        # Re-read priors *after* the threshold loop so they are not live across it.
        p = priors_ref[rows, :].astype(jnp.float32)
        priors_out_ref[rows, :] = (p * (relax - mask)).astype(priors_out_ref.dtype)

    if n_sub == 1:
        process(0)
    else:
        # Independent GBN sub-chunks inside one grid block: a real loop (not an
        # unrolled Python for) keeps each sub-chunk's live range bounded.
        pl.loop(0, n_sub)(process)


def _block_vmem_bytes(rows, d_a, d_pad):
    # Double-buffered per-grid-step blocks (a, priors, mask, priors') + resident
    # weight / gamma / beta blocks, all counted as f32 words.
    per_step = rows * d_a + 3 * rows * d_pad
    resident = d_a * d_pad + 2 * d_pad
    return 4 * (2 * per_step + 2 * resident)


def attention_transformer(a, priors, w, gamma, beta, *, relax, vbs=128, n_iters=12):
    """AttentionTransformer.forward (training-mode batch stats) as one Pallas call.

    Returns (mask, new_priors).
    """
    B, d_a = a.shape
    assert w.shape[0] == d_a
    D = w.shape[1]
    assert priors.shape == (B, D)
    assert gamma.shape == (D,) and beta.shape == (D,)

    # Lane-dense feature axis: pad D up to a multiple of 128.  Padded lanes are
    # inert (zero weight/gamma/beta/priors, masked to -inf before sparsemax) and
    # sliced off the outputs.
    d_pad = ((D + 127) // 128) * 128
    if d_pad != D:
        pad = d_pad - D
        w = jnp.pad(w, ((0, 0), (0, pad)))
        gamma = jnp.pad(gamma, (0, pad))
        beta = jnp.pad(beta, (0, pad))
        priors_in = jnp.pad(priors, ((0, 0), (0, pad)))
    else:
        priors_in = priors

    # Batch blocking: each grid step handles n_sub independent GBN chunks of vbs rows
    # (Ghost-BN semantics preserved inside the kernel).  Larger blocks amortize the
    # ~0.35us/step overhead; we keep >= 2 grid steps whenever B >= 2*vbs so v7x's two
    # TensorCores both get work.  Block bytes are sized for v7x's 64 MiB VMEM.
    vmem_budget = 24 * 1024 * 1024
    if B <= vbs:
        vb, n_sub, n_grid = B, 1, 1        # single GBN chunk (one TC on v7x)
    else:
        # TODO(synk): torch.chunk's uneven-last-chunk Ghost-BN behavior (B % vbs != 0)
        # is not reproduced; only B <= vbs or B % vbs == 0 is supported here.
        assert B % vbs == 0, "batch must be <= vbs or a multiple of vbs"
        vb = vbs
        n_chunks = B // vbs
        n_sub = 1
        for cand in (4, 3, 2):             # target ~512 rows per grid step
            if (n_chunks % cand == 0 and n_chunks // cand >= 2
                    and _block_vmem_bytes(cand * vb, d_a, d_pad) <= vmem_budget):
                n_sub = cand
                break
        n_grid = n_chunks // n_sub
    rb = n_sub * vb

    vmem_limit = int(min(40 * 1024 * 1024,
                         max(16 * 1024 * 1024,
                             _block_vmem_bytes(rb, d_a, d_pad) + (2 << 20))))

    kernel = functools.partial(
        _attention_transformer_kernel,
        relax=float(relax), n_iters=int(n_iters), n_sub=n_sub, vb=vb, d_valid=D)

    mask_p, priors_out_p = pl.pallas_call(
        kernel,
        grid=(n_grid,),
        out_shape=(
            jax.ShapeDtypeStruct((B, d_pad), a.dtype),        # mask
            jax.ShapeDtypeStruct((B, d_pad), priors.dtype),   # updated priors
        ),
        in_specs=[
            pl.BlockSpec((rb, d_a), lambda i: (i, 0)),        # a       (batch tile)
            pl.BlockSpec((rb, d_pad), lambda i: (i, 0)),      # priors  (batch tile)
            pl.BlockSpec((d_a, d_pad), lambda i: (0, 0)),     # w       (resident)
            pl.BlockSpec((1, d_pad), lambda i: (0, 0)),       # gamma
            pl.BlockSpec((1, d_pad), lambda i: (0, 0)),       # beta
        ],
        out_specs=(
            pl.BlockSpec((rb, d_pad), lambda i: (i, 0)),      # mask
            pl.BlockSpec((rb, d_pad), lambda i: (i, 0)),      # new priors
        ),
        compiler_params=pltpu.CompilerParams(
            dimension_semantics=("parallel",),
            vmem_limit_bytes=vmem_limit,
        ),
    )(a, priors_in, w, gamma.reshape(1, d_pad), beta.reshape(1, d_pad))

    if d_pad != D:
        mask_p = mask_p[:, :D]
        priors_out_p = priors_out_p[:, :D]
    return mask_p, priors_out_p


def _reference(a, priors, w, gamma, beta, relax, vbs=128):
    """Pure-JAX reference: fc (no bias) -> GBN(batch stats) -> sort-based sparsemax."""
    B = a.shape[0]
    h = jnp.dot(a, w, precision=jax.lax.Precision.HIGHEST)

    def bn(x):
        m = jnp.mean(x, axis=0, keepdims=True)
        v = jnp.mean((x - m) ** 2, axis=0, keepdims=True)
        return (x - m) * jax.lax.rsqrt(v + _EPS) * gamma + beta

    if B <= vbs:
        hn = bn(h)
    else:
        hn = jnp.concatenate([bn(c) for c in jnp.split(h, B // vbs, axis=0)], axis=0)

    z = hn * priors
    z = z - jnp.max(z, axis=-1, keepdims=True)
    zs = jnp.sort(z, axis=-1)[:, ::-1]
    D = z.shape[-1]
    rng = jnp.arange(1, D + 1, dtype=z.dtype)[None, :]
    csum = jnp.cumsum(zs, axis=-1)
    is_gt = (1.0 + rng * zs) > csum
    k = jnp.max(jnp.where(is_gt, rng, 0.0), axis=-1, keepdims=True)
    tau = (jnp.sum(jnp.where(is_gt, zs, 0.0), axis=-1, keepdims=True) - 1.0) / k
    mask = jnp.maximum(z - tau, 0.0)
    return mask, priors * (relax - mask)


if __name__ == "__main__":
    relax = 1.5

    # ---- run 1: B == vbs == 128 (single GBN chunk), d_a = 32, lane-dense D = 128 ----
    B, d_a, inp_dim = 128, 32, 128
    key = jax.random.PRNGKey(0)
    ka, kp, kw = jax.random.split(key, 3)
    a = jax.random.normal(ka, (B, d_a), jnp.float32)
    priors = jax.random.uniform(kp, (B, inp_dim), jnp.float32, 0.5, 1.5)
    bound = 1.0 / math.sqrt(d_a)
    w = jax.random.uniform(kw, (d_a, inp_dim), jnp.float32, -bound, bound)
    gamma = jnp.ones((inp_dim,), jnp.float32)   # BatchNorm1d default weight
    beta = jnp.zeros((inp_dim,), jnp.float32)   # BatchNorm1d default bias

    mask, new_priors = attention_transformer(a, priors, w, gamma, beta, relax=relax)
    jax.block_until_ready((mask, new_priors))

    ref_mask, ref_priors = _reference(a, priors, w, gamma, beta, relax)
    assert mask.shape == (B, inp_dim) and new_priors.shape == (B, inp_dim)
    assert bool(jnp.all(mask >= 0.0))
    assert bool(jnp.all(jnp.abs(jnp.sum(mask, axis=-1) - 1.0) < 1e-3))
    assert float(jnp.max(jnp.abs(mask - ref_mask))) < 5e-3
    assert float(jnp.max(jnp.abs(new_priors - ref_priors))) < 1e-2

    # ---- run 2: B >> vbs and non-multiple-of-128 feature dim (padding + inner GBN
    #      sub-chunk loop + >= 2 grid steps for v7x's two TensorCores) ----
    B2, D2 = 512, 100
    k2a, k2p, k2w = jax.random.split(jax.random.PRNGKey(1), 3)
    a2 = jax.random.normal(k2a, (B2, d_a), jnp.float32)
    priors2 = jax.random.uniform(k2p, (B2, D2), jnp.float32, 0.5, 1.5)
    w2 = jax.random.uniform(k2w, (d_a, D2), jnp.float32, -bound, bound)
    gamma2 = jnp.ones((D2,), jnp.float32)
    beta2 = jnp.zeros((D2,), jnp.float32)

    mask2, priors2_new = attention_transformer(a2, priors2, w2, gamma2, beta2, relax=relax)
    jax.block_until_ready((mask2, priors2_new))

    ref_mask2, ref_priors2 = _reference(a2, priors2, w2, gamma2, beta2, relax)
    assert mask2.shape == (B2, D2) and priors2_new.shape == (B2, D2)
    assert bool(jnp.all(mask2 >= 0.0))
    assert bool(jnp.all(jnp.abs(jnp.sum(mask2, axis=-1) - 1.0) < 1e-3))
    assert float(jnp.max(jnp.abs(mask2 - ref_mask2))) < 5e-3
    assert float(jnp.max(jnp.abs(priors2_new - ref_priors2))) < 1e-2

    print("KERNEL_OK")
</pallas_src>

<mosaic_0001>
module attributes {stable_mosaic.version = 11 : i64} {
  func.func @_attention_transformer_kernel(%arg0: i32, %arg1: memref<128x32xf32, #tpu.memory_space<vmem>>, %arg2: memref<128x128xf32, #tpu.memory_space<vmem>>, %arg3: memref<32x128xf32, #tpu.memory_space<vmem>>, %arg4: memref<1x128xf32, #tpu.memory_space<vmem>>, %arg5: memref<1x128xf32, #tpu.memory_space<vmem>>, %arg6: memref<128x128xf32, #tpu.memory_space<vmem>>, %arg7: memref<128x128xf32, #tpu.memory_space<vmem>>) attributes {dimension_semantics = [#tpu.dimension_semantics<parallel>], iteration_bounds = array<i64: 1>, scalar_prefetch = 0 : i64, scratch_operands = 0 : i64, tpu.core_type = #tpu.core_type<tc>, window_params = [{transform_indices = @transform_0, window_bounds = array<i64: 128, 32>}, {transform_indices = @transform_1, window_bounds = array<i64: 128, 128>}, {pipeline_mode = #tpu.pipeline_mode<synchronous>, transform_indices = @transform_2, window_bounds = array<i64: 32, 128>}, {pipeline_mode = #tpu.pipeline_mode<synchronous>, transform_indices = @transform_3, window_bounds = array<i64: 1, 128>}, {pipeline_mode = #tpu.pipeline_mode<synchronous>, transform_indices = @transform_4, window_bounds = array<i64: 1, 128>}, {transform_indices = @transform_5, window_bounds = array<i64: 128, 128>}, {transform_indices = @transform_6, window_bounds = array<i64: 128, 128>}]} {
    %c0 = arith.constant 0 : index
    %c0_0 = arith.constant 0 : index
    %0 = vector.load %arg1[%c0, %c0_0] : memref<128x32xf32, #tpu.memory_space<vmem>>, vector<128x32xf32>
    %c0_1 = arith.constant 0 : index
    %c0_2 = arith.constant 0 : index
    %1 = vector.load %arg3[%c0_1, %c0_2] : memref<32x128xf32, #tpu.memory_space<vmem>>, vector<32x128xf32>
    %cst = arith.constant dense<0.000000e+00> : vector<128x128xf32>
    %2 = tpu.matmul %0, %1, %cst {dimension_numbers = #tpu.dot_dimension_numbers<[1], [0], [0], [1], [0, 0, 1, 1], [], []>} : vector<128x32xf32>, vector<32x128xf32>, vector<128x128xf32> -> vector<128x128xf32>
    %cst_3 = arith.constant dense<0.000000e+00> : vector<128xf32>
    %3 = vector.multi_reduction <add>, %2, %cst_3 [0] : vector<128x128xf32> to vector<128xf32>
    %4 = vector.shape_cast %3 : vector<128xf32> to vector<1x128xf32>
    %cst_4 = arith.constant 1.280000e+02 : f32
    %5 = vector.broadcast %cst_4 : f32 to vector<1x128xf32>
    %6 = arith.divf %4, %5 : vector<1x128xf32>
    %7 = vector.broadcast %6 : vector<1x128xf32> to vector<128x128xf32>
    %8 = arith.subf %2, %7 : vector<128x128xf32>
    %9 = arith.mulf %8, %8 : vector<128x128xf32>
    %cst_5 = arith.constant dense<0.000000e+00> : vector<128xf32>
    %10 = vector.multi_reduction <add>, %9, %cst_5 [0] : vector<128x128xf32> to vector<128xf32>
    %11 = vector.shape_cast %10 : vector<128xf32> to vector<1x128xf32>
    %cst_6 = arith.constant 1.280000e+02 : f32
    %12 = vector.broadcast %cst_6 : f32 to vector<1x128xf32>
    %13 = arith.divf %11, %12 : vector<1x128xf32>
    %c0_7 = arith.constant 0 : index
    %c0_8 = arith.constant 0 : index
    %14 = vector.load %arg4[%c0_7, %c0_8] : memref<1x128xf32, #tpu.memory_space<vmem>>, vector<1x128xf32>
    %cst_9 = arith.constant 9.99999974E-6 : f32
    %15 = vector.broadcast %cst_9 : f32 to vector<1x128xf32>
    %16 = arith.addf %13, %15 : vector<1x128xf32>
    %17 = math.rsqrt %16 : vector<1x128xf32>
    %18 = arith.mulf %14, %17 : vector<1x128xf32>
    %19 = vector.broadcast %18 : vector<1x128xf32> to vector<128x128xf32>
    %20 = arith.mulf %8, %19 : vector<128x128xf32>
    %c0_10 = arith.constant 0 : index
    %c0_11 = arith.constant 0 : index
    %21 = vector.load %arg5[%c0_10, %c0_11] : memref<1x128xf32, #tpu.memory_space<vmem>>, vector<1x128xf32>
    %22 = vector.broadcast %21 : vector<1x128xf32> to vector<128x128xf32>
    %23 = arith.addf %20, %22 : vector<128x128xf32>
    %c0_12 = arith.constant 0 : index
    %c0_13 = arith.constant 0 : index
    %24 = vector.load %arg2[%c0_12, %c0_13] : memref<128x128xf32, #tpu.memory_space<vmem>>, vector<128x128xf32>
    %25 = arith.mulf %23, %24 : vector<128x128xf32>
    %cst_14 = arith.constant dense<0xFF800000> : vector<128xf32>
    %26 = vector.multi_reduction <maximumf>, %25, %cst_14 [1] : vector<128x128xf32> to vector<128xf32>
    %27 = vector.shape_cast %26 : vector<128xf32> to vector<128x1xf32>
    %28 = vector.broadcast %27 : vector<128x1xf32> to vector<128x128xf32>
    %29 = arith.subf %25, %28 : vector<128x128xf32>
    %cst_15 = arith.constant -1.000000e+00 : f32
    %30 = vector.broadcast %cst_15 : f32 to vector<128x1xf32>
    %c0_i32 = arith.constant 0 : i32
    %31 = vector.broadcast %30 : vector<128x1xf32> to vector<128x128xf32>
    %32 = arith.cmpf ogt, %29, %31 : vector<128x128xf32>
    %33 = arith.extui %32 : vector<128x128xi1> to vector<128x128xi32>
    %34 = arith.sitofp %33 : vector<128x128xi32> to vector<128x128xf32>
    %cst_16 = arith.constant dense<0.000000e+00> : vector<128xf32>
    %35 = vector.multi_reduction <add>, %34, %cst_16 [1] : vector<128x128xf32> to vector<128xf32>
    %36 = vector.shape_cast %35 : vector<128xf32> to vector<128x1xf32>
    %cst_17 = arith.constant 0.000000e+00 : f32
    %37 = vector.broadcast %cst_17 : f32 to vector<128x128xf32>
    %38 = arith.select %32, %29, %37 : vector<128x128xi1>, vector<128x128xf32>
    %cst_18 = arith.constant dense<0.000000e+00> : vector<128xf32>
    %39 = vector.multi_reduction <add>, %38, %cst_18 [1] : vector<128x128xf32> to vector<128xf32>
    %40 = vector.shape_cast %39 : vector<128xf32> to vector<128x1xf32>
    %cst_19 = arith.constant 1.000000e+00 : f32
    %41 = vector.broadcast %cst_19 : f32 to vector<128x1xf32>
    %42 = arith.subf %40, %41 : vector<128x1xf32>
    %43 = arith.divf %42, %36 : vector<128x1xf32>
    %c1_i32 = arith.constant 1 : i32
    %44 = vector.broadcast %43 : vector<128x1xf32> to vector<128x128xf32>
    %45 = arith.cmpf ogt, %29, %44 : vector<128x128xf32>
    %46 = arith.extui %45 : vector<128x128xi1> to vector<128x128xi32>
    %47 = arith.sitofp %46 : vector<128x128xi32> to vector<128x128xf32>
    %cst_20 = arith.constant dense<0.000000e+00> : vector<128xf32>
    %48 = vector.multi_reduction <add>, %47, %cst_20 [1] : vector<128x128xf32> to vector<128xf32>
    %49 = vector.shape_cast %48 : vector<128xf32> to vector<128x1xf32>
    %cst_21 = arith.constant 0.000000e+00 : f32
    %50 = vector.broadcast %cst_21 : f32 to vector<128x128xf32>
    %51 = arith.select %45, %29, %50 : vector<128x128xi1>, vector<128x128xf32>
    %cst_22 = arith.constant dense<0.000000e+00> : vector<128xf32>
    %52 = vector.multi_reduction <add>, %51, %cst_22 [1] : vector<128x128xf32> to vector<128xf32>
    %53 = vector.shape_cast %52 : vector<128xf32> to vector<128x1xf32>
    %cst_23 = arith.constant 1.000000e+00 : f32
    %54 = vector.broadcast %cst_23 : f32 to vector<128x1xf32>
    %55 = arith.subf %53, %54 : vector<128x1xf32>
    %56 = arith.divf %55, %49 : vector<128x1xf32>
    %c2_i32 = arith.constant 2 : i32
    %57 = vector.broadcast %56 : vector<128x1xf32> to vector<128x128xf32>
    %58 = arith.cmpf ogt, %29, %57 : vector<128x128xf32>
    %59 = arith.extui %58 : vector<128x128xi1> to vector<128x128xi32>
    %60 = arith.sitofp %59 : vector<128x128xi32> to vector<128x128xf32>
    %cst_24 = arith.constant dense<0.000000e+00> : vector<128xf32>
    %61 = vector.multi_reduction <add>, %60, %cst_24 [1] : vector<128x128xf32> to vector<128xf32>
    %62 = vector.shape_cast %61 : vector<128xf32> to vector<128x1xf32>
    %cst_25 = arith.constant 0.000000e+00 : f32
    %63 = vector.broadcast %cst_25 : f32 to vector<128x128xf32>
    %64 = arith.select %58, %29, %63 : vector<128x128xi1>, vector<128x128xf32>
    %cst_26 = arith.constant dense<0.000000e+00> : vector<128xf32>
    %65 = vector.multi_reduction <add>, %64, %cst_26 [1] : vector<128x128xf32> to vector<128xf32>
    %66 = vector.shape_cast %65 : vector<128xf32> to vector<128x1xf32>
    %cst_27 = arith.constant 1.000000e+00 : f32
    %67 = vector.broadcast %cst_27 : f32 to vector<128x1xf32>
    %68 = arith.subf %66, %67 : vector<128x1xf32>
    %69 = arith.divf %68, %62 : vector<128x1xf32>
    %c3_i32 = arith.constant 3 : i32
    %70 = vector.broadcast %69 : vector<128x1xf32> to vector<128x128xf32>
    %71 = arith.cmpf ogt, %29, %70 : vector<128x128xf32>
    %72 = arith.extui %71 : vector<128x128xi1> to vector<128x128xi32>
    %73 = arith.sitofp %72 : vector<128x128xi32> to vector<128x128xf32>
    %cst_28 = arith.constant dense<0.000000e+00> : vector<128xf32>
    %74 = vector.multi_reduction <add>, %73, %cst_28 [1] : vector<128x128xf32> to vector<128xf32>
    %75 = vector.shape_cast %74 : vector<128xf32> to vector<128x1xf32>
    %cst_29 = arith.constant 0.000000e+00 : f32
    %76 = vector.broadcast %cst_29 : f32 to vector<128x128xf32>
    %77 = arith.select %71, %29, %76 : vector<128x128xi1>, vector<128x128xf32>
    %cst_30 = arith.constant dense<0.000000e+00> : vector<128xf32>
    %78 = vector.multi_reduction <add>, %77, %cst_30 [1] : vector<128x128xf32> to vector<128xf32>
    %79 = vector.shape_cast %78 : vector<128xf32> to vector<128x1xf32>
    %cst_31 = arith.constant 1.000000e+00 : f32
    %80 = vector.broadcast %cst_31 : f32 to vector<128x1xf32>
    %81 = arith.subf %79, %80 : vector<128x1xf32>
    %82 = arith.divf %81, %75 : vector<128x1xf32>
    %c4_i32 = arith.constant 4 : i32
    %83 = vector.broadcast %82 : vector<128x1xf32> to vector<128x128xf32>
    %84 = arith.cmpf ogt, %29, %83 : vector<128x128xf32>
    %85 = arith.extui %84 : vector<128x128xi1> to vector<128x128xi32>
    %86 = arith.sitofp %85 : vector<128x128xi32> to vector<128x128xf32>
    %cst_32 = arith.constant dense<0.000000e+00> : vector<128xf32>
    %87 = vector.multi_reduction <add>, %86, %cst_32 [1] : vector<128x128xf32> to vector<128xf32>
    %88 = vector.shape_cast %87 : vector<128xf32> to vector<128x1xf32>
    %cst_33 = arith.constant 0.000000e+00 : f32
    %89 = vector.broadcast %cst_33 : f32 to vector<128x128xf32>
    %90 = arith.select %84, %29, %89 : vector<128x128xi1>, vector<128x128xf32>
    %cst_34 = arith.constant dense<0.000000e+00> : vector<128xf32>
    %91 = vector.multi_reduction <add>, %90, %cst_34 [1] : vector<128x128xf32> to vector<128xf32>
    %92 = vector.shape_cast %91 : vector<128xf32> to vector<128x1xf32>
    %cst_35 = arith.constant 1.000000e+00 : f32
    %93 = vector.broadcast %cst_35 : f32 to vector<128x1xf32>
    %94 = arith.subf %92, %93 : vector<128x1xf32>
    %95 = arith.divf %94, %88 : vector<128x1xf32>
    %c5_i32 = arith.constant 5 : i32
    %96 = vector.broadcast %95 : vector<128x1xf32> to vector<128x128xf32>
    %97 = arith.cmpf ogt, %29, %96 : vector<128x128xf32>
    %98 = arith.extui %97 : vector<128x128xi1> to vector<128x128xi32>
    %99 = arith.sitofp %98 : vector<128x128xi32> to vector<128x128xf32>
    %cst_36 = arith.constant dense<0.000000e+00> : vector<128xf32>
    %100 = vector.multi_reduction <add>, %99, %cst_36 [1] : vector<128x128xf32> to vector<128xf32>
    %101 = vector.shape_cast %100 : vector<128xf32> to vector<128x1xf32>
    %cst_37 = arith.constant 0.000000e+00 : f32
    %102 = vector.broadcast %cst_37 : f32 to vector<128x128xf32>
    %103 = arith.select %97, %29, %102 : vector<128x128xi1>, vector<128x128xf32>
    %cst_38 = arith.constant dense<0.000000e+00> : vector<128xf32>
    %104 = vector.multi_reduction <add>, %103, %cst_38 [1] : vector<128x128xf32> to vector<128xf32>
    %105 = vector.shape_cast %104 : vector<128xf32> to vector<128x1xf32>
    %cst_39 = arith.constant 1.000000e+00 : f32
    %106 = vector.broadcast %cst_39 : f32 to vector<128x1xf32>
    %107 = arith.subf %105, %106 : vector<128x1xf32>
    %108 = arith.divf %107, %101 : vector<128x1xf32>
    %c6_i32 = arith.constant 6 : i32
    %109 = vector.broadcast %108 : vector<128x1xf32> to vector<128x128xf32>
    %110 = arith.cmpf ogt, %29, %109 : vector<128x128xf32>
    %111 = arith.extui %110 : vector<128x128xi1> to vector<128x128xi32>
    %112 = arith.sitofp %111 : vector<128x128xi32> to vector<128x128xf32>
    %cst_40 = arith.constant dense<0.000000e+00> : vector<128xf32>
    %113 = vector.multi_reduction <add>, %112, %cst_40 [1] : vector<128x128xf32> to vector<128xf32>
    %114 = vector.shape_cast %113 : vector<128xf32> to vector<128x1xf32>
    %cst_41 = arith.constant 0.000000e+00 : f32
    %115 = vector.broadcast %cst_41 : f32 to vector<128x128xf32>
    %116 = arith.select %110, %29, %115 : vector<128x128xi1>, vector<128x128xf32>
    %cst_42 = arith.constant dense<0.000000e+00> : vector<128xf32>
    %117 = vector.multi_reduction <add>, %116, %cst_42 [1] : vector<128x128xf32> to vector<128xf32>
    %118 = vector.shape_cast %117 : vector<128xf32> to vector<128x1xf32>
    %cst_43 = arith.constant 1.000000e+00 : f32
    %119 = vector.broadcast %cst_43 : f32 to vector<128x1xf32>
    %120 = arith.subf %118, %119 : vector<128x1xf32>
    %121 = arith.divf %120, %114 : vector<128x1xf32>
    %c7_i32 = arith.constant 7 : i32
    %122 = vector.broadcast %121 : vector<128x1xf32> to vector<128x128xf32>
    %123 = arith.cmpf ogt, %29, %122 : vector<128x128xf32>
    %124 = arith.extui %123 : vector<128x128xi1> to vector<128x128xi32>
    %125 = arith.sitofp %124 : vector<128x128xi32> to vector<128x128xf32>
    %cst_44 = arith.constant dense<0.000000e+00> : vector<128xf32>
    %126 = vector.multi_reduction <add>, %125, %cst_44 [1] : vector<128x128xf32> to vector<128xf32>
    %127 = vector.shape_cast %126 : vector<128xf32> to vector<128x1xf32>
    %cst_45 = arith.constant 0.000000e+00 : f32
    %128 = vector.broadcast %cst_45 : f32 to vector<128x128xf32>
    %129 = arith.select %123, %29, %128 : vector<128x128xi1>, vector<128x128xf32>
    %cst_46 = arith.constant dense<0.000000e+00> : vector<128xf32>
    %130 = vector.multi_reduction <add>, %129, %cst_46 [1] : vector<128x128xf32> to vector<128xf32>
    %131 = vector.shape_cast %130 : vector<128xf32> to vector<128x1xf32>
    %cst_47 = arith.constant 1.000000e+00 : f32
    %132 = vector.broadcast %cst_47 : f32 to vector<128x1xf32>
    %133 = arith.subf %131, %132 : vector<128x1xf32>
    %134 = arith.divf %133, %127 : vector<128x1xf32>
    %c8_i32 = arith.constant 8 : i32
    %135 = vector.broadcast %134 : vector<128x1xf32> to vector<128x128xf32>
    %136 = arith.cmpf ogt, %29, %135 : vector<128x128xf32>
    %137 = arith.extui %136 : vector<128x128xi1> to vector<128x128xi32>
    %138 = arith.sitofp %137 : vector<128x128xi32> to vector<128x128xf32>
    %cst_48 = arith.constant dense<0.000000e+00> : vector<128xf32>
    %139 = vector.multi_reduction <add>, %138, %cst_48 [1] : vector<128x128xf32> to vector<128xf32>
    %140 = vector.shape_cast %139 : vector<128xf32> to vector<128x1xf32>
    %cst_49 = arith.constant 0.000000e+00 : f32
    %141 = vector.broadcast %cst_49 : f32 to vector<128x128xf32>
    %142 = arith.select %136, %29, %141 : vector<128x128xi1>, vector<128x128xf32>
    %cst_50 = arith.constant dense<0.000000e+00> : vector<128xf32>
    %143 = vector.multi_reduction <add>, %142, %cst_50 [1] : vector<128x128xf32> to vector<128xf32>
    %144 = vector.shape_cast %143 : vector<128xf32> to vector<128x1xf32>
    %cst_51 = arith.constant 1.000000e+00 : f32
    %145 = vector.broadcast %cst_51 : f32 to vector<128x1xf32>
    %146 = arith.subf %144, %145 : vector<128x1xf32>
    %147 = arith.divf %146, %140 : vector<128x1xf32>
    %c9_i32 = arith.constant 9 : i32
    %148 = vector.broadcast %147 : vector<128x1xf32> to vector<128x128xf32>
    %149 = arith.cmpf ogt, %29, %148 : vector<128x128xf32>
    %150 = arith.extui %149 : vector<128x128xi1> to vector<128x128xi32>
    %151 = arith.sitofp %150 : vector<128x128xi32> to vector<128x128xf32>
    %cst_52 = arith.constant dense<0.000000e+00> : vector<128xf32>
    %152 = vector.multi_reduction <add>, %151, %cst_52 [1] : vector<128x128xf32> to vector<128xf32>
    %153 = vector.shape_cast %152 : vector<128xf32> to vector<128x1xf32>
    %cst_53 = arith.constant 0.000000e+00 : f32
    %154 = vector.broadcast %cst_53 : f32 to vector<128x128xf32>
    %155 = arith.select %149, %29, %154 : vector<128x128xi1>, vector<128x128xf32>
    %cst_54 = arith.constant dense<0.000000e+00> : vector<128xf32>
    %156 = vector.multi_reduction <add>, %155, %cst_54 [1] : vector<128x128xf32> to vector<128xf32>
    %157 = vector.shape_cast %156 : vector<128xf32> to vector<128x1xf32>
    %cst_55 = arith.constant 1.000000e+00 : f32
    %158 = vector.broadcast %cst_55 : f32 to vector<128x1xf32>
    %159 = arith.subf %157, %158 : vector<128x1xf32>
    %160 = arith.divf %159, %153 : vector<128x1xf32>
    %c10_i32 = arith.constant 10 : i32
    %161 = vector.broadcast %160 : vector<128x1xf32> to vector<128x128xf32>
    %162 = arith.cmpf ogt, %29, %161 : vector<128x128xf32>
    %163 = arith.extui %162 : vector<128x128xi1> to vector<128x128xi32>
    %164 = arith.sitofp %163 : vector<128x128xi32> to vector<128x128xf32>
    %cst_56 = arith.constant dense<0.000000e+00> : vector<128xf32>
    %165 = vector.multi_reduction <add>, %164, %cst_56 [1] : vector<128x128xf32> to vector<128xf32>
    %166 = vector.shape_cast %165 : vector<128xf32> to vector<128x1xf32>
    %cst_57 = arith.constant 0.000000e+00 : f32
    %167 = vector.broadcast %cst_57 : f32 to vector<128x128xf32>
    %168 = arith.select %162, %29, %167 : vector<128x128xi1>, vector<128x128xf32>
    %cst_58 = arith.constant dense<0.000000e+00> : vector<128xf32>
    %169 = vector.multi_reduction <add>, %168, %cst_58 [1] : vector<128x128xf32> to vector<128xf32>
    %170 = vector.shape_cast %169 : vector<128xf32> to vector<128x1xf32>
    %cst_59 = arith.constant 1.000000e+00 : f32
    %171 = vector.broadcast %cst_59 : f32 to vector<128x1xf32>
    %172 = arith.subf %170, %171 : vector<128x1xf32>
    %173 = arith.divf %172, %166 : vector<128x1xf32>
    %c11_i32 = arith.constant 11 : i32
    %174 = vector.broadcast %173 : vector<128x1xf32> to vector<128x128xf32>
    %175 = arith.cmpf ogt, %29, %174 : vector<128x128xf32>
    %176 = arith.extui %175 : vector<128x128xi1> to vector<128x128xi32>
    %177 = arith.sitofp %176 : vector<128x128xi32> to vector<128x128xf32>
    %cst_60 = arith.constant dense<0.000000e+00> : vector<128xf32>
    %178 = vector.multi_reduction <add>, %177, %cst_60 [1] : vector<128x128xf32> to vector<128xf32>
    %179 = vector.shape_cast %178 : vector<128xf32> to vector<128x1xf32>
    %cst_61 = arith.constant 0.000000e+00 : f32
    %180 = vector.broadcast %cst_61 : f32 to vector<128x128xf32>
    %181 = arith.select %175, %29, %180 : vector<128x128xi1>, vector<128x128xf32>
    %cst_62 = arith.constant dense<0.000000e+00> : vector<128xf32>
    %182 = vector.multi_reduction <add>, %181, %cst_62 [1] : vector<128x128xf32> to vector<128xf32>
    %183 = vector.shape_cast %182 : vector<128xf32> to vector<128x1xf32>
    %cst_63 = arith.constant 1.000000e+00 : f32
    %184 = vector.broadcast %cst_63 : f32 to vector<128x1xf32>
    %185 = arith.subf %183, %184 : vector<128x1xf32>
    %186 = arith.divf %185, %179 : vector<128x1xf32>
    %187 = vector.broadcast %186 : vector<128x1xf32> to vector<128x128xf32>
    %188 = arith.subf %29, %187 : vector<128x128xf32>
    %cst_64 = arith.constant 0.000000e+00 : f32
    %189 = vector.broadcast %cst_64 : f32 to vector<128x128xf32>
    %190 = arith.maximumf %188, %189 : vector<128x128xf32>
    %c0_65 = arith.constant 0 : index
    %c0_66 = arith.constant 0 : index
    %191 = vector.load %arg6[%c0_65, %c0_66] : memref<128x128xf32, #tpu.memory_space<vmem>>, vector<128x128xf32>
    tpu.vector_store %arg6[%c0_65, %c0_66], %190 {strides = array<i32>} : memref<128x128xf32, #tpu.memory_space<vmem>>, vector<128x128xf32>,
    %c0_67 = arith.constant 0 : index
    %c0_68 = arith.constant 0 : index
    %192 = vector.load %arg2[%c0_67, %c0_68] : memref<128x128xf32, #tpu.memory_space<vmem>>, vector<128x128xf32>
    %cst_69 = arith.constant 1.500000e+00 : f32
    %193 = vector.broadcast %cst_69 : f32 to vector<128x128xf32>
    %194 = arith.subf %193, %190 : vector<128x128xf32>
    %195 = arith.mulf %192, %194 : vector<128x128xf32>
    %c0_70 = arith.constant 0 : index
    %c0_71 = arith.constant 0 : index
    %196 = vector.load %arg7[%c0_70, %c0_71] : memref<128x128xf32, #tpu.memory_space<vmem>>, vector<128x128xf32>
    tpu.vector_store %arg7[%c0_70, %c0_71], %195 {strides = array<i32>} : memref<128x128xf32, #tpu.memory_space<vmem>>, vector<128x128xf32>,
    return
  }
  func.func @transform_0(%arg0: i32) -> (i32, i32) {
    %c0_i32 = arith.constant 0 : i32
    %c0_i32_0 = arith.constant 0 : i32
    return %arg0, %c0_i32 : i32, i32
  }
  func.func @transform_1(%arg0: i32) -> (i32, i32) {
    %c0_i32 = arith.constant 0 : i32
    %c0_i32_0 = arith.constant 0 : i32
    return %arg0, %c0_i32 : i32, i32
  }
  func.func @transform_2(%arg0: i32) -> (i32, i32) {
    %c0_i32 = arith.constant 0 : i32
    %c0_i32_0 = arith.constant 0 : i32
    %c0_i32_1 = arith.constant 0 : i32
    return %c0_i32, %c0_i32_0 : i32, i32
  }
  func.func @transform_3(%arg0: i32) -> (i32, i32) {
    %c0_i32 = arith.constant 0 : i32
    %c0_i32_0 = arith.constant 0 : i32
    %c0_i32_1 = arith.constant 0 : i32
    return %c0_i32, %c0_i32_0 : i32, i32
  }
  func.func @transform_4(%arg0: i32) -> (i32, i32) {
    %c0_i32 = arith.constant 0 : i32
    %c0_i32_0 = arith.constant 0 : i32
    %c0_i32_1 = arith.constant 0 : i32
    return %c0_i32, %c0_i32_0 : i32, i32
  }
  func.func @transform_5(%arg0: i32) -> (i32, i32) {
    %c0_i32 = arith.constant 0 : i32
    %c0_i32_0 = arith.constant 0 : i32
    return %arg0, %c0_i32 : i32, i32
  }
  func.func @transform_6(%arg0: i32) -> (i32, i32) {
    %c0_i32 = arith.constant 0 : i32
    %c0_i32_0 = arith.constant 0 : i32
    return %arg0, %c0_i32 : i32, i32
  }
}

</mosaic_0001>

<bundles_post_ra>
// kernel: tpu_custom_call.1
= control target key start
LH: loop header
LB: loop body
LE: loop exit
PB: predicated region body
PF: predicated region fallthrough
CT: control target
= control target key end

     0   :  { %12 = vsyncpa [#allocation3], 0  ;;  %vm44_vm0 = vcmask 261120   ;;  %s6114_s0 = inlined_call_operand.vmem [shape: f32[128,32], index: 0, kind: input, shape index: {}]   ;;  %s6115_s1 = inlined_call_operand.vmem [shape: f32[128,128], index: 1, kind: input, shape index: {}]   ;;  %s6116_s2 = inlined_call_operand.vmem [shape: f32[32,128], index: 2, kind: input, shape index: {}]   ;;  %s6117_s3 = inlined_call_operand.vmem [shape: f32[1,128], index: 3, kind: input, shape index: {}]   ;;  %s6118_s4 = inlined_call_operand.vmem [shape: f32[1,128], index: 4, kind: input, shape index: {}]   ;;  %s6119_s5 = inlined_call_operand.hbm [shape: f32[128,128], index: 5, kind: output, shape index: {0}]   ;;  %s6120_s6 = inlined_call_operand.hbm [shape: f32[128,128], index: 6, kind: output, shape index: {1}]  }
   0x1   :  { %v40_v0 = vld [vmem:[%s6116_s2] sm:$0xff]  ;;  %v41_v1 = vld [vmem:[%s6116_s2 + $0x8] sm:$0xff]  ;;  %v42_v2 = vld [vmem:[%s6116_s2 + $0x10] sm:$0xff] }
   0x2   :  { %v3153_v3 = vpack.c.bf16 %v41_v1, %v40_v0  ;;  %v43_v4 = vld [vmem:[%s6116_s2 + $0x18] sm:$0xff]  ;;  %v24_v5 = vld [vmem:[%s6114_s0] sm:$0xff] }
   0x3   :  { %v3157_v6 = vpack.c.bf16 %v43_v4, %v42_v2  ;;  %3129 = vmatprep.mubr.msk.f32.mxu0 %vm44_vm0, %v24_v5  ;;  %v32_v7 = vld [vmem:[%s6114_s0 + $0x40] sm:$0xff] }
   0x4   :  { %3154 = vmatprep.subr.bf16.mxu0 %v3153_v3  ;;  %3161 = vmatprep.subr.bf16.mxu1 %v3153_v3 }
   0x5   :  { %3156 = vmatpush3.bf16.msra.mxu0 %v3153_v3  ;;  %3163 = vmatpush3.bf16.msra.mxu1 %v3153_v3 }
   0x6   :  { %3158 = vmatprep.subr.bf16.mxu0 %v3157_v6  ;;  %3162 = vmatprep.subr.bf16.mxu1 %v3157_v6 }
   0x7   :  { %3141 = vmatprep.mubr.msk.f32.mxu1 %vm44_vm0, %v32_v7 }
   0x8   :  { %13 = vsyncpa [#allocation5], 0  ;;  %v25_v8 = vld [vmem:[%s6114_s0 + $0x8] sm:$0xff]  ;;  %v26_v10 = vld [vmem:[%s6114_s0 + $0x10] sm:$0xff]  ;;  %s3605_s18 = smov [#allocation2]   ;;  %s3606_s22 = smov [#allocation4]  }
   0x9   :  { %3160 = vmatpush3.bf16.msra.mxu0 %v3157_v6  ;;  %3164 = vmatpush3.bf16.msra.mxu1 %v3157_v6  ;;  %v33_v9 = vld [vmem:[%s6114_s0 + $0x48] sm:$0xff]  ;;  %v34_v11 = vld [vmem:[%s6114_s0 + $0x50] sm:$0xff]  ;;  %v27_v12 = vld [vmem:[%s6114_s0 + $0x18] sm:$0xff]  ;;  %s2673_s19 = sshll.u32 %s3605_s18, 4  ;;  %s2685_s23 = sshll.u32 %s3606_s22, 4  ;;  %s2674_s19 = int_to_ptr.vmem [resolvable:$true] %s2673_s19  ;;  %s2686_s23 = int_to_ptr.vmem [resolvable:$true] %s2685_s23 }
   0xa   :  { %v35_v13 = vld [vmem:[%s6114_s0 + $0x58] sm:$0xff]  ;;  %v28_v14 = vld [vmem:[%s6114_s0 + $0x20] sm:$0xff]  ;;  %v29_v16 = vld [vmem:[%s6114_s0 + $0x28] sm:$0xff]  ;;  %s3556_s24 = scalar_lea.vmem %s2674_s19, 2048  ;;  %p3561_p1 = scmp.lt.s32.totalorder %s2674_s19, %s2674_s19 }
   0xb   :  { %v36_v15 = vld [vmem:[%s6114_s0 + $0x60] sm:$0xff]  ;;  %v37_v17 = vld [vmem:[%s6114_s0 + $0x68] sm:$0xff]  ;;  %v30_v18 = vld [vmem:[%s6114_s0 + $0x30] sm:$0xff]  ;;  %p3557_p0 = scmp.ne.s32.totalorder %s2674_s19, %s3556_s24  ;;  %p3562_p2 = scmp.lt.s32.totalorder %s3556_s24, %s3556_s24 }
   0xc   :  { %3130 = vmatmul.mubr.msk.f32.vlgmr.msra.gmra.mrb[0].mxu0 %vm44_vm0, %v25_v8  ;;  %3142 = vmatmul.mubr.msk.f32.vlgmr.msra.gmra.mrb[0].mxu1 %vm44_vm0, %v33_v9  ;;  %v38_v19 = vld [vmem:[%s6114_s0 + $0x70] sm:$0xff]  ;;  %v31_v20 = vld [vmem:[%s6114_s0 + $0x38] sm:$0xff] }
   0xd   :  { %3132 = vmatprep.mubr.msk.f32.mxu0 %vm44_vm0, %v26_v10  ;;  %3144 = vmatprep.mubr.msk.f32.mxu1 %vm44_vm0, %v34_v11  ;;  %v39_v21 = vld [vmem:[%s6114_s0 + $0x78] sm:$0xff]  ;;  %p3563_p3 = por %p3562_p2, %p3561_p1 }
   0xf   :  { %p3564_p4 = pnand %p3563_p3, %p3557_p0 }
  0x10   :  { %3133 = vmatmul.mubr.msk.f32.gmra.mrb[2].mxu0 %vm44_vm0, %v27_v12  ;;  %3145 = vmatmul.mubr.msk.f32.gmra.mrb[2].mxu1 %vm44_vm0, %v35_v13 }
  0x11   :  { %3135 = vmatprep.mubr.msk.f32.mxu0 %vm44_vm0, %v28_v14  ;;  %3147 = vmatprep.mubr.msk.f32.mxu1 %vm44_vm0, %v36_v15 }
  0x14   :  { %3136 = vmatmul.mubr.msk.f32.gmra.mrb[4].mxu0 %vm44_vm0, %v29_v16  ;;  %3148 = vmatmul.mubr.msk.f32.gmra.mrb[4].mxu1 %vm44_vm0, %v37_v17 }
  0x15   :  { %3138 = vmatprep.mubr.msk.f32.mxu0 %vm44_vm0, %v30_v18  ;;  %3150 = vmatprep.mubr.msk.f32.mxu1 %vm44_vm0, %v38_v19 }
  0x18   :  { %3139 = vmatmul.mubr.msk.f32.gmra.mrb[6].mxu0 %vm44_vm0, %v31_v20  ;;  %3151 = vmatmul.mubr.msk.f32.gmra.mrb[6].mxu1 %vm44_vm0, %v39_v21 }
  0xdf   :  { %v3131_v22 = vpop.f32.mrb[0].mxu0  ;;  %v3143_v23 = vpop.f32.mrb[0].mxu1 }
  0xe0   :  { %v159_v24 = vpop.f32.mrb[1].mxu0  ;;  %v199_v25 = vpop.f32.mrb[1].mxu1 }
  0xe1   :  { %v238_v26 = vadd.f32 %v3131_v22, %v159_v24 }
  0xe3   :  { %v3134_v27 = vpop.f32.mrb[2].mxu0  ;;  %v3146_v28 = vpop.f32.mrb[2].mxu1 }
  0xe4   :  { %v169_v29 = vpop.f32.mrb[3].mxu0  ;;  %v209_v30 = vpop.f32.mrb[3].mxu1 }
  0xe5   :  { %v239_v31 = vadd.f32 %v238_v26, %v169_v29 }
  0xe7   :  { %v3137_v32 = vpop.f32.mrb[4].mxu0  ;;  %v240_v33 = vadd.f32 %v3134_v27, %v239_v31  ;;  %v3149_v34 = vpop.f32.mrb[4].mxu1 }
  0xe8   :  { %v179_v35 = vpop.f32.mrb[5].mxu0  ;;  %v219_v36 = vpop.f32.mrb[5].mxu1 }
  0xe9   :  { %v241_v37 = vadd.f32 %v240_v33, %v179_v35 }
  0xeb   :  { %v3140_v38 = vpop.f32.mrb[6].mxu0  ;;  %v242_v39 = vadd.f32 %v3137_v32, %v241_v37  ;;  %v3152_v40 = vpop.f32.mrb[6].mxu1 }
  0xec   :  { %v189_v41 = vpop.f32.mrb[7].mxu0  ;;  %v229_v42 = vpop.f32.mrb[7].mxu1 }
  0xed   :  { %v243_v43 = vadd.f32 %v242_v39, %v189_v41 }
  0xef   :  { %v244_v44 = vadd.f32 %v3140_v38, %v243_v43 }
  0xf1   :  { %v245_v45 = vadd.f32 %v244_v44, %v199_v25 }
  0xf3   :  { %v246_v46 = vadd.f32 %v3143_v23, %v245_v45 }
  0xf5   :  { %v247_v47 = vadd.f32 %v246_v46, %v209_v30 }
  0xf7   :  { %v248_v48 = vadd.f32 %v3146_v28, %v247_v47 }
  0xf9   :  { %v249_v49 = vadd.f32 %v248_v48, %v219_v36 }
  0xfb   :  { %v250_v50 = vadd.f32 %v3149_v34, %v249_v49 }
  0xfd   :  { %v251_v51 = vadd.f32 %v250_v50, %v229_v42 }
  0xff   :  { %v252_v52 = vadd.f32 %v3152_v40, %v251_v51  ;;  %v320_v51 = vlaneseq }
 0x101   :  { %v253_v53 = vrot.slane %v252_v52, 4 }
 0x103   :  { %v254_v54 = vadd.f32 %v253_v53, %v252_v52  ;;  %v321_v52 = vshrl.u32 %v320_v51, 7  ;;  %v315_v53 = vld [vmem:[%s6117_s3] sm:$0x1] }
 0x105   :  { %v255_v55 = vrot.slane %v254_v54, 2 }
 0x107   :  { %v256_v56 = vadd.f32 %v255_v55, %v254_v54  ;;  %v322_v54 = vsub.s32 0, %v321_v52 }
 0x109   :  { %v257_v57 = vrot.slane %v256_v56, 1 }
 0x10b   :  { %v258_v58 = vadd.f32 %v257_v57, %v256_v56 }
 0x10d   :  { %v260_v59 = vmul.f32 0.0078125, %v258_v58  ;;  %v3786_v58 = vld [vmem:[%s6118_s4] ss:$0 sm:$0xff] }
 0x10f   :  { %v3720_v60 = vsub.f32 %v159_v24, %v260_v59  ;;  %v3722_v61 = vsub.f32 %v3131_v22, %v260_v59  ;;  %v3724_v62 = vsub.f32 %v169_v29, %v260_v59  ;;  %v3726_v63 = vsub.f32 %v3134_v27, %v260_v59 }
 0x110   :  { %v3728_v0 = vsub.f32 %v179_v35, %v260_v59  ;;  %v3730_v1 = vsub.f32 %v3137_v32, %v260_v59  ;;  %v3732_v2 = vsub.f32 %v189_v41, %v260_v59  ;;  %v3734_v3 = vsub.f32 %v3140_v38, %v260_v59 }
 0x111   :  { %v3736_v4 = vsub.f32 %v199_v25, %v260_v59  ;;  %v3738_v5 = vsub.f32 %v3143_v23, %v260_v59  ;;  %v3740_v6 = vsub.f32 %v209_v30, %v260_v59  ;;  %v3742_v7 = vsub.f32 %v3146_v28, %v260_v59 }
 0x112   :  { %v3744_v8 = vsub.f32 %v219_v36, %v260_v59  ;;  %v3746_v9 = vsub.f32 %v3149_v34, %v260_v59  ;;  %v275_v10 = vsub.f32 %v229_v42, %v260_v59  ;;  %v3748_v11 = vsub.f32 %v3152_v40, %v260_v59 }
 0x113   :  { %v277_v12 = vmul.f32 %v3720_v60, %v3720_v60  ;;  %v278_v13 = vmul.f32 %v3722_v61, %v3722_v61  ;;  %v279_v14 = vmul.f32 %v3724_v62, %v3724_v62  ;;  %v280_v16 = vmul.f32 %v3726_v63, %v3726_v63 }
 0x114   :  { %v281_v18 = vmul.f32 %v3728_v0, %v3728_v0  ;;  %v282_v20 = vmul.f32 %v3730_v1, %v3730_v1  ;;  %v283_v22 = vmul.f32 %v3732_v2, %v3732_v2  ;;  %v284_v24 = vmul.f32 %v3734_v3, %v3734_v3 }
 0x115   :  { %v293_v15 = vadd.f32 %v278_v13, %v277_v12  ;;  %v285_v26 = vmul.f32 %v3736_v4, %v3736_v4  ;;  %v286_v28 = vmul.f32 %v3738_v5, %v3738_v5  ;;  %v287_v30 = vmul.f32 %v3740_v6, %v3740_v6 }
 0x116   :  { %v288_v32 = vmul.f32 %v3742_v7, %v3742_v7  ;;  %v289_v34 = vmul.f32 %v3744_v8, %v3744_v8  ;;  %v290_v36 = vmul.f32 %v3746_v9, %v3746_v9  ;;  %v291_v38 = vmul.f32 %v275_v10, %v275_v10 }
 0x117   :  { %v294_v17 = vadd.f32 %v293_v15, %v279_v14  ;;  %v292_v40 = vmul.f32 %v3748_v11, %v3748_v11  ;;  %v366_v15 = vld [vmem:[%s6115_s1 + $0x10] sm:$0xff] }
 0x119   :  { %v295_v19 = vadd.f32 %v294_v17, %v280_v16  ;;  %v364_v16 = vld [vmem:[%s6115_s1] sm:$0xff] }
 0x11b   :  { %v296_v21 = vadd.f32 %v295_v19, %v281_v18 }
 0x11d   :  { %v297_v23 = vadd.f32 %v296_v21, %v282_v20 }
 0x11f   :  { %v298_v25 = vadd.f32 %v297_v23, %v283_v22 }
 0x121   :  { %v299_v27 = vadd.f32 %v298_v25, %v284_v24 }
 0x123   :  { %v300_v29 = vadd.f32 %v299_v27, %v285_v26 }
 0x125   :  { %v301_v31 = vadd.f32 %v300_v29, %v286_v28 }
 0x127   :  { %v302_v33 = vadd.f32 %v301_v31, %v287_v30 }
 0x129   :  { %v303_v35 = vadd.f32 %v302_v33, %v288_v32  ;;  %v370_v33 = vld [vmem:[%s6115_s1 + $0x30] sm:$0xff] }
 0x12b   :  { %v304_v37 = vadd.f32 %v303_v35, %v289_v34 }
 0x12d   :  { %v305_v39 = vadd.f32 %v304_v37, %v290_v36 }
 0x12f   :  { %v306_v41 = vadd.f32 %v305_v39, %v291_v38  ;;  %v372_v39 = vld [vmem:[%s6115_s1 + $0x40] sm:$0xff] }
 0x131   :  { %v307_v42 = vadd.f32 %v306_v41, %v292_v40 }
 0x133   :  { %v308_v43 = vrot.slane %v307_v42, 4 }
 0x135   :  { %v309_v44 = vadd.f32 %v308_v43, %v307_v42 }
 0x137   :  { %v310_v45 = vrot.slane %v309_v44, 2 }
 0x139   :  { %v311_v46 = vadd.f32 %v310_v45, %v309_v44  ;;  %v375_v44 = vld [vmem:[%s6115_s1 + $0x58] sm:$0xff]  ;;  %v374_v45 = vld [vmem:[%s6115_s1 + $0x50] sm:$0xff] }
 0x13b   :  { %v312_v47 = vrot.slane %v311_v46, 1 }
 0x13d   :  { %v313_v48 = vadd.f32 %v312_v47, %v311_v46 }
 0x13f   :  { %v314_v49 = vmul.f32 0.0078125, %v313_v48 }
 0x141   :  { %v316_v50 = vadd.f32 1e-05, %v314_v49  ;;  %v377_v49 = vld [vmem:[%s6115_s1 + $0x68] sm:$0xff] }
 0x143   :  { %3170 = vrsqrt.f32 %v316_v50  ;;  %v376_v50 = vld [vmem:[%s6115_s1 + $0x60] sm:$0xff] }
 0x14d   :  { %v3171_v55 = vpop.eup %3170 }
 0x14e   :  { %v318_v56 = vmul.f32 %v3171_v55, %v315_v53  ;;  %v379_v55 = vld [vmem:[%s6115_s1 + $0x78] sm:$0xff] }
 0x150   :  { %v323_v57 = vrot.slane %v318_v56, %v322_v54  ;;  %v378_v56 = vld [vmem:[%s6115_s1 + $0x70] sm:$0xff] }
 0x152   :  { %v3788_v59 = vmul.f32 %v323_v57, %v275_v10  ;;  %v327_v12 = vmul.f32 %v323_v57, %v3724_v62  ;;  %v325_v13 = vmul.f32 %v323_v57, %v3720_v60  ;;  %v328_v14 = vmul.f32 %v323_v57, %v3726_v63 }
 0x153   :  { %v326_v17 = vmul.f32 %v323_v57, %v3722_v61  ;;  %v330_v18 = vmul.f32 %v323_v57, %v3730_v1  ;;  %v332_v10 = vmul.f32 %v323_v57, %v3734_v3  ;;  %v329_v63 = vmul.f32 %v323_v57, %v3728_v0  ;;  %v367_v61 = vld [vmem:[%s6115_s1 + $0x18] sm:$0xff]  ;;  %v365_v1 = vld [vmem:[%s6115_s1 + $0x8] sm:$0xff] }
 0x154   :  { %v350_v62 = vadd.f32 %v3786_v58, %v327_v12  ;;  %v348_v60 = vadd.f32 %v3786_v58, %v325_v13  ;;  %v351_v21 = vadd.f32 %v3786_v58, %v328_v14  ;;  %v334_v0 = vmul.f32 %v323_v57, %v3738_v5  ;;  %v369_v5 = vld [vmem:[%s6115_s1 + $0x28] sm:$0xff] }
 0x155   :  { %v349_v22 = vadd.f32 %v3786_v58, %v326_v17  ;;  %v353_v3 = vadd.f32 %v3786_v58, %v330_v18  ;;  %v331_v23 = vmul.f32 %v323_v57, %v3732_v2  ;;  %v336_v24 = vmul.f32 %v323_v57, %v3742_v7  ;;  %v368_v2 = vld [vmem:[%s6115_s1 + $0x20] sm:$0xff] }
 0x156   :  { %v3805_v19 = vmul.f32 %v366_v15, %v350_v62  ;;  %v3807_v20 = vmul.f32 %v364_v16, %v348_v60  ;;  %v338_v25 = vmul.f32 %v323_v57, %v3746_v9  ;;  %v3824_v26 = vmul.f32 %v367_v61, %v351_v21 }
 0x157   :  { %v3826_v27 = vmul.f32 %v365_v1, %v349_v22  ;;  %v352_v28 = vadd.f32 %v3786_v58, %v329_v63  ;;  %v340_v29 = vmul.f32 %v323_v57, %v3748_v11  ;;  %v355_v7 = vadd.f32 %v3786_v58, %v332_v10  ;;  %v371_v11 = vld [vmem:[%s6115_s1 + $0x38] sm:$0xff] }
 0x158   :  { %400 = vmax.xlane.f32.xlu1 %v3805_v19  ;;  %396 = vmax.xlane.f32.xlu0 %v3807_v20  ;;  %v3839_v9 = vmul.f32 %v369_v5, %v353_v3  ;;  %v354_v31 = vadd.f32 %v3786_v58, %v331_v23  ;;  %v333_v32 = vmul.f32 %v323_v57, %v3736_v4  ;;  %v373_v4 = vld [vmem:[%s6115_s1 + $0x48] sm:$0xff]  ;;  %v3604_v17 = vmov 0.0  }
 0x159   :  { %v3841_v30 = vmul.f32 %v368_v2, %v352_v28  ;;  %v3853_v34 = vmul.f32 %v371_v11, %v355_v7  ;;  %v357_v36 = vadd.f32 %v3786_v58, %v334_v0  ;;  %v335_v38 = vmul.f32 %v323_v57, %v3740_v6 }
 0x15a   :  { %v3855_v35 = vmul.f32 %v370_v33, %v354_v31  ;;  %v356_v37 = vadd.f32 %v3786_v58, %v333_v32  ;;  %v337_v40 = vmul.f32 %v323_v57, %v3744_v8  ;;  %v359_v6 = vadd.f32 %v3786_v58, %v336_v24 }
 0x15b   :  { %v3869_v41 = vmul.f32 %v373_v4, %v357_v36  ;;  %v358_v43 = vadd.f32 %v3786_v58, %v335_v38  ;;  %v361_v47 = vadd.f32 %v3786_v58, %v338_v25  ;;  %v363_v53 = vadd.f32 %v3786_v58, %v340_v29 }
 0x15c   :  { %402 = vmax.xlane.f32.xlu1 %v3824_v26  ;;  %398 = vmax.xlane.f32.xlu0 %v3826_v27  ;;  %v3871_v42 = vmul.f32 %v372_v39, %v356_v37  ;;  %v3883_v8 = vmul.f32 %v375_v44, %v359_v6  ;;  %v360_v48 = vadd.f32 %v3786_v58, %v337_v40 }
 0x15d   :  { %v3885_v46 = vmul.f32 %v374_v45, %v358_v43  ;;  %v3897_v51 = vmul.f32 %v377_v49, %v361_v47  ;;  %v362_v54 = vadd.f32 %v3786_v58, %v3788_v59  ;;  %v3912_v57 = vmul.f32 %v379_v55, %v363_v53 }
 0x15e   :  { %v3899_v52 = vmul.f32 %v376_v50, %v360_v48 }
 0x15f   :  { %v3914_v12 = vmul.f32 %v378_v56, %v362_v54 }
 0x160   :  { %406 = vmax.xlane.f32.xlu1 %v3839_v9  ;;  %404 = vmax.xlane.f32.xlu0 %v3841_v30 }
 0x164   :  { %410 = vmax.xlane.f32.xlu1 %v3853_v34  ;;  %408 = vmax.xlane.f32.xlu0 %v3855_v35 }
 0x168   :  { %414 = vmax.xlane.f32.xlu1 %v3869_v41  ;;  %412 = vmax.xlane.f32.xlu0 %v3871_v42 }
 0x16c   :  { %418 = vmax.xlane.f32.xlu1 %v3883_v8  ;;  %416 = vmax.xlane.f32.xlu0 %v3885_v46 }
 0x170   :  { %422 = vmax.xlane.f32.xlu1 %v3897_v51  ;;  %420 = vmax.xlane.f32.xlu0 %v3899_v52 }
 0x174   :  { %426 = vmax.xlane.f32.xlu1 %v3912_v57  ;;  %424 = vmax.xlane.f32.xlu0 %v3914_v12 }
 0x1e5   :  { %v401_v58 = vpop.xlane.xlu1 %400  ;;  %v397_v59 = vpop.xlane.xlu0 %396 }
 0x1e6   :  { %v3919_v13 = vsub.f32 %v3805_v19, %v401_v58  ;;  %v3922_v14 = vsub.f32 %v3807_v20, %v397_v59 }
 0x1e8   :  { %vm444_vm1 = vcmp.gt.f32.partialorder %v3922_v14, -1.0  ;;  %vm446_vm2 = vcmp.gt.f32.partialorder %v3919_v13, -1.0 }
 0x1e9   :  { %v403_v15 = vpop.xlane.xlu1 %402  ;;  %v399_v16 = vpop.xlane.xlu0 %398  ;;  %v2717_v18 = vsel %vm444_vm1, 1.0, %v3604_v17  ;;  %v2719_v19 = vsel %vm446_vm2, 1.0, %v3604_v17  ;;  %v524_v45 = vsel %vm444_vm1, %v3922_v14, 0.0 }
 0x1ea   :  { %v3929_v10 = vsub.f32 %v3824_v26, %v403_v15  ;;  %v3932_v62 = vsub.f32 %v3826_v27, %v399_v16  ;;  %492 = vadd.xlane.f32.xlu0 %v2717_v18 }
 0x1ec   :  { %vm445_vm3 = vcmp.gt.f32.partialorder %v3932_v62, -1.0  ;;  %vm447_vm4 = vcmp.gt.f32.partialorder %v3929_v10, -1.0 }
 0x1ed   :  { %v407_v60 = vpop.xlane.xlu1 %406  ;;  %v405_v63 = vpop.xlane.xlu0 %404  ;;  %v2718_v20 = vsel %vm445_vm3, 1.0, %v3604_v17  ;;  %v2720_v0 = vsel %vm447_vm4, 1.0, %v3604_v17  ;;  %v527_v47 = vsel %vm447_vm4, %v3929_v10, 0.0 }
 0x1ee   :  { %v3943_v21 = vsub.f32 %v3839_v9, %v407_v60  ;;  %v3946_v22 = vsub.f32 %v3841_v30, %v405_v63  ;;  %496 = vadd.xlane.f32.xlu0 %v2719_v19  ;;  %494 = vadd.xlane.f32.xlu1 %v2718_v20 }
 0x1f0   :  { %vm448_vm5 = vcmp.gt.f32.partialorder %v3946_v22, -1.0  ;;  %vm449_vm6 = vcmp.gt.f32.partialorder %v3943_v21, -1.0 }
 0x1f1   :  { %v411_v61 = vpop.xlane.xlu1 %410  ;;  %v409_v1 = vpop.xlane.xlu0 %408  ;;  %v2721_v3 = vsel %vm448_vm5, 1.0, %v3604_v17  ;;  %v2722_v27 = vsel %vm449_vm6, 1.0, %v3604_v17  ;;  %v528_v48 = vsel %vm448_vm5, %v3946_v22, 0.0  ;;  %v529_v49 = vsel %vm449_vm6, %v3943_v21, 0.0 }
 0x1f2   :  { %v3957_v23 = vsub.f32 %v3853_v34, %v411_v61  ;;  %v3960_v24 = vsub.f32 %v3855_v35, %v409_v1  ;;  %498 = vadd.xlane.f32.xlu1 %v2720_v0  ;;  %500 = vadd.xlane.f32.xlu0 %v2721_v3 }
 0x1f4   :  { %vm450_vm7 = vcmp.gt.f32.partialorder %v3960_v24, -1.0  ;;  %vm451_vm8 = vcmp.gt.f32.partialorder %v3957_v23, -1.0 }
 0x1f5   :  { %v415_v25 = vpop.xlane.xlu1 %414  ;;  %v413_v26 = vpop.xlane.xlu0 %412  ;;  %v2723_v28 = vsel %vm450_vm7, 1.0, %v3604_v17  ;;  %v2724_v9 = vsel %vm451_vm8, 1.0, %v3604_v17  ;;  %v530_v50 = vsel %vm450_vm7, %v3960_v24, 0.0 }
 0x1f6   :  { %v3971_v29 = vsub.f32 %v3869_v41, %v415_v25  ;;  %v3974_v5 = vsub.f32 %v3871_v42, %v413_v26  ;;  %502 = vadd.xlane.f32.xlu1 %v2722_v27  ;;  %504 = vadd.xlane.f32.xlu0 %v2723_v28 }
 0x1f8   :  { %vm452_vm9 = vcmp.gt.f32.partialorder %v3974_v5, -1.0  ;;  %vm453_vm10 = vcmp.gt.f32.partialorder %v3971_v29, -1.0 }
 0x1f9   :  { %v419_v2 = vpop.xlane.xlu1 %418  ;;  %v417_v7 = vpop.xlane.xlu0 %416  ;;  %v2725_v30 = vsel %vm452_vm9, 1.0, %v3604_v17  ;;  %v2726_v34 = vsel %vm453_vm10, 1.0, %v3604_v17  ;;  %v533_v53 = vsel %vm453_vm10, %v3971_v29, 0.0 }
 0x1fa   :  { %v3985_v11 = vsub.f32 %v3883_v8, %v419_v2  ;;  %v3988_v31 = vsub.f32 %v3885_v46, %v417_v7  ;;  %506 = vadd.xlane.f32.xlu1 %v2724_v9  ;;  %508 = vadd.xlane.f32.xlu0 %v2725_v30  ;;  %v525_v8 = vsel %vm445_vm3, %v3932_v62, 0.0  ;;  %v526_v46 = vsel %vm446_vm2, %v3919_v13, 0.0 }
 0x1fc   :  { %vm454_vm11 = vcmp.gt.f32.partialorder %v3988_v31, -1.0  ;;  %vm455_vm12 = vcmp.gt.f32.partialorder %v3985_v11, -1.0 }
 0x1fd   :  { %v423_v32 = vpop.xlane.xlu1 %422  ;;  %v421_v33 = vpop.xlane.xlu0 %420  ;;  %v2727_v35 = vsel %vm454_vm11, 1.0, %v3604_v17  ;;  %v2728_v39 = vsel %vm455_vm12, 1.0, %v3604_v17  ;;  %v534_v54 = vsel %vm454_vm11, %v3988_v31, 0.0  ;;  %v535_v55 = vsel %vm455_vm12, %v3985_v11, 0.0 }
 0x1fe   :  { %v3999_v36 = vsub.f32 %v3897_v51, %v423_v32  ;;  %v4002_v37 = vsub.f32 %v3899_v52, %v421_v33  ;;  %510 = vadd.xlane.f32.xlu1 %v2726_v34  ;;  %512 = vadd.xlane.f32.xlu0 %v2727_v35  ;;  %v531_v51 = vsel %vm451_vm8, %v3957_v23, 0.0  ;;  %v532_v52 = vsel %vm452_vm9, %v3974_v5, 0.0 }
 0x200   :  { %vm456_vm13 = vcmp.gt.f32.partialorder %v4002_v37, -1.0  ;;  %vm457_vm14 = vcmp.gt.f32.partialorder %v3999_v36, -1.0 }
 0x201   :  { %v427_v38 = vpop.xlane.xlu1 %426  ;;  %v425_v4 = vpop.xlane.xlu0 %424  ;;  %v2729_v40 = vsel %vm456_vm13, 1.0, %v3604_v17  ;;  %v2730_v6 = vsel %vm457_vm14, 1.0, %v3604_v17  ;;  %v536_v56 = vsel %vm456_vm13, %v4002_v37, 0.0 }
 0x202   :  { %v4013_v41 = vsub.f32 %v3912_v57, %v427_v38  ;;  %v4016_v42 = vsub.f32 %v3914_v12, %v425_v4  ;;  %514 = vadd.xlane.f32.xlu1 %v2728_v39  ;;  %516 = vadd.xlane.f32.xlu0 %v2729_v40  ;;  %v537_v57 = vsel %vm457_vm14, %v3999_v36, 0.0 }
 0x204   :  { %vm458_vm15 = vcmp.gt.f32.partialorder %v4016_v42, -1.0  ;;  %vm459_vm0 = vcmp.gt.f32.partialorder %v4013_v41, -1.0 }
 0x205   :  { %v2731_v43 = vsel %vm458_vm15, 1.0, %v3604_v17  ;;  %v2732_v44 = vsel %vm459_vm0, 1.0, %v3604_v17  ;;  %v538_v12 = vsel %vm458_vm15, %v4016_v42, 0.0  ;;  %v539_v58 = vsel %vm459_vm0, %v4013_v41, 0.0 }
 0x206   :  { %518 = vadd.xlane.f32.xlu1 %v2730_v6  ;;  %520 = vadd.xlane.f32.xlu0 %v2731_v43 }
 0x20a   :  { %522 = vadd.xlane.f32.xlu1 %v2732_v44  ;;  %540 = vadd.xlane.f32.xlu0 %v524_v45 }
 0x20e   :  { %542 = vadd.xlane.f32.xlu1 %v525_v8  ;;  %544 = vadd.xlane.f32.xlu0 %v526_v46 }
 0x212   :  { %546 = vadd.xlane.f32.xlu1 %v527_v47  ;;  %548 = vadd.xlane.f32.xlu0 %v528_v48 }
 0x216   :  { %550 = vadd.xlane.f32.xlu1 %v529_v49  ;;  %552 = vadd.xlane.f32.xlu0 %v530_v50 }
 0x21a   :  { %554 = vadd.xlane.f32.xlu1 %v531_v51  ;;  %556 = vadd.xlane.f32.xlu0 %v532_v52 }
 0x21e   :  { %558 = vadd.xlane.f32.xlu1 %v533_v53  ;;  %560 = vadd.xlane.f32.xlu0 %v534_v54 }
 0x222   :  { %562 = vadd.xlane.f32.xlu1 %v535_v55  ;;  %564 = vadd.xlane.f32.xlu0 %v536_v56 }
 0x226   :  { %566 = vadd.xlane.f32.xlu1 %v537_v57  ;;  %568 = vadd.xlane.f32.xlu0 %v538_v12 }
 0x22a   :  { %570 = vadd.xlane.f32.xlu1 %v539_v58 }
 0x277   :  { %v493_v59 = vpop.xlane.xlu0 %492 }
 0x278   :  { %3172 = vrcp.f32 %v493_v59 }
 0x27b   :  { %v495_v15 = vpop.xlane.xlu1 %494  ;;  %v497_v16 = vpop.xlane.xlu0 %496 }
 0x27c   :  { %3174 = vrcp.f32 %v495_v15 }
 0x27d   :  { %3176 = vrcp.f32 %v497_v16 }
 0x27f   :  { %v499_v18 = vpop.xlane.xlu1 %498  ;;  %v501_v60 = vpop.xlane.xlu0 %500 }
 0x280   :  { %3178 = vrcp.f32 %v499_v18 }
 0x281   :  { %3180 = vrcp.f32 %v501_v60 }
 0x282   :  { %v3173_v9 = vpop.eup %3172 }
 0x283   :  { %v503_v63 = vpop.xlane.xlu1 %502  ;;  %v505_v19 = vpop.xlane.xlu0 %504 }
 0x284   :  { %3182 = vrcp.f32 %v503_v63 }
 0x285   :  { %3184 = vrcp.f32 %v505_v19 }
 0x286   :  { %v3175_v34 = vpop.eup %3174 }
 0x287   :  { %v507_v20 = vpop.xlane.xlu1 %506  ;;  %v509_v61 = vpop.xlane.xlu0 %508 }
 0x288   :  { %v3177_v4 = vpop.eup %3176  ;;  %3186 = vrcp.f32 %v507_v20 }
 0x289   :  { %3188 = vrcp.f32 %v509_v61 }
 0x28a   :  { %v3179_v45 = vpop.eup %3178 }
 0x28b   :  { %v511_v1 = vpop.xlane.xlu1 %510  ;;  %v513_v0 = vpop.xlane.xlu0 %512 }
 0x28c   :  { %v3181_v47 = vpop.eup %3180  ;;  %3190 = vrcp.f32 %v511_v1 }
 0x28d   :  { %3192 = vrcp.f32 %v513_v0 }
 0x28e   :  { %v3183_v54 = vpop.eup %3182 }
 0x28f   :  { %v515_v3 = vpop.xlane.xlu1 %514  ;;  %v517_v25 = vpop.xlane.xlu0 %516 }
 0x290   :  { %v3185_v57 = vpop.eup %3184  ;;  %3194 = vrcp.f32 %v515_v3 }
 0x291   :  { %3196 = vrcp.f32 %v517_v25 }
 0x292   :  { %v3187_v60 = vpop.eup %3186 }
 0x293   :  { %v4078_v26 = vpop.xlane.xlu1 %518  ;;  %v4080_v27 = vpop.xlane.xlu0 %520 }
 0x294   :  { %v3189_v20 = vpop.eup %3188  ;;  %3198 = vrcp.f32 %v4078_v26 }
 0x295   :  { %3200 = vrcp.f32 %v4080_v27 }
 0x297   :  { %v4082_v28 = vpop.xlane.xlu1 %522  ;;  %v541_v2 = vpop.xlane.xlu0 %540 }
 0x298   :  { %v2733_v7 = vadd.f32 -1.0, %v541_v2  ;;  %3202 = vrcp.f32 %v4082_v28 }
 0x29a   :  { %v4084_v30 = vmul.f32 %v3173_v9, %v2733_v7  ;;  %v3191_v7 = vpop.eup %3190 }
 0x29b   :  { %v543_v32 = vpop.xlane.xlu1 %542  ;;  %v545_v33 = vpop.xlane.xlu0 %544 }
 0x29c   :  { %v2734_v35 = vadd.f32 -1.0, %v543_v32  ;;  %v2735_v38 = vadd.f32 -1.0, %v545_v33  ;;  %vm620_vm1 = vcmp.gt.f32.partialorder %v3922_v14, %v4084_v30  ;;  %v3193_v26 = vpop.eup %3192 }
 0x29d   :  { %v2749_v39 = vsel %vm620_vm1, 1.0, %v3604_v17 }
 0x29e   :  { %668 = vadd.xlane.f32.xlu0 %v2749_v39  ;;  %v4092_v40 = vmul.f32 %v3175_v34, %v2734_v35  ;;  %v4094_v6 = vmul.f32 %v3177_v4, %v2735_v38  ;;  %v3195_v39 = vpop.eup %3194 }
 0x29f   :  { %v547_v43 = vpop.xlane.xlu1 %546  ;;  %v549_v44 = vpop.xlane.xlu0 %548 }
 0x2a0   :  { %v2736_v8 = vadd.f32 -1.0, %v547_v43  ;;  %v2737_v46 = vadd.f32 -1.0, %v549_v44  ;;  %vm621_vm2 = vcmp.gt.f32.partialorder %v3932_v62, %v4092_v40  ;;  %vm622_vm3 = vcmp.gt.f32.partialorder %v3919_v13, %v4094_v6 }
 0x2a1   :  { %v2750_v48 = vsel %vm621_vm2, 1.0, %v3604_v17  ;;  %v2751_v49 = vsel %vm622_vm3, 1.0, %v3604_v17 }
 0x2a2   :  { %670 = vadd.xlane.f32.xlu1 %v2750_v48  ;;  %672 = vadd.xlane.f32.xlu0 %v2751_v49  ;;  %v4108_v50 = vmul.f32 %v3179_v45, %v2736_v8  ;;  %v4110_v51 = vmul.f32 %v3181_v47, %v2737_v46  ;;  %v3197_v45 = vpop.eup %3196 }
 0x2a3   :  { %v551_v52 = vpop.xlane.xlu1 %550  ;;  %v553_v53 = vpop.xlane.xlu0 %552 }
 0x2a4   :  { %v2738_v55 = vadd.f32 -1.0, %v551_v52  ;;  %v2739_v56 = vadd.f32 -1.0, %v553_v53  ;;  %vm623_vm4 = vcmp.gt.f32.partialorder %v3929_v10, %v4108_v50  ;;  %vm624_vm5 = vcmp.gt.f32.partialorder %v3946_v22, %v4110_v51  ;;  %v3199_v52 = vpop.eup %3198 }
 0x2a5   :  { %v2752_v12 = vsel %vm623_vm4, 1.0, %v3604_v17  ;;  %v2753_v58 = vsel %vm624_vm5, 1.0, %v3604_v17  ;;  %v703_v30 = vsel %vm623_vm4, %v3929_v10, 0.0 }
 0x2a6   :  { %674 = vadd.xlane.f32.xlu1 %v2752_v12  ;;  %676 = vadd.xlane.f32.xlu0 %v2753_v58  ;;  %v4124_v59 = vmul.f32 %v3183_v54, %v2738_v55  ;;  %v4126_v15 = vmul.f32 %v3185_v57, %v2739_v56  ;;  %v3201_v55 = vpop.eup %3200 }
 0x2a7   :  { %v555_v16 = vpop.xlane.xlu1 %554  ;;  %v557_v18 = vpop.xlane.xlu0 %556 }
 0x2a8   :  { %v2740_v63 = vadd.f32 -1.0, %v555_v16  ;;  %v2741_v19 = vadd.f32 -1.0, %v557_v18  ;;  %vm625_vm6 = vcmp.gt.f32.partialorder %v3943_v21, %v4124_v59  ;;  %vm626_vm7 = vcmp.gt.f32.partialorder %v3960_v24, %v4126_v15 }
 0x2a9   :  { %v2754_v61 = vsel %vm625_vm6, 1.0, %v3604_v17  ;;  %v2755_v1 = vsel %vm626_vm7, 1.0, %v3604_v17  ;;  %v705_v40 = vsel %vm625_vm6, %v3943_v21, 0.0  ;;  %v706_v6 = vsel %vm626_vm7, %v3960_v24, 0.0 }
 0x2aa   :  { %678 = vadd.xlane.f32.xlu1 %v2754_v61  ;;  %680 = vadd.xlane.f32.xlu0 %v2755_v1  ;;  %v4141_v0 = vmul.f32 %v3187_v60, %v2740_v63  ;;  %v4143_v3 = vmul.f32 %v3189_v20, %v2741_v19  ;;  %v3203_v60 = vpop.eup %3202  ;;  %v700_v1 = vsel %vm620_vm1, %v3922_v14, 0.0 }
 0x2ab   :  { %v559_v25 = vpop.xlane.xlu1 %558  ;;  %v561_v2 = vpop.xlane.xlu0 %560 }
 0x2ac   :  { %v2742_v9 = vadd.f32 -1.0, %v559_v25  ;;  %v2743_v32 = vadd.f32 -1.0, %v561_v2  ;;  %vm627_vm8 = vcmp.gt.f32.partialorder %v3957_v23, %v4141_v0  ;;  %vm628_vm9 = vcmp.gt.f32.partialorder %v3974_v5, %v4143_v3 }
 0x2ad   :  { %v2756_v33 = vsel %vm627_vm8, 1.0, %v3604_v17  ;;  %v2757_v27 = vsel %vm628_vm9, 1.0, %v3604_v17  ;;  %v701_v25 = vsel %vm621_vm2, %v3932_v62, 0.0  ;;  %v702_v2 = vsel %vm622_vm3, %v3919_v13, 0.0 }
 0x2ae   :  { %682 = vadd.xlane.f32.xlu1 %v2756_v33  ;;  %684 = vadd.xlane.f32.xlu0 %v2757_v27  ;;  %v4158_v34 = vmul.f32 %v3191_v7, %v2742_v9  ;;  %v4160_v35 = vmul.f32 %v3193_v26, %v2743_v32  ;;  %v704_v7 = vsel %vm624_vm5, %v3946_v22, 0.0  ;;  %v707_v50 = vsel %vm627_vm8, %v3957_v23, 0.0 }
 0x2af   :  { %v563_v38 = vpop.xlane.xlu1 %562  ;;  %v565_v4 = vpop.xlane.xlu0 %564  ;;  %v708_v51 = vsel %vm628_vm9, %v3974_v5, 0.0 }
 0x2b0   :  { %v2744_v43 = vadd.f32 -1.0, %v563_v38  ;;  %v2745_v44 = vadd.f32 -1.0, %v565_v4  ;;  %vm629_vm10 = vcmp.gt.f32.partialorder %v3971_v29, %v4158_v34  ;;  %vm630_vm11 = vcmp.gt.f32.partialorder %v3988_v31, %v4160_v35 }
 0x2b1   :  { %v2758_v8 = vsel %vm629_vm10, 1.0, %v3604_v17  ;;  %v2759_v28 = vsel %vm630_vm11, 1.0, %v3604_v17  ;;  %v709_v59 = vsel %vm629_vm10, %v3971_v29, 0.0  ;;  %v710_v15 = vsel %vm630_vm11, %v3988_v31, 0.0 }
 0x2b2   :  { %686 = vadd.xlane.f32.xlu1 %v2758_v8  ;;  %688 = vadd.xlane.f32.xlu0 %v2759_v28  ;;  %v611_v46 = vmul.f32 %v3195_v39, %v2744_v43  ;;  %v613_v47 = vmul.f32 %v3197_v45, %v2745_v44 }
 0x2b3   :  { %v567_v48 = vpop.xlane.xlu1 %566  ;;  %v569_v49 = vpop.xlane.xlu0 %568 }
 0x2b4   :  { %v2746_v53 = vadd.f32 -1.0, %v567_v48  ;;  %v2747_v54 = vadd.f32 -1.0, %v569_v49  ;;  %vm631_vm12 = vcmp.gt.f32.partialorder %v3985_v11, %v611_v46  ;;  %vm632_vm13 = vcmp.gt.f32.partialorder %v4002_v37, %v613_v47 }
 0x2b5   :  { %v2760_v56 = vsel %vm631_vm12, 1.0, %v3604_v17  ;;  %v2761_v57 = vsel %vm632_vm13, 1.0, %v3604_v17  ;;  %v711_v0 = vsel %vm631_vm12, %v3985_v11, 0.0  ;;  %v712_v3 = vsel %vm632_vm13, %v4002_v37, 0.0 }
 0x2b6   :  { %690 = vadd.xlane.f32.xlu1 %v2760_v56  ;;  %692 = vadd.xlane.f32.xlu0 %v2761_v57  ;;  %v615_v12 = vmul.f32 %v3199_v52, %v2746_v53  ;;  %v617_v58 = vmul.f32 %v3201_v55, %v2747_v54 }
 0x2b7   :  { %v571_v16 = vpop.xlane.xlu1 %570 }
 0x2b8   :  { %v2748_v18 = vadd.f32 -1.0, %v571_v16  ;;  %vm633_vm14 = vcmp.gt.f32.partialorder %v3999_v36, %v615_v12  ;;  %vm634_vm15 = vcmp.gt.f32.partialorder %v4016_v42, %v617_v58 }
 0x2b9   :  { %v2762_v63 = vsel %vm633_vm14, 1.0, %v3604_v17  ;;  %v2763_v19 = vsel %vm634_vm15, 1.0, %v3604_v17  ;;  %v713_v9 = vsel %vm633_vm14, %v3999_v36, 0.0  ;;  %v714_v32 = vsel %vm634_vm15, %v4016_v42, 0.0 }
 0x2ba   :  { %694 = vadd.xlane.f32.xlu1 %v2762_v63  ;;  %696 = vadd.xlane.f32.xlu0 %v2763_v19  ;;  %v619_v20 = vmul.f32 %v3203_v60, %v2748_v18 }
 0x2bc   :  { %vm635_vm0 = vcmp.gt.f32.partialorder %v4013_v41, %v619_v20 }
 0x2bd   :  { %v2764_v61 = vsel %vm635_vm0, 1.0, %v3604_v17  ;;  %v715_v26 = vsel %vm635_vm0, %v4013_v41, 0.0 }
 0x2be   :  { %698 = vadd.xlane.f32.xlu1 %v2764_v61  ;;  %716 = vadd.xlane.f32.xlu0 %v700_v1 }
 0x2c2   :  { %718 = vadd.xlane.f32.xlu1 %v701_v25  ;;  %720 = vadd.xlane.f32.xlu0 %v702_v2 }
 0x2c6   :  { %722 = vadd.xlane.f32.xlu1 %v703_v30  ;;  %724 = vadd.xlane.f32.xlu0 %v704_v7 }
 0x2ca   :  { %726 = vadd.xlane.f32.xlu1 %v705_v40  ;;  %728 = vadd.xlane.f32.xlu0 %v706_v6 }
 0x2ce   :  { %730 = vadd.xlane.f32.xlu1 %v707_v50  ;;  %732 = vadd.xlane.f32.xlu0 %v708_v51 }
 0x2d2   :  { %734 = vadd.xlane.f32.xlu1 %v709_v59  ;;  %736 = vadd.xlane.f32.xlu0 %v710_v15 }
 0x2d6   :  { %738 = vadd.xlane.f32.xlu1 %v711_v0  ;;  %740 = vadd.xlane.f32.xlu0 %v712_v3 }
 0x2da   :  { %742 = vadd.xlane.f32.xlu1 %v713_v9  ;;  %744 = vadd.xlane.f32.xlu0 %v714_v32 }
 0x2de   :  { %746 = vadd.xlane.f32.xlu1 %v715_v26 }
 0x32b   :  { %v669_v33 = vpop.xlane.xlu0 %668 }
 0x32c   :  { %3204 = vrcp.f32 %v669_v33 }
 0x32f   :  { %v671_v27 = vpop.xlane.xlu1 %670  ;;  %v673_v34 = vpop.xlane.xlu0 %672 }
 0x330   :  { %3206 = vrcp.f32 %v671_v27 }
 0x331   :  { %3208 = vrcp.f32 %v673_v34 }
 0x333   :  { %v675_v35 = vpop.xlane.xlu1 %674  ;;  %v677_v38 = vpop.xlane.xlu0 %676 }
 0x334   :  { %3210 = vrcp.f32 %v675_v35 }
 0x335   :  { %3212 = vrcp.f32 %v677_v38 }
 0x336   :  { %v3205_v54 = vpop.eup %3204 }
 0x337   :  { %v679_v4 = vpop.xlane.xlu1 %678  ;;  %v681_v39 = vpop.xlane.xlu0 %680 }
 0x338   :  { %3214 = vrcp.f32 %v679_v4 }
 0x339   :  { %3216 = vrcp.f32 %v681_v39 }
 0x33a   :  { %v3207_v12 = vpop.eup %3206 }
 0x33b   :  { %v683_v43 = vpop.xlane.xlu1 %682  ;;  %v685_v44 = vpop.xlane.xlu0 %684 }
 0x33c   :  { %v3209_v18 = vpop.eup %3208  ;;  %3218 = vrcp.f32 %v683_v43 }
 0x33d   :  { %3220 = vrcp.f32 %v685_v44 }
 0x33e   :  { %v3211_v1 = vpop.eup %3210 }
 0x33f   :  { %v687_v45 = vpop.xlane.xlu1 %686  ;;  %v689_v8 = vpop.xlane.xlu0 %688 }
 0x340   :  { %v3213_v30 = vpop.eup %3212  ;;  %3222 = vrcp.f32 %v687_v45 }
 0x341   :  { %3224 = vrcp.f32 %v689_v8 }
 0x342   :  { %v3215_v15 = vpop.eup %3214 }
 0x343   :  { %v691_v28 = vpop.xlane.xlu1 %690  ;;  %v693_v46 = vpop.xlane.xlu0 %692 }
 0x344   :  { %v3217_v9 = vpop.eup %3216  ;;  %3226 = vrcp.f32 %v691_v28 }
 0x345   :  { %3228 = vrcp.f32 %v693_v46 }
 0x346   :  { %v3219_v38 = vpop.eup %3218 }
 0x347   :  { %v4254_v47 = vpop.xlane.xlu1 %694  ;;  %v4256_v48 = vpop.xlane.xlu0 %696 }
 0x348   :  { %v3221_v43 = vpop.eup %3220  ;;  %3230 = vrcp.f32 %v4254_v47 }
 0x349   :  { %3232 = vrcp.f32 %v4256_v48 }
 0x34b   :  { %v4258_v49 = vpop.xlane.xlu1 %698  ;;  %v717_v52 = vpop.xlane.xlu0 %716 }
 0x34c   :  { %v2765_v53 = vadd.f32 -1.0, %v717_v52  ;;  %3234 = vrcp.f32 %v4258_v49 }
 0x34e   :  { %v4260_v55 = vmul.f32 %v3205_v54, %v2765_v53  ;;  %v3223_v53 = vpop.eup %3222 }
 0x34f   :  { %v719_v56 = vpop.xlane.xlu1 %718  ;;  %v721_v57 = vpop.xlane.xlu0 %720 }
 0x350   :  { %v2766_v58 = vadd.f32 -1.0, %v719_v56  ;;  %v2767_v16 = vadd.f32 -1.0, %v721_v57  ;;  %vm796_vm1 = vcmp.gt.f32.partialorder %v3922_v14, %v4260_v55  ;;  %v3225_v47 = vpop.eup %3224 }
 0x351   :  { %v2781_v60 = vsel %vm796_vm1, 1.0, %v3604_v17 }
 0x352   :  { %844 = vadd.xlane.f32.xlu0 %v2781_v60  ;;  %v4268_v63 = vmul.f32 %v3207_v12, %v2766_v58  ;;  %v4270_v19 = vmul.f32 %v3209_v18, %v2767_v16  ;;  %v3227_v60 = vpop.eup %3226 }
 0x353   :  { %v723_v20 = vpop.xlane.xlu1 %722  ;;  %v725_v61 = vpop.xlane.xlu0 %724 }
 0x354   :  { %v2768_v25 = vadd.f32 -1.0, %v723_v20  ;;  %v2769_v2 = vadd.f32 -1.0, %v725_v61  ;;  %vm797_vm2 = vcmp.gt.f32.partialorder %v3932_v62, %v4268_v63  ;;  %vm798_vm3 = vcmp.gt.f32.partialorder %v3919_v13, %v4270_v19 }
 0x355   :  { %v2782_v7 = vsel %vm797_vm2, 1.0, %v3604_v17  ;;  %v2783_v40 = vsel %vm798_vm3, 1.0, %v3604_v17 }
 0x356   :  { %846 = vadd.xlane.f32.xlu1 %v2782_v7  ;;  %848 = vadd.xlane.f32.xlu0 %v2783_v40  ;;  %v4284_v6 = vmul.f32 %v3211_v1, %v2768_v25  ;;  %v4286_v50 = vmul.f32 %v3213_v30, %v2769_v2  ;;  %v3229_v1 = vpop.eup %3228 }
 0x357   :  { %v727_v51 = vpop.xlane.xlu1 %726  ;;  %v729_v59 = vpop.xlane.xlu0 %728 }
 0x358   :  { %v2770_v0 = vadd.f32 -1.0, %v727_v51  ;;  %v2771_v3 = vadd.f32 -1.0, %v729_v59  ;;  %vm799_vm4 = vcmp.gt.f32.partialorder %v3929_v10, %v4284_v6  ;;  %vm800_vm5 = vcmp.gt.f32.partialorder %v3946_v22, %v4286_v50  ;;  %v3231_v51 = vpop.eup %3230 }
 0x359   :  { %v2784_v32 = vsel %vm799_vm4, 1.0, %v3604_v17  ;;  %v2785_v26 = vsel %vm800_vm5, 1.0, %v3604_v17  ;;  %v879_v55 = vsel %vm799_vm4, %v3929_v10, 0.0 }
 0x35a   :  { %850 = vadd.xlane.f32.xlu1 %v2784_v32  ;;  %852 = vadd.xlane.f32.xlu0 %v2785_v26  ;;  %v4300_v33 = vmul.f32 %v3215_v15, %v2770_v0  ;;  %v4302_v27 = vmul.f32 %v3217_v9, %v2771_v3  ;;  %v3233_v0 = vpop.eup %3232 }
 0x35b   :  { %v731_v34 = vpop.xlane.xlu1 %730  ;;  %v733_v35 = vpop.xlane.xlu0 %732 }
 0x35c   :  { %v2772_v4 = vadd.f32 -1.0, %v731_v34  ;;  %v2773_v39 = vadd.f32 -1.0, %v733_v35  ;;  %vm801_vm6 = vcmp.gt.f32.partialorder %v3943_v21, %v4300_v33  ;;  %vm802_vm7 = vcmp.gt.f32.partialorder %v3960_v24, %v4302_v27 }
 0x35d   :  { %v2786_v44 = vsel %vm801_vm6, 1.0, %v3604_v17  ;;  %v2787_v45 = vsel %vm802_vm7, 1.0, %v3604_v17  ;;  %v881_v63 = vsel %vm801_vm6, %v3943_v21, 0.0  ;;  %v882_v19 = vsel %vm802_vm7, %v3960_v24, 0.0 }
 0x35e   :  { %854 = vadd.xlane.f32.xlu1 %v2786_v44  ;;  %856 = vadd.xlane.f32.xlu0 %v2787_v45  ;;  %v4317_v8 = vmul.f32 %v3219_v38, %v2772_v4  ;;  %v4319_v28 = vmul.f32 %v3221_v43, %v2773_v39  ;;  %v3235_v38 = vpop.eup %3234  ;;  %v876_v45 = vsel %vm796_vm1, %v3922_v14, 0.0 }
 0x35f   :  { %v735_v46 = vpop.xlane.xlu1 %734  ;;  %v737_v52 = vpop.xlane.xlu0 %736 }
 0x360   :  { %v2774_v54 = vadd.f32 -1.0, %v735_v46  ;;  %v2775_v56 = vadd.f32 -1.0, %v737_v52  ;;  %vm803_vm8 = vcmp.gt.f32.partialorder %v3957_v23, %v4317_v8  ;;  %vm804_vm9 = vcmp.gt.f32.partialorder %v3974_v5, %v4319_v28 }
 0x361   :  { %v2788_v57 = vsel %vm803_vm8, 1.0, %v3604_v17  ;;  %v2789_v48 = vsel %vm804_vm9, 1.0, %v3604_v17  ;;  %v877_v46 = vsel %vm797_vm2, %v3932_v62, 0.0  ;;  %v878_v52 = vsel %vm798_vm3, %v3919_v13, 0.0 }
 0x362   :  { %858 = vadd.xlane.f32.xlu1 %v2788_v57  ;;  %860 = vadd.xlane.f32.xlu0 %v2789_v48  ;;  %v4334_v12 = vmul.f32 %v3223_v53, %v2774_v54  ;;  %v4336_v58 = vmul.f32 %v3225_v47, %v2775_v56  ;;  %v880_v53 = vsel %vm800_vm5, %v3946_v22, 0.0  ;;  %v883_v6 = vsel %vm803_vm8, %v3957_v23, 0.0 }
 0x363   :  { %v739_v16 = vpop.xlane.xlu1 %738  ;;  %v741_v18 = vpop.xlane.xlu0 %740  ;;  %v884_v50 = vsel %vm804_vm9, %v3974_v5, 0.0 }
 0x364   :  { %v2776_v20 = vadd.f32 -1.0, %v739_v16  ;;  %v2777_v61 = vadd.f32 -1.0, %v741_v18  ;;  %vm805_vm10 = vcmp.gt.f32.partialorder %v3971_v29, %v4334_v12  ;;  %vm806_vm11 = vcmp.gt.f32.partialorder %v3988_v31, %v4336_v58 }
 0x365   :  { %v2790_v25 = vsel %vm805_vm10, 1.0, %v3604_v17  ;;  %v2791_v49 = vsel %vm806_vm11, 1.0, %v3604_v17  ;;  %v885_v33 = vsel %vm805_vm10, %v3971_v29, 0.0  ;;  %v886_v27 = vsel %vm806_vm11, %v3988_v31, 0.0 }
 0x366   :  { %862 = vadd.xlane.f32.xlu1 %v2790_v25  ;;  %864 = vadd.xlane.f32.xlu0 %v2791_v49  ;;  %v787_v2 = vmul.f32 %v3227_v60, %v2776_v20  ;;  %v789_v30 = vmul.f32 %v3229_v1, %v2777_v61 }
 0x367   :  { %v743_v7 = vpop.xlane.xlu1 %742  ;;  %v745_v40 = vpop.xlane.xlu0 %744 }
 0x368   :  { %v2778_v59 = vadd.f32 -1.0, %v743_v7  ;;  %v2779_v15 = vadd.f32 -1.0, %v745_v40  ;;  %vm807_vm12 = vcmp.gt.f32.partialorder %v3985_v11, %v787_v2  ;;  %vm808_vm13 = vcmp.gt.f32.partialorder %v4002_v37, %v789_v30 }
 0x369   :  { %v2792_v3 = vsel %vm807_vm12, 1.0, %v3604_v17  ;;  %v2793_v9 = vsel %vm808_vm13, 1.0, %v3604_v17  ;;  %v887_v8 = vsel %vm807_vm12, %v3985_v11, 0.0  ;;  %v888_v28 = vsel %vm808_vm13, %v4002_v37, 0.0 }
 0x36a   :  { %866 = vadd.xlane.f32.xlu1 %v2792_v3  ;;  %868 = vadd.xlane.f32.xlu0 %v2793_v9  ;;  %v791_v32 = vmul.f32 %v3231_v51, %v2778_v59  ;;  %v793_v26 = vmul.f32 %v3233_v0, %v2779_v15 }
 0x36b   :  { %v747_v34 = vpop.xlane.xlu1 %746 }
 0x36c   :  { %v2780_v35 = vadd.f32 -1.0, %v747_v34  ;;  %vm809_vm14 = vcmp.gt.f32.partialorder %v3999_v36, %v791_v32  ;;  %vm810_vm15 = vcmp.gt.f32.partialorder %v4016_v42, %v793_v26 }
 0x36d   :  { %v2794_v4 = vsel %vm809_vm14, 1.0, %v3604_v17  ;;  %v2795_v39 = vsel %vm810_vm15, 1.0, %v3604_v17  ;;  %v889_v54 = vsel %vm809_vm14, %v3999_v36, 0.0  ;;  %v890_v56 = vsel %vm810_vm15, %v4016_v42, 0.0 }
 0x36e   :  { %870 = vadd.xlane.f32.xlu1 %v2794_v4  ;;  %872 = vadd.xlane.f32.xlu0 %v2795_v39  ;;  %v795_v43 = vmul.f32 %v3235_v38, %v2780_v35 }
 0x370   :  { %vm811_vm0 = vcmp.gt.f32.partialorder %v4013_v41, %v795_v43 }
 0x371   :  { %v2796_v44 = vsel %vm811_vm0, 1.0, %v3604_v17  ;;  %v891_v47 = vsel %vm811_vm0, %v4013_v41, 0.0 }
 0x372   :  { %874 = vadd.xlane.f32.xlu1 %v2796_v44  ;;  %892 = vadd.xlane.f32.xlu0 %v876_v45 }
 0x376   :  { %894 = vadd.xlane.f32.xlu1 %v877_v46  ;;  %896 = vadd.xlane.f32.xlu0 %v878_v52 }
 0x37a   :  { %898 = vadd.xlane.f32.xlu1 %v879_v55  ;;  %900 = vadd.xlane.f32.xlu0 %v880_v53 }
 0x37e   :  { %902 = vadd.xlane.f32.xlu1 %v881_v63  ;;  %904 = vadd.xlane.f32.xlu0 %v882_v19 }
 0x382   :  { %906 = vadd.xlane.f32.xlu1 %v883_v6  ;;  %908 = vadd.xlane.f32.xlu0 %v884_v50 }
 0x386   :  { %910 = vadd.xlane.f32.xlu1 %v885_v33  ;;  %912 = vadd.xlane.f32.xlu0 %v886_v27 }
 0x38a   :  { %914 = vadd.xlane.f32.xlu1 %v887_v8  ;;  %916 = vadd.xlane.f32.xlu0 %v888_v28 }
 0x38e   :  { %918 = vadd.xlane.f32.xlu1 %v889_v54  ;;  %920 = vadd.xlane.f32.xlu0 %v890_v56 }
 0x392   :  { %922 = vadd.xlane.f32.xlu1 %v891_v47 }
 0x3df   :  { %v845_v57 = vpop.xlane.xlu0 %844 }
 0x3e0   :  { %3236 = vrcp.f32 %v845_v57 }
 0x3e3   :  { %v847_v48 = vpop.xlane.xlu1 %846  ;;  %v849_v12 = vpop.xlane.xlu0 %848 }
 0x3e4   :  { %3238 = vrcp.f32 %v847_v48 }
 0x3e5   :  { %3240 = vrcp.f32 %v849_v12 }
 0x3e7   :  { %v851_v58 = vpop.xlane.xlu1 %850  ;;  %v853_v16 = vpop.xlane.xlu0 %852 }
 0x3e8   :  { %3242 = vrcp.f32 %v851_v58 }
 0x3e9   :  { %3244 = vrcp.f32 %v853_v16 }
 0x3ea   :  { %v3237_v15 = vpop.eup %3236 }
 0x3eb   :  { %v855_v18 = vpop.xlane.xlu1 %854  ;;  %v857_v60 = vpop.xlane.xlu0 %856 }
 0x3ec   :  { %3246 = vrcp.f32 %v855_v18 }
 0x3ed   :  { %3248 = vrcp.f32 %v857_v60 }
 0x3ee   :  { %v3239_v32 = vpop.eup %3238 }
 0x3ef   :  { %v859_v20 = vpop.xlane.xlu1 %858  ;;  %v861_v61 = vpop.xlane.xlu0 %860 }
 0x3f0   :  { %v3241_v35 = vpop.eup %3240  ;;  %3250 = vrcp.f32 %v859_v20 }
 0x3f1   :  { %3252 = vrcp.f32 %v861_v61 }
 0x3f2   :  { %v3243_v45 = vpop.eup %3242 }
 0x3f3   :  { %v863_v1 = vpop.xlane.xlu1 %862  ;;  %v865_v25 = vpop.xlane.xlu0 %864 }
 0x3f4   :  { %v3245_v55 = vpop.eup %3244  ;;  %3254 = vrcp.f32 %v863_v1 }
 0x3f5   :  { %3256 = vrcp.f32 %v865_v25 }
 0x3f6   :  { %v3247_v27 = vpop.eup %3246 }
 0x3f7   :  { %v867_v49 = vpop.xlane.xlu1 %866  ;;  %v869_v2 = vpop.xlane.xlu0 %868 }
 0x3f8   :  { %v3249_v54 = vpop.eup %3248  ;;  %3258 = vrcp.f32 %v867_v49 }
 0x3f9   :  { %3260 = vrcp.f32 %v869_v2 }
 0x3fa   :  { %v3251_v16 = vpop.eup %3250 }
 0x3fb   :  { %v4430_v30 = vpop.xlane.xlu1 %870  ;;  %v4432_v7 = vpop.xlane.xlu0 %872 }
 0x3fc   :  { %v3253_v20 = vpop.eup %3252  ;;  %3262 = vrcp.f32 %v4430_v30 }
 0x3fd   :  { %3264 = vrcp.f32 %v4432_v7 }
 0x3ff   :  { %v4434_v40 = vpop.xlane.xlu1 %874  ;;  %v893_v51 = vpop.xlane.xlu0 %892 }
 0x400   :  { %v2797_v59 = vadd.f32 -1.0, %v893_v51  ;;  %3266 = vrcp.f32 %v4434_v40 }
 0x402   :  { %v4436_v0 = vmul.f32 %v3237_v15, %v2797_v59  ;;  %v3255_v59 = vpop.eup %3254 }
 0x403   :  { %v895_v3 = vpop.xlane.xlu1 %894  ;;  %v897_v9 = vpop.xlane.xlu0 %896 }
 0x404   :  { %v2798_v26 = vadd.f32 -1.0, %v895_v3  ;;  %v2799_v34 = vadd.f32 -1.0, %v897_v9  ;;  %vm972_vm1 = vcmp.gt.f32.partialorder %v3922_v14, %v4436_v0  ;;  %v3257_v30 = vpop.eup %3256 }
 0x405   :  { %v2813_v38 = vsel %vm972_vm1, 1.0, %v3604_v17 }
 0x406   :  { %v4444_v4 = vmul.f32 %v3239_v32, %v2798_v26  ;;  %v4446_v39 = vmul.f32 %v3241_v35, %v2799_v34  ;;  %1020 = vadd.xlane.f32.xlu0 %v2813_v38  ;;  %v3259_v38 = vpop.eup %3258 }
 0x407   :  { %v899_v43 = vpop.xlane.xlu1 %898  ;;  %v901_v44 = vpop.xlane.xlu0 %900 }
 0x408   :  { %v2800_v46 = vadd.f32 -1.0, %v899_v43  ;;  %v2801_v52 = vadd.f32 -1.0, %v901_v44  ;;  %vm973_vm2 = vcmp.gt.f32.partialorder %v3932_v62, %v4444_v4  ;;  %vm974_vm3 = vcmp.gt.f32.partialorder %v3919_v13, %v4446_v39 }
 0x409   :  { %v2814_v53 = vsel %vm973_vm2, 1.0, %v3604_v17  ;;  %v2815_v63 = vsel %vm974_vm3, 1.0, %v3604_v17 }
 0x40a   :  { %v4460_v19 = vmul.f32 %v3243_v45, %v2800_v46  ;;  %v4462_v6 = vmul.f32 %v3245_v55, %v2801_v52  ;;  %1022 = vadd.xlane.f32.xlu1 %v2814_v53  ;;  %1024 = vadd.xlane.f32.xlu0 %v2815_v63  ;;  %v3261_v45 = vpop.eup %3260 }
 0x40b   :  { %v903_v50 = vpop.xlane.xlu1 %902  ;;  %v905_v33 = vpop.xlane.xlu0 %904 }
 0x40c   :  { %v2802_v8 = vadd.f32 -1.0, %v903_v50  ;;  %v2803_v28 = vadd.f32 -1.0, %v905_v33  ;;  %vm975_vm4 = vcmp.gt.f32.partialorder %v3929_v10, %v4460_v19  ;;  %vm976_vm5 = vcmp.gt.f32.partialorder %v3946_v22, %v4462_v6  ;;  %v3263_v50 = vpop.eup %3262 }
 0x40d   :  { %v2816_v56 = vsel %vm975_vm4, 1.0, %v3604_v17  ;;  %v2817_v47 = vsel %vm976_vm5, 1.0, %v3604_v17  ;;  %v1055_v0 = vsel %vm975_vm4, %v3929_v10, 0.0 }
 0x40e   :  { %v4476_v57 = vmul.f32 %v3247_v27, %v2802_v8  ;;  %v4478_v48 = vmul.f32 %v3249_v54, %v2803_v28  ;;  %1026 = vadd.xlane.f32.xlu1 %v2816_v56  ;;  %1028 = vadd.xlane.f32.xlu0 %v2817_v47  ;;  %v3265_v8 = vpop.eup %3264 }
 0x40f   :  { %v907_v12 = vpop.xlane.xlu1 %906  ;;  %v909_v58 = vpop.xlane.xlu0 %908 }
 0x410   :  { %v2804_v18 = vadd.f32 -1.0, %v907_v12  ;;  %v2805_v60 = vadd.f32 -1.0, %v909_v58  ;;  %vm977_vm6 = vcmp.gt.f32.partialorder %v3943_v21, %v4476_v57  ;;  %vm978_vm7 = vcmp.gt.f32.partialorder %v3960_v24, %v4478_v48 }
 0x411   :  { %v2818_v61 = vsel %vm977_vm6, 1.0, %v3604_v17  ;;  %v2819_v1 = vsel %vm978_vm7, 1.0, %v3604_v17  ;;  %v1057_v4 = vsel %vm977_vm6, %v3943_v21, 0.0  ;;  %v1058_v39 = vsel %vm978_vm7, %v3960_v24, 0.0 }
 0x412   :  { %v4493_v25 = vmul.f32 %v3251_v16, %v2804_v18  ;;  %v4495_v49 = vmul.f32 %v3253_v20, %v2805_v60  ;;  %1030 = vadd.xlane.f32.xlu1 %v2818_v61  ;;  %1032 = vadd.xlane.f32.xlu0 %v2819_v1  ;;  %v3267_v16 = vpop.eup %3266  ;;  %v1052_v1 = vsel %vm972_vm1, %v3922_v14, 0.0 }
 0x413   :  { %v911_v2 = vpop.xlane.xlu1 %910  ;;  %v913_v51 = vpop.xlane.xlu0 %912 }
 0x414   :  { %v2806_v15 = vadd.f32 -1.0, %v911_v2  ;;  %v2807_v3 = vadd.f32 -1.0, %v913_v51  ;;  %vm979_vm8 = vcmp.gt.f32.partialorder %v3957_v23, %v4493_v25  ;;  %vm980_vm9 = vcmp.gt.f32.partialorder %v3974_v5, %v4495_v49 }
 0x415   :  { %v2820_v9 = vsel %vm979_vm8, 1.0, %v3604_v17  ;;  %v2821_v7 = vsel %vm980_vm9, 1.0, %v3604_v17  ;;  %v1053_v2 = vsel %vm973_vm2, %v3932_v62, 0.0  ;;  %v1054_v51 = vsel %vm974_vm3, %v3919_v13, 0.0 }
 0x416   :  { %v4510_v32 = vmul.f32 %v3255_v59, %v2806_v15  ;;  %v4512_v26 = vmul.f32 %v3257_v30, %v2807_v3  ;;  %1034 = vadd.xlane.f32.xlu1 %v2820_v9  ;;  %1036 = vadd.xlane.f32.xlu0 %v2821_v7  ;;  %v1056_v59 = vsel %vm976_vm5, %v3946_v22, 0.0  ;;  %v1059_v19 = vsel %vm979_vm8, %v3957_v23, 0.0 }
 0x417   :  { %v915_v34 = vpop.xlane.xlu1 %914  ;;  %v917_v35 = vpop.xlane.xlu0 %916  ;;  %v1060_v6 = vsel %vm980_vm9, %v3974_v5, 0.0 }
 0x418   :  { %v2808_v43 = vadd.f32 -1.0, %v915_v34  ;;  %v2809_v44 = vadd.f32 -1.0, %v917_v35  ;;  %vm981_vm10 = vcmp.gt.f32.partialorder %v3971_v29, %v4510_v32  ;;  %vm982_vm11 = vcmp.gt.f32.partialorder %v3988_v31, %v4512_v26 }
 0x419   :  { %v2822_v46 = vsel %vm981_vm10, 1.0, %v3604_v17  ;;  %v2823_v40 = vsel %vm982_vm11, 1.0, %v3604_v17  ;;  %v1061_v57 = vsel %vm981_vm10, %v3971_v29, 0.0  ;;  %v1062_v48 = vsel %vm982_vm11, %v3988_v31, 0.0 }
 0x41a   :  { %v963_v52 = vmul.f32 %v3259_v38, %v2808_v43  ;;  %v965_v55 = vmul.f32 %v3261_v45, %v2809_v44  ;;  %1038 = vadd.xlane.f32.xlu1 %v2822_v46  ;;  %1040 = vadd.xlane.f32.xlu0 %v2823_v40 }
 0x41b   :  { %v919_v53 = vpop.xlane.xlu1 %918  ;;  %v921_v63 = vpop.xlane.xlu0 %920 }
 0x41c   :  { %v2810_v33 = vadd.f32 -1.0, %v919_v53  ;;  %v2811_v27 = vadd.f32 -1.0, %v921_v63  ;;  %vm983_vm12 = vcmp.gt.f32.partialorder %v3985_v11, %v963_v52  ;;  %vm984_vm13 = vcmp.gt.f32.partialorder %v4002_v37, %v965_v55 }
 0x41d   :  { %v2824_v28 = vsel %vm983_vm12, 1.0, %v3604_v17  ;;  %v2825_v54 = vsel %vm984_vm13, 1.0, %v3604_v17  ;;  %v1063_v25 = vsel %vm983_vm12, %v3985_v11, 0.0  ;;  %v1064_v49 = vsel %vm984_vm13, %v4002_v37, 0.0 }
 0x41e   :  { %v967_v56 = vmul.f32 %v3263_v50, %v2810_v33  ;;  %v969_v47 = vmul.f32 %v3265_v8, %v2811_v27  ;;  %1042 = vadd.xlane.f32.xlu1 %v2824_v28  ;;  %1044 = vadd.xlane.f32.xlu0 %v2825_v54 }
 0x41f   :  { %v923_v12 = vpop.xlane.xlu1 %922 }
 0x420   :  { %v2812_v58 = vadd.f32 -1.0, %v923_v12  ;;  %vm985_vm14 = vcmp.gt.f32.partialorder %v3999_v36, %v967_v56  ;;  %vm986_vm15 = vcmp.gt.f32.partialorder %v4016_v42, %v969_v47 }
 0x421   :  { %v2826_v18 = vsel %vm985_vm14, 1.0, %v3604_v17  ;;  %v2827_v60 = vsel %vm986_vm15, 1.0, %v3604_v17  ;;  %v1065_v15 = vsel %vm985_vm14, %v3999_v36, 0.0  ;;  %v1066_v3 = vsel %vm986_vm15, %v4016_v42, 0.0 }
 0x422   :  { %v971_v20 = vmul.f32 %v3267_v16, %v2812_v58  ;;  %1046 = vadd.xlane.f32.xlu1 %v2826_v18  ;;  %1048 = vadd.xlane.f32.xlu0 %v2827_v60 }
 0x424   :  { %vm987_vm0 = vcmp.gt.f32.partialorder %v4013_v41, %v971_v20 }
 0x425   :  { %v2828_v61 = vsel %vm987_vm0, 1.0, %v3604_v17  ;;  %v1067_v30 = vsel %vm987_vm0, %v4013_v41, 0.0 }
 0x426   :  { %1050 = vadd.xlane.f32.xlu1 %v2828_v61  ;;  %1068 = vadd.xlane.f32.xlu0 %v1052_v1 }
 0x42a   :  { %1070 = vadd.xlane.f32.xlu1 %v1053_v2  ;;  %1072 = vadd.xlane.f32.xlu0 %v1054_v51 }
 0x42e   :  { %1074 = vadd.xlane.f32.xlu1 %v1055_v0  ;;  %1076 = vadd.xlane.f32.xlu0 %v1056_v59 }
 0x432   :  { %1078 = vadd.xlane.f32.xlu1 %v1057_v4  ;;  %1080 = vadd.xlane.f32.xlu0 %v1058_v39 }
 0x436   :  { %1082 = vadd.xlane.f32.xlu1 %v1059_v19  ;;  %1084 = vadd.xlane.f32.xlu0 %v1060_v6 }
 0x43a   :  { %1086 = vadd.xlane.f32.xlu1 %v1061_v57  ;;  %1088 = vadd.xlane.f32.xlu0 %v1062_v48 }
 0x43e   :  { %1090 = vadd.xlane.f32.xlu1 %v1063_v25  ;;  %1092 = vadd.xlane.f32.xlu0 %v1064_v49 }
 0x442   :  { %1094 = vadd.xlane.f32.xlu1 %v1065_v15  ;;  %1096 = vadd.xlane.f32.xlu0 %v1066_v3 }
 0x446   :  { %1098 = vadd.xlane.f32.xlu1 %v1067_v30 }
 0x493   :  { %v1021_v9 = vpop.xlane.xlu0 %1020 }
 0x494   :  { %3268 = vrcp.f32 %v1021_v9 }
 0x497   :  { %v1023_v7 = vpop.xlane.xlu1 %1022  ;;  %v1025_v32 = vpop.xlane.xlu0 %1024 }
 0x498   :  { %3270 = vrcp.f32 %v1023_v7 }
 0x499   :  { %3272 = vrcp.f32 %v1025_v32 }
 0x49b   :  { %v1027_v26 = vpop.xlane.xlu1 %1026  ;;  %v1029_v34 = vpop.xlane.xlu0 %1028 }
 0x49c   :  { %3274 = vrcp.f32 %v1027_v26 }
 0x49d   :  { %3276 = vrcp.f32 %v1029_v34 }
 0x49e   :  { %v3269_v27 = vpop.eup %3268 }
 0x49f   :  { %v1031_v35 = vpop.xlane.xlu1 %1030  ;;  %v1033_v38 = vpop.xlane.xlu0 %1032 }
 0x4a0   :  { %3278 = vrcp.f32 %v1031_v35 }
 0x4a1   :  { %3280 = vrcp.f32 %v1033_v38 }
 0x4a2   :  { %v3271_v56 = vpop.eup %3270 }
 0x4a3   :  { %v1035_v43 = vpop.xlane.xlu1 %1034  ;;  %v1037_v44 = vpop.xlane.xlu0 %1036 }
 0x4a4   :  { %v3273_v58 = vpop.eup %3272  ;;  %3282 = vrcp.f32 %v1035_v43 }
 0x4a5   :  { %3284 = vrcp.f32 %v1037_v44 }
 0x4a6   :  { %v3275_v1 = vpop.eup %3274 }
 0x4a7   :  { %v1039_v45 = vpop.xlane.xlu1 %1038  ;;  %v1041_v46 = vpop.xlane.xlu0 %1040 }
 0x4a8   :  { %v3277_v0 = vpop.eup %3276  ;;  %3286 = vrcp.f32 %v1039_v45 }
 0x4a9   :  { %3288 = vrcp.f32 %v1041_v46 }
 0x4aa   :  { %v3279_v48 = vpop.eup %3278 }
 0x4ab   :  { %v1043_v40 = vpop.xlane.xlu1 %1042  ;;  %v1045_v52 = vpop.xlane.xlu0 %1044 }
 0x4ac   :  { %v3281_v15 = vpop.eup %3280  ;;  %3290 = vrcp.f32 %v1043_v40 }
 0x4ad   :  { %3292 = vrcp.f32 %v1045_v52 }
 0x4ae   :  { %v3283_v34 = vpop.eup %3282 }
 0x4af   :  { %v4606_v55 = vpop.xlane.xlu1 %1046  ;;  %v4608_v53 = vpop.xlane.xlu0 %1048 }
 0x4b0   :  { %v3285_v43 = vpop.eup %3284  ;;  %3294 = vrcp.f32 %v4606_v55 }
 0x4b1   :  { %3296 = vrcp.f32 %v4608_v53 }
 0x4b3   :  { %v4610_v63 = vpop.xlane.xlu1 %1050  ;;  %v1069_v50 = vpop.xlane.xlu0 %1068 }
 0x4b4   :  { %v2829_v33 = vadd.f32 -1.0, %v1069_v50  ;;  %3298 = vrcp.f32 %v4610_v63 }
 0x4b6   :  { %v4612_v8 = vmul.f32 %v3269_v27, %v2829_v33  ;;  %v3287_v33 = vpop.eup %3286 }
 0x4b7   :  { %v1071_v28 = vpop.xlane.xlu1 %1070  ;;  %v1073_v54 = vpop.xlane.xlu0 %1072 }
 0x4b8   :  { %v2830_v47 = vadd.f32 -1.0, %v1071_v28  ;;  %v2831_v12 = vadd.f32 -1.0, %v1073_v54  ;;  %vm1148_vm1 = vcmp.gt.f32.partialorder %v3922_v14, %v4612_v8  ;;  %v3289_v55 = vpop.eup %3288 }
 0x4b9   :  { %v2845_v16 = vsel %vm1148_vm1, 1.0, %v3604_v17 }
 0x4ba   :  { %v4620_v18 = vmul.f32 %v3271_v56, %v2830_v47  ;;  %v4622_v60 = vmul.f32 %v3273_v58, %v2831_v12  ;;  %1196 = vadd.xlane.f32.xlu0 %v2845_v16  ;;  %v3291_v16 = vpop.eup %3290 }
 0x4bb   :  { %v1075_v20 = vpop.xlane.xlu1 %1074  ;;  %v1077_v61 = vpop.xlane.xlu0 %1076 }
 0x4bc   :  { %v2832_v2 = vadd.f32 -1.0, %v1075_v20  ;;  %v2833_v51 = vadd.f32 -1.0, %v1077_v61  ;;  %vm1149_vm2 = vcmp.gt.f32.partialorder %v3932_v62, %v4620_v18  ;;  %vm1150_vm3 = vcmp.gt.f32.partialorder %v3919_v13, %v4622_v60 }
 0x4bd   :  { %v2846_v59 = vsel %vm1149_vm2, 1.0, %v3604_v17  ;;  %v2847_v4 = vsel %vm1150_vm3, 1.0, %v3604_v17 }
 0x4be   :  { %v4636_v39 = vmul.f32 %v3275_v1, %v2832_v2  ;;  %v4638_v19 = vmul.f32 %v3277_v0, %v2833_v51  ;;  %1198 = vadd.xlane.f32.xlu1 %v2846_v59  ;;  %1200 = vadd.xlane.f32.xlu0 %v2847_v4  ;;  %v3293_v1 = vpop.eup %3292 }
 0x4bf   :  { %v1079_v6 = vpop.xlane.xlu1 %1078  ;;  %v1081_v57 = vpop.xlane.xlu0 %1080 }
 0x4c0   :  { %v2834_v25 = vadd.f32 -1.0, %v1079_v6  ;;  %v2835_v49 = vadd.f32 -1.0, %v1081_v57  ;;  %vm1151_vm4 = vcmp.gt.f32.partialorder %v3929_v10, %v4636_v39  ;;  %vm1152_vm5 = vcmp.gt.f32.partialorder %v3946_v22, %v4638_v19  ;;  %v3295_v6 = vpop.eup %3294 }
 0x4c1   :  { %v2848_v3 = vsel %vm1151_vm4, 1.0, %v3604_v17  ;;  %v2849_v30 = vsel %vm1152_vm5, 1.0, %v3604_v17  ;;  %v1231_v8 = vsel %vm1151_vm4, %v3929_v10, 0.0 }
 0x4c2   :  { %v4652_v9 = vmul.f32 %v3279_v48, %v2834_v25  ;;  %v4654_v7 = vmul.f32 %v3281_v15, %v2835_v49  ;;  %1202 = vadd.xlane.f32.xlu1 %v2848_v3  ;;  %1204 = vadd.xlane.f32.xlu0 %v2849_v30  ;;  %v3297_v25 = vpop.eup %3296 }
 0x4c3   :  { %v1083_v32 = vpop.xlane.xlu1 %1082  ;;  %v1085_v26 = vpop.xlane.xlu0 %1084 }
 0x4c4   :  { %v2836_v35 = vadd.f32 -1.0, %v1083_v32  ;;  %v2837_v38 = vadd.f32 -1.0, %v1085_v26  ;;  %vm1153_vm6 = vcmp.gt.f32.partialorder %v3943_v21, %v4652_v9  ;;  %vm1154_vm7 = vcmp.gt.f32.partialorder %v3960_v24, %v4654_v7 }
 0x4c5   :  { %v2850_v44 = vsel %vm1153_vm6, 1.0, %v3604_v17  ;;  %v2851_v45 = vsel %vm1154_vm7, 1.0, %v3604_v17  ;;  %v1233_v18 = vsel %vm1153_vm6, %v3943_v21, 0.0  ;;  %v1234_v60 = vsel %vm1154_vm7, %v3960_v24, 0.0 }
 0x4c6   :  { %v4669_v46 = vmul.f32 %v3283_v34, %v2836_v35  ;;  %v4671_v40 = vmul.f32 %v3285_v43, %v2837_v38  ;;  %1206 = vadd.xlane.f32.xlu1 %v2850_v44  ;;  %1208 = vadd.xlane.f32.xlu0 %v2851_v45  ;;  %v3299_v34 = vpop.eup %3298  ;;  %v1228_v45 = vsel %vm1148_vm1, %v3922_v14, 0.0 }
 0x4c7   :  { %v1087_v52 = vpop.xlane.xlu1 %1086  ;;  %v1089_v50 = vpop.xlane.xlu0 %1088 }
 0x4c8   :  { %v2838_v27 = vadd.f32 -1.0, %v1087_v52  ;;  %v2839_v28 = vadd.f32 -1.0, %v1089_v50  ;;  %vm1155_vm8 = vcmp.gt.f32.partialorder %v3957_v23, %v4669_v46  ;;  %vm1156_vm9 = vcmp.gt.f32.partialorder %v3974_v5, %v4671_v40 }
 0x4c9   :  { %v2852_v54 = vsel %vm1155_vm8, 1.0, %v3604_v17  ;;  %v2853_v53 = vsel %vm1156_vm9, 1.0, %v3604_v17  ;;  %v1229_v52 = vsel %vm1149_vm2, %v3932_v62, 0.0  ;;  %v1230_v50 = vsel %vm1150_vm3, %v3919_v13, 0.0 }
 0x4ca   :  { %v4686_v56 = vmul.f32 %v3287_v33, %v2838_v27  ;;  %v4688_v47 = vmul.f32 %v3289_v55, %v2839_v28  ;;  %1210 = vadd.xlane.f32.xlu1 %v2852_v54  ;;  %1212 = vadd.xlane.f32.xlu0 %v2853_v53  ;;  %v1232_v33 = vsel %vm1152_vm5, %v3946_v22, 0.0  ;;  %v1235_v39 = vsel %vm1155_vm8, %v3957_v23, 0.0 }
 0x4cb   :  { %v1091_v12 = vpop.xlane.xlu1 %1090  ;;  %v1093_v58 = vpop.xlane.xlu0 %1092  ;;  %v1236_v19 = vsel %vm1156_vm9, %v3974_v5, 0.0 }
 0x4cc   :  { %v2840_v20 = vadd.f32 -1.0, %v1091_v12  ;;  %v2841_v61 = vadd.f32 -1.0, %v1093_v58  ;;  %vm1157_vm10 = vcmp.gt.f32.partialorder %v3971_v29, %v4686_v56  ;;  %vm1158_vm11 = vcmp.gt.f32.partialorder %v3988_v31, %v4688_v47 }
 0x4cd   :  { %v2854_v2 = vsel %vm1157_vm10, 1.0, %v3604_v17  ;;  %v2855_v63 = vsel %vm1158_vm11, 1.0, %v3604_v17  ;;  %v1237_v9 = vsel %vm1157_vm10, %v3971_v29, 0.0  ;;  %v1238_v7 = vsel %vm1158_vm11, %v3988_v31, 0.0 }
 0x4ce   :  { %v1139_v51 = vmul.f32 %v3291_v16, %v2840_v20  ;;  %v1141_v0 = vmul.f32 %v3293_v1, %v2841_v61  ;;  %1214 = vadd.xlane.f32.xlu1 %v2854_v2  ;;  %1216 = vadd.xlane.f32.xlu0 %v2855_v63 }
 0x4cf   :  { %v1095_v59 = vpop.xlane.xlu1 %1094  ;;  %v1097_v4 = vpop.xlane.xlu0 %1096 }
 0x4d0   :  { %v2842_v57 = vadd.f32 -1.0, %v1095_v59  ;;  %v2843_v48 = vadd.f32 -1.0, %v1097_v4  ;;  %vm1159_vm12 = vcmp.gt.f32.partialorder %v3985_v11, %v1139_v51  ;;  %vm1160_vm13 = vcmp.gt.f32.partialorder %v4002_v37, %v1141_v0 }
 0x4d1   :  { %v2856_v49 = vsel %vm1159_vm12, 1.0, %v3604_v17  ;;  %v2857_v15 = vsel %vm1160_vm13, 1.0, %v3604_v17  ;;  %v1239_v46 = vsel %vm1159_vm12, %v3985_v11, 0.0  ;;  %v1240_v40 = vsel %vm1160_vm13, %v4002_v37, 0.0 }
 0x4d2   :  { %v1143_v3 = vmul.f32 %v3295_v6, %v2842_v57  ;;  %v1145_v30 = vmul.f32 %v3297_v25, %v2843_v48  ;;  %1218 = vadd.xlane.f32.xlu1 %v2856_v49  ;;  %1220 = vadd.xlane.f32.xlu0 %v2857_v15 }
 0x4d3   :  { %v1099_v32 = vpop.xlane.xlu1 %1098 }
 0x4d4   :  { %v2844_v26 = vadd.f32 -1.0, %v1099_v32  ;;  %vm1161_vm14 = vcmp.gt.f32.partialorder %v3999_v36, %v1143_v3  ;;  %vm1162_vm15 = vcmp.gt.f32.partialorder %v4016_v42, %v1145_v30 }
 0x4d5   :  { %v2858_v35 = vsel %vm1161_vm14, 1.0, %v3604_v17  ;;  %v2859_v38 = vsel %vm1162_vm15, 1.0, %v3604_v17  ;;  %v1241_v27 = vsel %vm1161_vm14, %v3999_v36, 0.0  ;;  %v1242_v28 = vsel %vm1162_vm15, %v4016_v42, 0.0 }
 0x4d6   :  { %v1147_v43 = vmul.f32 %v3299_v34, %v2844_v26  ;;  %1222 = vadd.xlane.f32.xlu1 %v2858_v35  ;;  %1224 = vadd.xlane.f32.xlu0 %v2859_v38 }
 0x4d8   :  { %vm1163_vm0 = vcmp.gt.f32.partialorder %v4013_v41, %v1147_v43 }
 0x4d9   :  { %v2860_v44 = vsel %vm1163_vm0, 1.0, %v3604_v17  ;;  %v1243_v55 = vsel %vm1163_vm0, %v4013_v41, 0.0 }
 0x4da   :  { %1226 = vadd.xlane.f32.xlu1 %v2860_v44  ;;  %1244 = vadd.xlane.f32.xlu0 %v1228_v45 }
 0x4de   :  { %1246 = vadd.xlane.f32.xlu1 %v1229_v52  ;;  %1248 = vadd.xlane.f32.xlu0 %v1230_v50 }
 0x4e2   :  { %1250 = vadd.xlane.f32.xlu1 %v1231_v8  ;;  %1252 = vadd.xlane.f32.xlu0 %v1232_v33 }
 0x4e6   :  { %1254 = vadd.xlane.f32.xlu1 %v1233_v18  ;;  %1256 = vadd.xlane.f32.xlu0 %v1234_v60 }
 0x4ea   :  { %1258 = vadd.xlane.f32.xlu1 %v1235_v39  ;;  %1260 = vadd.xlane.f32.xlu0 %v1236_v19 }
 0x4ee   :  { %1262 = vadd.xlane.f32.xlu1 %v1237_v9  ;;  %1264 = vadd.xlane.f32.xlu0 %v1238_v7 }
 0x4f2   :  { %1266 = vadd.xlane.f32.xlu1 %v1239_v46  ;;  %1268 = vadd.xlane.f32.xlu0 %v1240_v40 }
 0x4f6   :  { %1270 = vadd.xlane.f32.xlu1 %v1241_v27  ;;  %1272 = vadd.xlane.f32.xlu0 %v1242_v28 }
 0x4fa   :  { %1274 = vadd.xlane.f32.xlu1 %v1243_v55 }
 0x547   :  { %v1197_v54 = vpop.xlane.xlu0 %1196 }
 0x548   :  { %3300 = vrcp.f32 %v1197_v54 }
 0x54b   :  { %v1199_v53 = vpop.xlane.xlu1 %1198  ;;  %v1201_v56 = vpop.xlane.xlu0 %1200 }
 0x54c   :  { %3302 = vrcp.f32 %v1199_v53 }
 0x54d   :  { %3304 = vrcp.f32 %v1201_v56 }
 0x54f   :  { %v1203_v47 = vpop.xlane.xlu1 %1202  ;;  %v1205_v12 = vpop.xlane.xlu0 %1204 }
 0x550   :  { %3306 = vrcp.f32 %v1203_v47 }
 0x551   :  { %3308 = vrcp.f32 %v1205_v12 }
 0x552   :  { %v3301_v48 = vpop.eup %3300 }
 0x553   :  { %v1207_v58 = vpop.xlane.xlu1 %1206  ;;  %v1209_v16 = vpop.xlane.xlu0 %1208 }
 0x554   :  { %3310 = vrcp.f32 %v1207_v58 }
 0x555   :  { %3312 = vrcp.f32 %v1209_v16 }
 0x556   :  { %v3303_v3 = vpop.eup %3302 }
 0x557   :  { %v1211_v20 = vpop.xlane.xlu1 %1210  ;;  %v1213_v61 = vpop.xlane.xlu0 %1212 }
 0x558   :  { %v3305_v26 = vpop.eup %3304  ;;  %3314 = vrcp.f32 %v1211_v20 }
 0x559   :  { %3316 = vrcp.f32 %v1213_v61 }
 0x55a   :  { %v3307_v45 = vpop.eup %3306 }
 0x55b   :  { %v1215_v1 = vpop.xlane.xlu1 %1214  ;;  %v1217_v2 = vpop.xlane.xlu0 %1216 }
 0x55c   :  { %v3309_v8 = vpop.eup %3308  ;;  %3318 = vrcp.f32 %v1215_v1 }
 0x55d   :  { %3320 = vrcp.f32 %v1217_v2 }
 0x55e   :  { %v3311_v7 = vpop.eup %3310 }
 0x55f   :  { %v1219_v63 = vpop.xlane.xlu1 %1218  ;;  %v1221_v51 = vpop.xlane.xlu0 %1220 }
 0x560   :  { %v3313_v27 = vpop.eup %3312  ;;  %3322 = vrcp.f32 %v1219_v63 }
 0x561   :  { %3324 = vrcp.f32 %v1221_v51 }
 0x562   :  { %v3315_v12 = vpop.eup %3314 }
 0x563   :  { %v4782_v0 = vpop.xlane.xlu1 %1222  ;;  %v4784_v59 = vpop.xlane.xlu0 %1224 }
 0x564   :  { %v3317_v20 = vpop.eup %3316  ;;  %3326 = vrcp.f32 %v4782_v0 }
 0x565   :  { %3328 = vrcp.f32 %v4784_v59 }
 0x567   :  { %v4786_v4 = vpop.xlane.xlu1 %1226  ;;  %v1245_v6 = vpop.xlane.xlu0 %1244 }
 0x568   :  { %v2861_v57 = vadd.f32 -1.0, %v1245_v6  ;;  %3330 = vrcp.f32 %v4786_v4 }
 0x56a   :  { %v4788_v25 = vmul.f32 %v3301_v48, %v2861_v57  ;;  %v3319_v57 = vpop.eup %3318 }
 0x56b   :  { %v1247_v49 = vpop.xlane.xlu1 %1246  ;;  %v1249_v15 = vpop.xlane.xlu0 %1248 }
 0x56c   :  { %v2862_v30 = vadd.f32 -1.0, %v1247_v49  ;;  %v2863_v32 = vadd.f32 -1.0, %v1249_v15  ;;  %vm1324_vm1 = vcmp.gt.f32.partialorder %v3922_v14, %v4788_v25  ;;  %v3321_v0 = vpop.eup %3320 }
 0x56d   :  { %v2877_v34 = vsel %vm1324_vm1, 1.0, %v3604_v17 }
 0x56e   :  { %v4796_v35 = vmul.f32 %v3303_v3, %v2862_v30  ;;  %v4798_v38 = vmul.f32 %v3305_v26, %v2863_v32  ;;  %1372 = vadd.xlane.f32.xlu0 %v2877_v34  ;;  %v3323_v34 = vpop.eup %3322 }
 0x56f   :  { %v1251_v43 = vpop.xlane.xlu1 %1250  ;;  %v1253_v44 = vpop.xlane.xlu0 %1252 }
 0x570   :  { %v2864_v52 = vadd.f32 -1.0, %v1251_v43  ;;  %v2865_v50 = vadd.f32 -1.0, %v1253_v44  ;;  %vm1325_vm2 = vcmp.gt.f32.partialorder %v3932_v62, %v4796_v35  ;;  %vm1326_vm3 = vcmp.gt.f32.partialorder %v3919_v13, %v4798_v38 }
 0x571   :  { %v2878_v33 = vsel %vm1325_vm2, 1.0, %v3604_v17  ;;  %v2879_v18 = vsel %vm1326_vm3, 1.0, %v3604_v17 }
 0x572   :  { %v4812_v60 = vmul.f32 %v3307_v45, %v2864_v52  ;;  %v4814_v39 = vmul.f32 %v3309_v8, %v2865_v50  ;;  %1374 = vadd.xlane.f32.xlu1 %v2878_v33  ;;  %1376 = vadd.xlane.f32.xlu0 %v2879_v18  ;;  %v3325_v45 = vpop.eup %3324 }
 0x573   :  { %v1255_v19 = vpop.xlane.xlu1 %1254  ;;  %v1257_v9 = vpop.xlane.xlu0 %1256 }
 0x574   :  { %v2866_v46 = vadd.f32 -1.0, %v1255_v19  ;;  %v2867_v40 = vadd.f32 -1.0, %v1257_v9  ;;  %vm1327_vm4 = vcmp.gt.f32.partialorder %v3929_v10, %v4812_v60  ;;  %vm1328_vm5 = vcmp.gt.f32.partialorder %v3946_v22, %v4814_v39  ;;  %v3327_v19 = vpop.eup %3326 }
 0x575   :  { %v2880_v28 = vsel %vm1327_vm4, 1.0, %v3604_v17  ;;  %v2881_v55 = vsel %vm1328_vm5, 1.0, %v3604_v17  ;;  %v1407_v25 = vsel %vm1327_vm4, %v3929_v10, 0.0 }
 0x576   :  { %v4828_v54 = vmul.f32 %v3311_v7, %v2866_v46  ;;  %v4830_v53 = vmul.f32 %v3313_v27, %v2867_v40  ;;  %1378 = vadd.xlane.f32.xlu1 %v2880_v28  ;;  %1380 = vadd.xlane.f32.xlu0 %v2881_v55  ;;  %v3329_v46 = vpop.eup %3328 }
 0x577   :  { %v1259_v56 = vpop.xlane.xlu1 %1258  ;;  %v1261_v47 = vpop.xlane.xlu0 %1260 }
 0x578   :  { %v2868_v58 = vadd.f32 -1.0, %v1259_v56  ;;  %v2869_v16 = vadd.f32 -1.0, %v1261_v47  ;;  %vm1329_vm6 = vcmp.gt.f32.partialorder %v3943_v21, %v4828_v54  ;;  %vm1330_vm7 = vcmp.gt.f32.partialorder %v3960_v24, %v4830_v53 }
 0x579   :  { %v2882_v61 = vsel %vm1329_vm6, 1.0, %v3604_v17  ;;  %v2883_v1 = vsel %vm1330_vm7, 1.0, %v3604_v17  ;;  %v1409_v35 = vsel %vm1329_vm6, %v3943_v21, 0.0  ;;  %v1410_v38 = vsel %vm1330_vm7, %v3960_v24, 0.0 }
 0x57a   :  { %v4845_v2 = vmul.f32 %v3315_v12, %v2868_v58  ;;  %v4847_v63 = vmul.f32 %v3317_v20, %v2869_v16  ;;  %1382 = vadd.xlane.f32.xlu1 %v2882_v61  ;;  %1384 = vadd.xlane.f32.xlu0 %v2883_v1  ;;  %v3331_v12 = vpop.eup %3330  ;;  %v1404_v1 = vsel %vm1324_vm1, %v3922_v14, 0.0 }
 0x57b   :  { %v1263_v51 = vpop.xlane.xlu1 %1262  ;;  %v1265_v6 = vpop.xlane.xlu0 %1264 }
 0x57c   :  { %v2870_v48 = vadd.f32 -1.0, %v1263_v51  ;;  %v2871_v49 = vadd.f32 -1.0, %v1265_v6  ;;  %vm1331_vm8 = vcmp.gt.f32.partialorder %v3957_v23, %v4845_v2  ;;  %vm1332_vm9 = vcmp.gt.f32.partialorder %v3974_v5, %v4847_v63 }
 0x57d   :  { %v2884_v15 = vsel %vm1331_vm8, 1.0, %v3604_v17  ;;  %v2885_v59 = vsel %vm1332_vm9, 1.0, %v3604_v17  ;;  %v1405_v51 = vsel %vm1325_vm2, %v3932_v62, 0.0  ;;  %v1406_v6 = vsel %vm1326_vm3, %v3919_v13, 0.0 }
 0x57e   :  { %v4862_v3 = vmul.f32 %v3319_v57, %v2870_v48  ;;  %v4864_v30 = vmul.f32 %v3321_v0, %v2871_v49  ;;  %1386 = vadd.xlane.f32.xlu1 %v2884_v15  ;;  %1388 = vadd.xlane.f32.xlu0 %v2885_v59  ;;  %v1408_v57 = vsel %vm1328_vm5, %v3946_v22, 0.0  ;;  %v1411_v60 = vsel %vm1331_vm8, %v3957_v23, 0.0 }
 0x57f   :  { %v1267_v32 = vpop.xlane.xlu1 %1266  ;;  %v1269_v26 = vpop.xlane.xlu0 %1268  ;;  %v1412_v39 = vsel %vm1332_vm9, %v3974_v5, 0.0 }
 0x580   :  { %v2872_v43 = vadd.f32 -1.0, %v1267_v32  ;;  %v2873_v44 = vadd.f32 -1.0, %v1269_v26  ;;  %vm1333_vm10 = vcmp.gt.f32.partialorder %v3971_v29, %v4862_v3  ;;  %vm1334_vm11 = vcmp.gt.f32.partialorder %v3988_v31, %v4864_v30 }
 0x581   :  { %v2886_v52 = vsel %vm1333_vm10, 1.0, %v3604_v17  ;;  %v2887_v4 = vsel %vm1334_vm11, 1.0, %v3604_v17  ;;  %v1413_v54 = vsel %vm1333_vm10, %v3971_v29, 0.0  ;;  %v1414_v53 = vsel %vm1334_vm11, %v3988_v31, 0.0 }
 0x582   :  { %v1315_v50 = vmul.f32 %v3323_v34, %v2872_v43  ;;  %v1317_v8 = vmul.f32 %v3325_v45, %v2873_v44  ;;  %1390 = vadd.xlane.f32.xlu1 %v2886_v52  ;;  %1392 = vadd.xlane.f32.xlu0 %v2887_v4 }
 0x583   :  { %v1271_v33 = vpop.xlane.xlu1 %1270  ;;  %v1273_v18 = vpop.xlane.xlu0 %1272 }
 0x584   :  { %v2874_v9 = vadd.f32 -1.0, %v1271_v33  ;;  %v2875_v7 = vadd.f32 -1.0, %v1273_v18  ;;  %vm1335_vm12 = vcmp.gt.f32.partialorder %v3985_v11, %v1315_v50  ;;  %vm1336_vm13 = vcmp.gt.f32.partialorder %v4002_v37, %v1317_v8 }
 0x585   :  { %v2888_v40 = vsel %vm1335_vm12, 1.0, %v3604_v17  ;;  %v2889_v27 = vsel %vm1336_vm13, 1.0, %v3604_v17  ;;  %v1415_v2 = vsel %vm1335_vm12, %v3985_v11, 0.0  ;;  %v1416_v63 = vsel %vm1336_vm13, %v4002_v37, 0.0 }
 0x586   :  { %v1319_v28 = vmul.f32 %v3327_v19, %v2874_v9  ;;  %v1321_v55 = vmul.f32 %v3329_v46, %v2875_v7  ;;  %1394 = vadd.xlane.f32.xlu1 %v2888_v40  ;;  %1396 = vadd.xlane.f32.xlu0 %v2889_v27 }
 0x587   :  { %v1275_v56 = vpop.xlane.xlu1 %1274 }
 0x588   :  { %v2876_v47 = vadd.f32 -1.0, %v1275_v56  ;;  %vm1337_vm14 = vcmp.gt.f32.partialorder %v3999_v36, %v1319_v28  ;;  %vm1338_vm15 = vcmp.gt.f32.partialorder %v4016_v42, %v1321_v55 }
 0x589   :  { %v2890_v58 = vsel %vm1337_vm14, 1.0, %v3604_v17  ;;  %v2891_v16 = vsel %vm1338_vm15, 1.0, %v3604_v17  ;;  %v1417_v48 = vsel %vm1337_vm14, %v3999_v36, 0.0  ;;  %v1418_v49 = vsel %vm1338_vm15, %v4016_v42, 0.0 }
 0x58a   :  { %v1323_v20 = vmul.f32 %v3331_v12, %v2876_v47  ;;  %1398 = vadd.xlane.f32.xlu1 %v2890_v58  ;;  %1400 = vadd.xlane.f32.xlu0 %v2891_v16 }
 0x58c   :  { %vm1339_vm0 = vcmp.gt.f32.partialorder %v4013_v41, %v1323_v20 }
 0x58d   :  { %v2892_v61 = vsel %vm1339_vm0, 1.0, %v3604_v17  ;;  %v1419_v0 = vsel %vm1339_vm0, %v4013_v41, 0.0 }
 0x58e   :  { %1402 = vadd.xlane.f32.xlu1 %v2892_v61  ;;  %1420 = vadd.xlane.f32.xlu0 %v1404_v1 }
 0x592   :  { %1422 = vadd.xlane.f32.xlu1 %v1405_v51  ;;  %1424 = vadd.xlane.f32.xlu0 %v1406_v6 }
 0x596   :  { %1426 = vadd.xlane.f32.xlu1 %v1407_v25  ;;  %1428 = vadd.xlane.f32.xlu0 %v1408_v57 }
 0x59a   :  { %1430 = vadd.xlane.f32.xlu1 %v1409_v35  ;;  %1432 = vadd.xlane.f32.xlu0 %v1410_v38 }
 0x59e   :  { %1434 = vadd.xlane.f32.xlu1 %v1411_v60  ;;  %1436 = vadd.xlane.f32.xlu0 %v1412_v39 }
 0x5a2   :  { %1438 = vadd.xlane.f32.xlu1 %v1413_v54  ;;  %1440 = vadd.xlane.f32.xlu0 %v1414_v53 }
 0x5a6   :  { %1442 = vadd.xlane.f32.xlu1 %v1415_v2  ;;  %1444 = vadd.xlane.f32.xlu0 %v1416_v63 }
 0x5aa   :  { %1446 = vadd.xlane.f32.xlu1 %v1417_v48  ;;  %1448 = vadd.xlane.f32.xlu0 %v1418_v49 }
 0x5ae   :  { %1450 = vadd.xlane.f32.xlu1 %v1419_v0 }
 0x5fb   :  { %v1373_v15 = vpop.xlane.xlu0 %1372 }
 0x5fc   :  { %3332 = vrcp.f32 %v1373_v15 }
 0x5ff   :  { %v1375_v59 = vpop.xlane.xlu1 %1374  ;;  %v1377_v3 = vpop.xlane.xlu0 %1376 }
 0x600   :  { %3334 = vrcp.f32 %v1375_v59 }
 0x601   :  { %3336 = vrcp.f32 %v1377_v3 }
 0x603   :  { %v1379_v30 = vpop.xlane.xlu1 %1378  ;;  %v1381_v32 = vpop.xlane.xlu0 %1380 }
 0x604   :  { %3338 = vrcp.f32 %v1379_v30 }
 0x605   :  { %3340 = vrcp.f32 %v1381_v32 }
 0x606   :  { %v3333_v7 = vpop.eup %3332 }
 0x607   :  { %v1383_v26 = vpop.xlane.xlu1 %1382  ;;  %v1385_v34 = vpop.xlane.xlu0 %1384 }
 0x608   :  { %3342 = vrcp.f32 %v1383_v26 }
 0x609   :  { %3344 = vrcp.f32 %v1385_v34 }
 0x60a   :  { %v3335_v28 = vpop.eup %3334 }
 0x60b   :  { %v1387_v43 = vpop.xlane.xlu1 %1386  ;;  %v1389_v44 = vpop.xlane.xlu0 %1388 }
 0x60c   :  { %v3337_v47 = vpop.eup %3336  ;;  %3346 = vrcp.f32 %v1387_v43 }
 0x60d   :  { %3348 = vrcp.f32 %v1389_v44 }
 0x60e   :  { %v3339_v1 = vpop.eup %3338 }
 0x60f   :  { %v1391_v45 = vpop.xlane.xlu1 %1390  ;;  %v1393_v52 = vpop.xlane.xlu0 %1392 }
 0x610   :  { %v3341_v25 = vpop.eup %3340  ;;  %3350 = vrcp.f32 %v1391_v45 }
 0x611   :  { %3352 = vrcp.f32 %v1393_v52 }
 0x612   :  { %v3343_v53 = vpop.eup %3342 }
 0x613   :  { %v1395_v4 = vpop.xlane.xlu1 %1394  ;;  %v1397_v50 = vpop.xlane.xlu0 %1396 }
 0x614   :  { %v3345_v48 = vpop.eup %3344  ;;  %3354 = vrcp.f32 %v1395_v4 }
 0x615   :  { %3356 = vrcp.f32 %v1397_v50 }
 0x616   :  { %v3347_v32 = vpop.eup %3346 }
 0x617   :  { %v4958_v8 = vpop.xlane.xlu1 %1398  ;;  %v4960_v33 = vpop.xlane.xlu0 %1400 }
 0x618   :  { %v3349_v43 = vpop.eup %3348  ;;  %3358 = vrcp.f32 %v4958_v8 }
 0x619   :  { %3360 = vrcp.f32 %v4960_v33 }
 0x61b   :  { %v4962_v18 = vpop.xlane.xlu1 %1402  ;;  %v1421_v19 = vpop.xlane.xlu0 %1420 }
 0x61c   :  { %v2893_v9 = vadd.f32 -1.0, %v1421_v19  ;;  %3362 = vrcp.f32 %v4962_v18 }
 0x61e   :  { %v4964_v46 = vmul.f32 %v3333_v7, %v2893_v9  ;;  %v3351_v9 = vpop.eup %3350 }
 0x61f   :  { %v1423_v40 = vpop.xlane.xlu1 %1422  ;;  %v1425_v27 = vpop.xlane.xlu0 %1424 }
 0x620   :  { %v2894_v55 = vadd.f32 -1.0, %v1423_v40  ;;  %v2895_v56 = vadd.f32 -1.0, %v1425_v27  ;;  %vm1500_vm1 = vcmp.gt.f32.partialorder %v3922_v14, %v4964_v46  ;;  %v3353_v8 = vpop.eup %3352 }
 0x621   :  { %v2909_v12 = vsel %vm1500_vm1, 1.0, %v3604_v17 }
 0x622   :  { %v4972_v58 = vmul.f32 %v3335_v28, %v2894_v55  ;;  %v4974_v16 = vmul.f32 %v3337_v47, %v2895_v56  ;;  %1548 = vadd.xlane.f32.xlu0 %v2909_v12  ;;  %v3355_v12 = vpop.eup %3354 }
 0x623   :  { %v1427_v20 = vpop.xlane.xlu1 %1426  ;;  %v1429_v61 = vpop.xlane.xlu0 %1428 }
 0x624   :  { %v2896_v51 = vadd.f32 -1.0, %v1427_v20  ;;  %v2897_v6 = vadd.f32 -1.0, %v1429_v61  ;;  %vm1501_vm2 = vcmp.gt.f32.partialorder %v3932_v62, %v4972_v58  ;;  %vm1502_vm3 = vcmp.gt.f32.partialorder %v3919_v13, %v4974_v16 }
 0x625   :  { %v2910_v57 = vsel %vm1501_vm2, 1.0, %v3604_v17  ;;  %v2911_v35 = vsel %vm1502_vm3, 1.0, %v3604_v17 }
 0x626   :  { %v4988_v38 = vmul.f32 %v3339_v1, %v2896_v51  ;;  %v4990_v60 = vmul.f32 %v3341_v25, %v2897_v6  ;;  %1550 = vadd.xlane.f32.xlu1 %v2910_v57  ;;  %1552 = vadd.xlane.f32.xlu0 %v2911_v35  ;;  %v3357_v1 = vpop.eup %3356 }
 0x627   :  { %v1431_v39 = vpop.xlane.xlu1 %1430  ;;  %v1433_v54 = vpop.xlane.xlu0 %1432 }
 0x628   :  { %v2898_v2 = vadd.f32 -1.0, %v1431_v39  ;;  %v2899_v63 = vadd.f32 -1.0, %v1433_v54  ;;  %vm1503_vm4 = vcmp.gt.f32.partialorder %v3929_v10, %v4988_v38  ;;  %vm1504_vm5 = vcmp.gt.f32.partialorder %v3946_v22, %v4990_v60  ;;  %v3359_v39 = vpop.eup %3358 }
 0x629   :  { %v2912_v49 = vsel %vm1503_vm4, 1.0, %v3604_v17  ;;  %v2913_v0 = vsel %vm1504_vm5, 1.0, %v3604_v17  ;;  %v1583_v46 = vsel %vm1503_vm4, %v3929_v10, 0.0 }
 0x62a   :  { %v5004_v15 = vmul.f32 %v3343_v53, %v2898_v2  ;;  %v5006_v59 = vmul.f32 %v3345_v48, %v2899_v63  ;;  %1554 = vadd.xlane.f32.xlu1 %v2912_v49  ;;  %1556 = vadd.xlane.f32.xlu0 %v2913_v0  ;;  %v3361_v2 = vpop.eup %3360 }
 0x62b   :  { %v1435_v3 = vpop.xlane.xlu1 %1434  ;;  %v1437_v30 = vpop.xlane.xlu0 %1436 }
 0x62c   :  { %v2900_v26 = vadd.f32 -1.0, %v1435_v3  ;;  %v2901_v34 = vadd.f32 -1.0, %v1437_v30  ;;  %vm1505_vm6 = vcmp.gt.f32.partialorder %v3943_v21, %v5004_v15  ;;  %vm1506_vm7 = vcmp.gt.f32.partialorder %v3960_v24, %v5006_v59 }
 0x62d   :  { %v2914_v44 = vsel %vm1505_vm6, 1.0, %v3604_v17  ;;  %v2915_v45 = vsel %vm1506_vm7, 1.0, %v3604_v17  ;;  %v1585_v58 = vsel %vm1505_vm6, %v3943_v21, 0.0  ;;  %v1586_v16 = vsel %vm1506_vm7, %v3960_v24, 0.0 }
 0x62e   :  { %v5021_v52 = vmul.f32 %v3347_v32, %v2900_v26  ;;  %v5023_v4 = vmul.f32 %v3349_v43, %v2901_v34  ;;  %1558 = vadd.xlane.f32.xlu1 %v2914_v44  ;;  %1560 = vadd.xlane.f32.xlu0 %v2915_v45  ;;  %v3363_v32 = vpop.eup %3362  ;;  %v1580_v45 = vsel %vm1500_vm1, %v3922_v14, 0.0 }
 0x62f   :  { %v1439_v50 = vpop.xlane.xlu1 %1438  ;;  %v1441_v19 = vpop.xlane.xlu0 %1440 }
 0x630   :  { %v2902_v7 = vadd.f32 -1.0, %v1439_v50  ;;  %v2903_v40 = vadd.f32 -1.0, %v1441_v19  ;;  %vm1507_vm8 = vcmp.gt.f32.partialorder %v3957_v23, %v5021_v52  ;;  %vm1508_vm9 = vcmp.gt.f32.partialorder %v3974_v5, %v5023_v4 }
 0x631   :  { %v2916_v27 = vsel %vm1507_vm8, 1.0, %v3604_v17  ;;  %v2917_v33 = vsel %vm1508_vm9, 1.0, %v3604_v17  ;;  %v1581_v50 = vsel %vm1501_vm2, %v3932_v62, 0.0  ;;  %v1582_v19 = vsel %vm1502_vm3, %v3919_v13, 0.0 }
 0x632   :  { %v5038_v28 = vmul.f32 %v3351_v9, %v2902_v7  ;;  %v5040_v55 = vmul.f32 %v3353_v8, %v2903_v40  ;;  %1562 = vadd.xlane.f32.xlu1 %v2916_v27  ;;  %1564 = vadd.xlane.f32.xlu0 %v2917_v33  ;;  %v1584_v9 = vsel %vm1504_vm5, %v3946_v22, 0.0  ;;  %v1587_v38 = vsel %vm1507_vm8, %v3957_v23, 0.0 }
 0x633   :  { %v1443_v56 = vpop.xlane.xlu1 %1442  ;;  %v1445_v47 = vpop.xlane.xlu0 %1444  ;;  %v1588_v60 = vsel %vm1508_vm9, %v3974_v5, 0.0 }
 0x634   :  { %v2904_v20 = vadd.f32 -1.0, %v1443_v56  ;;  %v2905_v61 = vadd.f32 -1.0, %v1445_v47  ;;  %vm1509_vm10 = vcmp.gt.f32.partialorder %v3971_v29, %v5038_v28  ;;  %vm1510_vm11 = vcmp.gt.f32.partialorder %v3988_v31, %v5040_v55 }
 0x635   :  { %v2918_v51 = vsel %vm1509_vm10, 1.0, %v3604_v17  ;;  %v2919_v18 = vsel %vm1510_vm11, 1.0, %v3604_v17  ;;  %v1589_v15 = vsel %vm1509_vm10, %v3971_v29, 0.0  ;;  %v1590_v59 = vsel %vm1510_vm11, %v3988_v31, 0.0 }
 0x636   :  { %v1491_v6 = vmul.f32 %v3355_v12, %v2904_v20  ;;  %v1493_v25 = vmul.f32 %v3357_v1, %v2905_v61  ;;  %1566 = vadd.xlane.f32.xlu1 %v2918_v51  ;;  %1568 = vadd.xlane.f32.xlu0 %v2919_v18 }
 0x637   :  { %v1447_v57 = vpop.xlane.xlu1 %1446  ;;  %v1449_v35 = vpop.xlane.xlu0 %1448 }
 0x638   :  { %v2906_v54 = vadd.f32 -1.0, %v1447_v57  ;;  %v2907_v53 = vadd.f32 -1.0, %v1449_v35  ;;  %vm1511_vm12 = vcmp.gt.f32.partialorder %v3985_v11, %v1491_v6  ;;  %vm1512_vm13 = vcmp.gt.f32.partialorder %v4002_v37, %v1493_v25 }
 0x639   :  { %v2920_v63 = vsel %vm1511_vm12, 1.0, %v3604_v17  ;;  %v2921_v48 = vsel %vm1512_vm13, 1.0, %v3604_v17  ;;  %v1591_v52 = vsel %vm1511_vm12, %v3985_v11, 0.0  ;;  %v1592_v4 = vsel %vm1512_vm13, %v4002_v37, 0.0 }
 0x63a   :  { %v1495_v49 = vmul.f32 %v3359_v39, %v2906_v54  ;;  %v1497_v0 = vmul.f32 %v3361_v2, %v2907_v53  ;;  %1570 = vadd.xlane.f32.xlu1 %v2920_v63  ;;  %1572 = vadd.xlane.f32.xlu0 %v2921_v48 }
 0x63b   :  { %v1451_v3 = vpop.xlane.xlu1 %1450 }
 0x63c   :  { %v2908_v30 = vadd.f32 -1.0, %v1451_v3  ;;  %vm1513_vm14 = vcmp.gt.f32.partialorder %v3999_v36, %v1495_v49  ;;  %vm1514_vm15 = vcmp.gt.f32.partialorder %v4016_v42, %v1497_v0 }
 0x63d   :  { %v2922_v26 = vsel %vm1513_vm14, 1.0, %v3604_v17  ;;  %v2923_v34 = vsel %vm1514_vm15, 1.0, %v3604_v17  ;;  %v1593_v7 = vsel %vm1513_vm14, %v3999_v36, 0.0  ;;  %v1594_v40 = vsel %vm1514_vm15, %v4016_v42, 0.0 }
 0x63e   :  { %v1499_v43 = vmul.f32 %v3363_v32, %v2908_v30  ;;  %1574 = vadd.xlane.f32.xlu1 %v2922_v26  ;;  %1576 = vadd.xlane.f32.xlu0 %v2923_v34 }
 0x640   :  { %vm1515_vm0 = vcmp.gt.f32.partialorder %v4013_v41, %v1499_v43 }
 0x641   :  { %v2924_v44 = vsel %vm1515_vm0, 1.0, %v3604_v17  ;;  %v1595_v8 = vsel %vm1515_vm0, %v4013_v41, 0.0 }
 0x642   :  { %1578 = vadd.xlane.f32.xlu1 %v2924_v44  ;;  %1596 = vadd.xlane.f32.xlu0 %v1580_v45 }
 0x646   :  { %1598 = vadd.xlane.f32.xlu1 %v1581_v50  ;;  %1600 = vadd.xlane.f32.xlu0 %v1582_v19 }
 0x64a   :  { %1602 = vadd.xlane.f32.xlu1 %v1583_v46  ;;  %1604 = vadd.xlane.f32.xlu0 %v1584_v9 }
 0x64e   :  { %1606 = vadd.xlane.f32.xlu1 %v1585_v58  ;;  %1608 = vadd.xlane.f32.xlu0 %v1586_v16 }
 0x652   :  { %1610 = vadd.xlane.f32.xlu1 %v1587_v38  ;;  %1612 = vadd.xlane.f32.xlu0 %v1588_v60 }
 0x656   :  { %1614 = vadd.xlane.f32.xlu1 %v1589_v15  ;;  %1616 = vadd.xlane.f32.xlu0 %v1590_v59 }
 0x65a   :  { %1618 = vadd.xlane.f32.xlu1 %v1591_v52  ;;  %1620 = vadd.xlane.f32.xlu0 %v1592_v4 }
 0x65e   :  { %1622 = vadd.xlane.f32.xlu1 %v1593_v7  ;;  %1624 = vadd.xlane.f32.xlu0 %v1594_v40 }
 0x662   :  { %1626 = vadd.xlane.f32.xlu1 %v1595_v8 }
 0x6af   :  { %v1549_v27 = vpop.xlane.xlu0 %1548 }
 0x6b0   :  { %3364 = vrcp.f32 %v1549_v27 }
 0x6b3   :  { %v1551_v33 = vpop.xlane.xlu1 %1550  ;;  %v1553_v28 = vpop.xlane.xlu0 %1552 }
 0x6b4   :  { %3366 = vrcp.f32 %v1551_v33 }
 0x6b5   :  { %3368 = vrcp.f32 %v1553_v28 }
 0x6b7   :  { %v1555_v55 = vpop.xlane.xlu1 %1554  ;;  %v1557_v56 = vpop.xlane.xlu0 %1556 }
 0x6b8   :  { %3370 = vrcp.f32 %v1555_v55 }
 0x6b9   :  { %3372 = vrcp.f32 %v1557_v56 }
 0x6ba   :  { %v3365_v53 = vpop.eup %3364 }
 0x6bb   :  { %v1559_v47 = vpop.xlane.xlu1 %1558  ;;  %v1561_v12 = vpop.xlane.xlu0 %1560 }
 0x6bc   :  { %3374 = vrcp.f32 %v1559_v47 }
 0x6bd   :  { %3376 = vrcp.f32 %v1561_v12 }
 0x6be   :  { %v3367_v49 = vpop.eup %3366 }
 0x6bf   :  { %v1563_v20 = vpop.xlane.xlu1 %1562  ;;  %v1565_v61 = vpop.xlane.xlu0 %1564 }
 0x6c0   :  { %v3369_v30 = vpop.eup %3368  ;;  %3378 = vrcp.f32 %v1563_v20 }
 0x6c1   :  { %3380 = vrcp.f32 %v1565_v61 }
 0x6c2   :  { %v3371_v45 = vpop.eup %3370 }
 0x6c3   :  { %v1567_v1 = vpop.xlane.xlu1 %1566  ;;  %v1569_v51 = vpop.xlane.xlu0 %1568 }
 0x6c4   :  { %v3373_v46 = vpop.eup %3372  ;;  %3382 = vrcp.f32 %v1567_v1 }
 0x6c5   :  { %3384 = vrcp.f32 %v1569_v51 }
 0x6c6   :  { %v3375_v59 = vpop.eup %3374 }
 0x6c7   :  { %v1571_v18 = vpop.xlane.xlu1 %1570  ;;  %v1573_v6 = vpop.xlane.xlu0 %1572 }
 0x6c8   :  { %v3377_v7 = vpop.eup %3376  ;;  %3386 = vrcp.f32 %v1571_v18 }
 0x6c9   :  { %3388 = vrcp.f32 %v1573_v6 }
 0x6ca   :  { %v3379_v56 = vpop.eup %3378 }
 0x6cb   :  { %v5134_v25 = vpop.xlane.xlu1 %1574  ;;  %v5136_v57 = vpop.xlane.xlu0 %1576 }
 0x6cc   :  { %v3381_v20 = vpop.eup %3380  ;;  %3390 = vrcp.f32 %v5134_v25 }
 0x6cd   :  { %3392 = vrcp.f32 %v5136_v57 }
 0x6cf   :  { %v5138_v35 = vpop.xlane.xlu1 %1578  ;;  %v1597_v39 = vpop.xlane.xlu0 %1596 }
 0x6d0   :  { %v2925_v54 = vadd.f32 -1.0, %v1597_v39  ;;  %3394 = vrcp.f32 %v5138_v35 }
 0x6d2   :  { %v5140_v2 = vmul.f32 %v3365_v53, %v2925_v54  ;;  %v3383_v54 = vpop.eup %3382 }
 0x6d3   :  { %v1599_v63 = vpop.xlane.xlu1 %1598  ;;  %v1601_v48 = vpop.xlane.xlu0 %1600 }
 0x6d4   :  { %v2926_v0 = vadd.f32 -1.0, %v1599_v63  ;;  %v2927_v3 = vadd.f32 -1.0, %v1601_v48  ;;  %vm1676_vm1 = vcmp.gt.f32.partialorder %v3922_v14, %v5140_v2  ;;  %v3385_v25 = vpop.eup %3384 }
 0x6d5   :  { %v2941_v32 = vsel %vm1676_vm1, 1.0, %v3604_v17 }
 0x6d6   :  { %v5148_v26 = vmul.f32 %v3367_v49, %v2926_v0  ;;  %v5150_v34 = vmul.f32 %v3369_v30, %v2927_v3  ;;  %1724 = vadd.xlane.f32.xlu0 %v2941_v32  ;;  %v3387_v32 = vpop.eup %3386 }
 0x6d7   :  { %v1603_v43 = vpop.xlane.xlu1 %1602  ;;  %v1605_v44 = vpop.xlane.xlu0 %1604 }
 0x6d8   :  { %v2928_v50 = vadd.f32 -1.0, %v1603_v43  ;;  %v2929_v19 = vadd.f32 -1.0, %v1605_v44  ;;  %vm1677_vm2 = vcmp.gt.f32.partialorder %v3932_v62, %v5148_v26  ;;  %vm1678_vm3 = vcmp.gt.f32.partialorder %v3919_v13, %v5150_v34 }
 0x6d9   :  { %v2942_v9 = vsel %vm1677_vm2, 1.0, %v3604_v17  ;;  %v2943_v58 = vsel %vm1678_vm3, 1.0, %v3604_v17 }
 0x6da   :  { %v5164_v16 = vmul.f32 %v3371_v45, %v2928_v50  ;;  %v5166_v38 = vmul.f32 %v3373_v46, %v2929_v19  ;;  %1726 = vadd.xlane.f32.xlu1 %v2942_v9  ;;  %1728 = vadd.xlane.f32.xlu0 %v2943_v58  ;;  %v3389_v45 = vpop.eup %3388 }
 0x6db   :  { %v1607_v60 = vpop.xlane.xlu1 %1606  ;;  %v1609_v15 = vpop.xlane.xlu0 %1608 }
 0x6dc   :  { %v2930_v52 = vadd.f32 -1.0, %v1607_v60  ;;  %v2931_v4 = vadd.f32 -1.0, %v1609_v15  ;;  %vm1679_vm4 = vcmp.gt.f32.partialorder %v3929_v10, %v5164_v16  ;;  %vm1680_vm5 = vcmp.gt.f32.partialorder %v3946_v22, %v5166_v38  ;;  %v3391_v60 = vpop.eup %3390 }
 0x6dd   :  { %v2944_v40 = vsel %vm1679_vm4, 1.0, %v3604_v17  ;;  %v2945_v8 = vsel %vm1680_vm5, 1.0, %v3604_v17  ;;  %v1759_v2 = vsel %vm1679_vm4, %v3929_v10, 0.0 }
 0x6de   :  { %v5180_v27 = vmul.f32 %v3375_v59, %v2930_v52  ;;  %v5182_v33 = vmul.f32 %v3377_v7, %v2931_v4  ;;  %1730 = vadd.xlane.f32.xlu1 %v2944_v40  ;;  %1732 = vadd.xlane.f32.xlu0 %v2945_v8  ;;  %v3393_v52 = vpop.eup %3392 }
 0x6df   :  { %v1611_v28 = vpop.xlane.xlu1 %1610  ;;  %v1613_v55 = vpop.xlane.xlu0 %1612 }
 0x6e0   :  { %v2932_v47 = vadd.f32 -1.0, %v1611_v28  ;;  %v2933_v12 = vadd.f32 -1.0, %v1613_v55  ;;  %vm1681_vm6 = vcmp.gt.f32.partialorder %v3943_v21, %v5180_v27  ;;  %vm1682_vm7 = vcmp.gt.f32.partialorder %v3960_v24, %v5182_v33 }
 0x6e1   :  { %v2946_v61 = vsel %vm1681_vm6, 1.0, %v3604_v17  ;;  %v2947_v1 = vsel %vm1682_vm7, 1.0, %v3604_v17  ;;  %v1761_v26 = vsel %vm1681_vm6, %v3943_v21, 0.0  ;;  %v1762_v34 = vsel %vm1682_vm7, %v3960_v24, 0.0 }
 0x6e2   :  { %v5197_v51 = vmul.f32 %v3379_v56, %v2932_v47  ;;  %v5199_v18 = vmul.f32 %v3381_v20, %v2933_v12  ;;  %1734 = vadd.xlane.f32.xlu1 %v2946_v61  ;;  %1736 = vadd.xlane.f32.xlu0 %v2947_v1  ;;  %v3395_v56 = vpop.eup %3394  ;;  %v1756_v1 = vsel %vm1676_vm1, %v3922_v14, 0.0 }
 0x6e3   :  { %v1615_v6 = vpop.xlane.xlu1 %1614  ;;  %v1617_v39 = vpop.xlane.xlu0 %1616 }
 0x6e4   :  { %v2934_v53 = vadd.f32 -1.0, %v1615_v6  ;;  %v2935_v63 = vadd.f32 -1.0, %v1617_v39  ;;  %vm1683_vm8 = vcmp.gt.f32.partialorder %v3957_v23, %v5197_v51  ;;  %vm1684_vm9 = vcmp.gt.f32.partialorder %v3974_v5, %v5199_v18 }
 0x6e5   :  { %v2948_v48 = vsel %vm1683_vm8, 1.0, %v3604_v17  ;;  %v2949_v57 = vsel %vm1684_vm9, 1.0, %v3604_v17  ;;  %v1757_v6 = vsel %vm1677_vm2, %v3932_v62, 0.0  ;;  %v1758_v39 = vsel %vm1678_vm3, %v3919_v13, 0.0 }
 0x6e6   :  { %v5214_v49 = vmul.f32 %v3383_v54, %v2934_v53  ;;  %v5216_v0 = vmul.f32 %v3385_v25, %v2935_v63  ;;  %1738 = vadd.xlane.f32.xlu1 %v2948_v48  ;;  %1740 = vadd.xlane.f32.xlu0 %v2949_v57  ;;  %v1760_v54 = vsel %vm1680_vm5, %v3946_v22, 0.0  ;;  %v1763_v16 = vsel %vm1683_vm8, %v3957_v23, 0.0 }
 0x6e7   :  { %v1619_v3 = vpop.xlane.xlu1 %1618  ;;  %v1621_v30 = vpop.xlane.xlu0 %1620  ;;  %v1764_v38 = vsel %vm1684_vm9, %v3974_v5, 0.0 }
 0x6e8   :  { %v2936_v43 = vadd.f32 -1.0, %v1619_v3  ;;  %v2937_v44 = vadd.f32 -1.0, %v1621_v30  ;;  %vm1685_vm10 = vcmp.gt.f32.partialorder %v3971_v29, %v5214_v49  ;;  %vm1686_vm11 = vcmp.gt.f32.partialorder %v3988_v31, %v5216_v0 }
 0x6e9   :  { %v2950_v50 = vsel %vm1685_vm10, 1.0, %v3604_v17  ;;  %v2951_v35 = vsel %vm1686_vm11, 1.0, %v3604_v17  ;;  %v1765_v27 = vsel %vm1685_vm10, %v3971_v29, 0.0  ;;  %v1766_v33 = vsel %vm1686_vm11, %v3988_v31, 0.0 }
 0x6ea   :  { %v1667_v19 = vmul.f32 %v3387_v32, %v2936_v43  ;;  %v1669_v46 = vmul.f32 %v3389_v45, %v2937_v44  ;;  %1742 = vadd.xlane.f32.xlu1 %v2950_v50  ;;  %1744 = vadd.xlane.f32.xlu0 %v2951_v35 }
 0x6eb   :  { %v1623_v9 = vpop.xlane.xlu1 %1622  ;;  %v1625_v58 = vpop.xlane.xlu0 %1624 }
 0x6ec   :  { %v2938_v15 = vadd.f32 -1.0, %v1623_v9  ;;  %v2939_v59 = vadd.f32 -1.0, %v1625_v58  ;;  %vm1687_vm12 = vcmp.gt.f32.partialorder %v3985_v11, %v1667_v19  ;;  %vm1688_vm13 = vcmp.gt.f32.partialorder %v4002_v37, %v1669_v46 }
 0x6ed   :  { %v2952_v4 = vsel %vm1687_vm12, 1.0, %v3604_v17  ;;  %v2953_v7 = vsel %vm1688_vm13, 1.0, %v3604_v17  ;;  %v1767_v51 = vsel %vm1687_vm12, %v3985_v11, 0.0  ;;  %v1768_v18 = vsel %vm1688_vm13, %v4002_v37, 0.0 }
 0x6ee   :  { %v1671_v40 = vmul.f32 %v3391_v60, %v2938_v15  ;;  %v1673_v8 = vmul.f32 %v3393_v52, %v2939_v59  ;;  %1746 = vadd.xlane.f32.xlu1 %v2952_v4  ;;  %1748 = vadd.xlane.f32.xlu0 %v2953_v7 }
 0x6ef   :  { %v1627_v28 = vpop.xlane.xlu1 %1626 }
 0x6f0   :  { %v2940_v55 = vadd.f32 -1.0, %v1627_v28  ;;  %vm1689_vm14 = vcmp.gt.f32.partialorder %v3999_v36, %v1671_v40  ;;  %vm1690_vm15 = vcmp.gt.f32.partialorder %v4016_v42, %v1673_v8 }
 0x6f1   :  { %v2954_v47 = vsel %vm1689_vm14, 1.0, %v3604_v17  ;;  %v2955_v12 = vsel %vm1690_vm15, 1.0, %v3604_v17  ;;  %v1769_v53 = vsel %vm1689_vm14, %v3999_v36, 0.0  ;;  %v1770_v63 = vsel %vm1690_vm15, %v4016_v42, 0.0 }
 0x6f2   :  { %v1675_v20 = vmul.f32 %v3395_v56, %v2940_v55  ;;  %1750 = vadd.xlane.f32.xlu1 %v2954_v47  ;;  %1752 = vadd.xlane.f32.xlu0 %v2955_v12 }
 0x6f4   :  { %vm1691_vm0 = vcmp.gt.f32.partialorder %v4013_v41, %v1675_v20 }
 0x6f5   :  { %v2956_v61 = vsel %vm1691_vm0, 1.0, %v3604_v17  ;;  %v1771_v25 = vsel %vm1691_vm0, %v4013_v41, 0.0 }
 0x6f6   :  { %1754 = vadd.xlane.f32.xlu1 %v2956_v61  ;;  %1772 = vadd.xlane.f32.xlu0 %v1756_v1 }
 0x6fa   :  { %1774 = vadd.xlane.f32.xlu1 %v1757_v6  ;;  %1776 = vadd.xlane.f32.xlu0 %v1758_v39 }
 0x6fe   :  { %1778 = vadd.xlane.f32.xlu1 %v1759_v2  ;;  %1780 = vadd.xlane.f32.xlu0 %v1760_v54 }
 0x702   :  { %1782 = vadd.xlane.f32.xlu1 %v1761_v26  ;;  %1784 = vadd.xlane.f32.xlu0 %v1762_v34 }
 0x706   :  { %1786 = vadd.xlane.f32.xlu1 %v1763_v16  ;;  %1788 = vadd.xlane.f32.xlu0 %v1764_v38 }
 0x70a   :  { %1790 = vadd.xlane.f32.xlu1 %v1765_v27  ;;  %1792 = vadd.xlane.f32.xlu0 %v1766_v33 }
 0x70e   :  { %1794 = vadd.xlane.f32.xlu1 %v1767_v51  ;;  %1796 = vadd.xlane.f32.xlu0 %v1768_v18 }
 0x712   :  { %1798 = vadd.xlane.f32.xlu1 %v1769_v53  ;;  %1800 = vadd.xlane.f32.xlu0 %v1770_v63 }
 0x716   :  { %1802 = vadd.xlane.f32.xlu1 %v1771_v25 }
 0x763   :  { %v1725_v48 = vpop.xlane.xlu0 %1724 }
 0x764   :  { %3396 = vrcp.f32 %v1725_v48 }
 0x767   :  { %v1727_v57 = vpop.xlane.xlu1 %1726  ;;  %v1729_v49 = vpop.xlane.xlu0 %1728 }
 0x768   :  { %3398 = vrcp.f32 %v1727_v57 }
 0x769   :  { %3400 = vrcp.f32 %v1729_v49 }
 0x76b   :  { %v1731_v0 = vpop.xlane.xlu1 %1730  ;;  %v1733_v3 = vpop.xlane.xlu0 %1732 }
 0x76c   :  { %3402 = vrcp.f32 %v1731_v0 }
 0x76d   :  { %3404 = vrcp.f32 %v1733_v3 }
 0x76e   :  { %v3397_v59 = vpop.eup %3396 }
 0x76f   :  { %v1735_v30 = vpop.xlane.xlu1 %1734  ;;  %v1737_v32 = vpop.xlane.xlu0 %1736 }
 0x770   :  { %3406 = vrcp.f32 %v1735_v30 }
 0x771   :  { %3408 = vrcp.f32 %v1737_v32 }
 0x772   :  { %v3399_v40 = vpop.eup %3398 }
 0x773   :  { %v1739_v43 = vpop.xlane.xlu1 %1738  ;;  %v1741_v44 = vpop.xlane.xlu0 %1740 }
 0x774   :  { %v3401_v55 = vpop.eup %3400  ;;  %3410 = vrcp.f32 %v1739_v43 }
 0x775   :  { %3412 = vrcp.f32 %v1741_v44 }
 0x776   :  { %v3403_v1 = vpop.eup %3402 }
 0x777   :  { %v1743_v45 = vpop.xlane.xlu1 %1742  ;;  %v1745_v50 = vpop.xlane.xlu0 %1744 }
 0x778   :  { %v3405_v2 = vpop.eup %3404  ;;  %3414 = vrcp.f32 %v1743_v45 }
 0x779   :  { %3416 = vrcp.f32 %v1745_v50 }
 0x77a   :  { %v3407_v33 = vpop.eup %3406 }
 0x77b   :  { %v1747_v35 = vpop.xlane.xlu1 %1746  ;;  %v1749_v19 = vpop.xlane.xlu0 %1748 }
 0x77c   :  { %v3409_v53 = vpop.eup %3408  ;;  %3418 = vrcp.f32 %v1747_v35 }
 0x77d   :  { %3420 = vrcp.f32 %v1749_v19 }
 0x77e   :  { %v3411_v3 = vpop.eup %3410 }
 0x77f   :  { %v5310_v46 = vpop.xlane.xlu1 %1750  ;;  %v5312_v9 = vpop.xlane.xlu0 %1752 }
 0x780   :  { %v3413_v43 = vpop.eup %3412  ;;  %3422 = vrcp.f32 %v5310_v46 }
 0x781   :  { %3424 = vrcp.f32 %v5312_v9 }
 0x783   :  { %v5314_v58 = vpop.xlane.xlu1 %1754  ;;  %v1773_v60 = vpop.xlane.xlu0 %1772 }
 0x784   :  { %v2957_v15 = vadd.f32 -1.0, %v1773_v60  ;;  %3426 = vrcp.f32 %v5314_v58 }
 0x786   :  { %v5316_v52 = vmul.f32 %v3397_v59, %v2957_v15  ;;  %v3415_v15 = vpop.eup %3414 }
 0x787   :  { %v1775_v4 = vpop.xlane.xlu1 %1774  ;;  %v1777_v7 = vpop.xlane.xlu0 %1776 }
 0x788   :  { %v2958_v8 = vadd.f32 -1.0, %v1775_v4  ;;  %v2959_v28 = vadd.f32 -1.0, %v1777_v7  ;;  %vm1852_vm1 = vcmp.gt.f32.partialorder %v3922_v14, %v5316_v52  ;;  %v3417_v46 = vpop.eup %3416 }
 0x789   :  { %v2973_v56 = vsel %vm1852_vm1, 1.0, %v3604_v17 }
 0x78a   :  { %v5324_v47 = vmul.f32 %v3399_v40, %v2958_v8  ;;  %v5326_v12 = vmul.f32 %v3401_v55, %v2959_v28  ;;  %1900 = vadd.xlane.f32.xlu0 %v2973_v56  ;;  %v3419_v56 = vpop.eup %3418 }
 0x78b   :  { %v1779_v20 = vpop.xlane.xlu1 %1778  ;;  %v1781_v61 = vpop.xlane.xlu0 %1780 }
 0x78c   :  { %v2960_v6 = vadd.f32 -1.0, %v1779_v20  ;;  %v2961_v39 = vadd.f32 -1.0, %v1781_v61  ;;  %vm1853_vm2 = vcmp.gt.f32.partialorder %v3932_v62, %v5324_v47  ;;  %vm1854_vm3 = vcmp.gt.f32.partialorder %v3919_v13, %v5326_v12 }
 0x78d   :  { %v2974_v54 = vsel %vm1853_vm2, 1.0, %v3604_v17  ;;  %v2975_v26 = vsel %vm1854_vm3, 1.0, %v3604_v17 }
 0x78e   :  { %v5340_v34 = vmul.f32 %v3403_v1, %v2960_v6  ;;  %v5342_v16 = vmul.f32 %v3405_v2, %v2961_v39  ;;  %1902 = vadd.xlane.f32.xlu1 %v2974_v54  ;;  %1904 = vadd.xlane.f32.xlu0 %v2975_v26  ;;  %v3421_v1 = vpop.eup %3420 }
 0x78f   :  { %v1783_v38 = vpop.xlane.xlu1 %1782  ;;  %v1785_v27 = vpop.xlane.xlu0 %1784 }
 0x790   :  { %v2962_v51 = vadd.f32 -1.0, %v1783_v38  ;;  %v2963_v18 = vadd.f32 -1.0, %v1785_v27  ;;  %vm1855_vm4 = vcmp.gt.f32.partialorder %v3929_v10, %v5340_v34  ;;  %vm1856_vm5 = vcmp.gt.f32.partialorder %v3946_v22, %v5342_v16  ;;  %v3423_v38 = vpop.eup %3422 }
 0x791   :  { %v2976_v63 = vsel %vm1855_vm4, 1.0, %v3604_v17  ;;  %v2977_v25 = vsel %vm1856_vm5, 1.0, %v3604_v17  ;;  %v1935_v52 = vsel %vm1855_vm4, %v3929_v10, 0.0 }
 0x792   :  { %v5356_v48 = vmul.f32 %v3407_v33, %v2962_v51  ;;  %v5358_v57 = vmul.f32 %v3409_v53, %v2963_v18  ;;  %1906 = vadd.xlane.f32.xlu1 %v2976_v63  ;;  %1908 = vadd.xlane.f32.xlu0 %v2977_v25  ;;  %v3425_v51 = vpop.eup %3424 }
 0x793   :  { %v1787_v49 = vpop.xlane.xlu1 %1786  ;;  %v1789_v0 = vpop.xlane.xlu0 %1788 }
 0x794   :  { %v2964_v30 = vadd.f32 -1.0, %v1787_v49  ;;  %v2965_v32 = vadd.f32 -1.0, %v1789_v0  ;;  %vm1857_vm6 = vcmp.gt.f32.partialorder %v3943_v21, %v5356_v48  ;;  %vm1858_vm7 = vcmp.gt.f32.partialorder %v3960_v24, %v5358_v57 }
 0x795   :  { %v2978_v44 = vsel %vm1857_vm6, 1.0, %v3604_v17  ;;  %v2979_v45 = vsel %vm1858_vm7, 1.0, %v3604_v17  ;;  %v1937_v47 = vsel %vm1857_vm6, %v3943_v21, 0.0  ;;  %v1938_v12 = vsel %vm1858_vm7, %v3960_v24, 0.0 }
 0x796   :  { %v5373_v50 = vmul.f32 %v3411_v3, %v2964_v30  ;;  %v5375_v35 = vmul.f32 %v3413_v43, %v2965_v32  ;;  %1910 = vadd.xlane.f32.xlu1 %v2978_v44  ;;  %1912 = vadd.xlane.f32.xlu0 %v2979_v45  ;;  %v3427_v3 = vpop.eup %3426  ;;  %v1932_v45 = vsel %vm1852_vm1, %v3922_v14, 0.0 }
 0x797   :  { %v1791_v19 = vpop.xlane.xlu1 %1790  ;;  %v1793_v60 = vpop.xlane.xlu0 %1792 }
 0x798   :  { %v2966_v59 = vadd.f32 -1.0, %v1791_v19  ;;  %v2967_v4 = vadd.f32 -1.0, %v1793_v60  ;;  %vm1859_vm8 = vcmp.gt.f32.partialorder %v3957_v23, %v5373_v50  ;;  %vm1860_vm9 = vcmp.gt.f32.partialorder %v3974_v5, %v5375_v35 }
 0x799   :  { %v2980_v7 = vsel %vm1859_vm8, 1.0, %v3604_v17  ;;  %v2981_v9 = vsel %vm1860_vm9, 1.0, %v3604_v17  ;;  %v1933_v19 = vsel %vm1853_vm2, %v3932_v62, 0.0  ;;  %v1934_v60 = vsel %vm1854_vm3, %v3919_v13, 0.0 }
 0x79a   :  { %v5390_v40 = vmul.f32 %v3415_v15, %v2966_v59  ;;  %v5392_v8 = vmul.f32 %v3417_v46, %v2967_v4  ;;  %1914 = vadd.xlane.f32.xlu1 %v2980_v7  ;;  %1916 = vadd.xlane.f32.xlu0 %v2981_v9  ;;  %v1936_v15 = vsel %vm1856_vm5, %v3946_v22, 0.0  ;;  %v1939_v34 = vsel %vm1859_vm8, %v3957_v23, 0.0 }
 0x79b   :  { %v1795_v28 = vpop.xlane.xlu1 %1794  ;;  %v1797_v55 = vpop.xlane.xlu0 %1796  ;;  %v1940_v16 = vsel %vm1860_vm9, %v3974_v5, 0.0 }
 0x79c   :  { %v2968_v20 = vadd.f32 -1.0, %v1795_v28  ;;  %v2969_v61 = vadd.f32 -1.0, %v1797_v55  ;;  %vm1861_vm10 = vcmp.gt.f32.partialorder %v3971_v29, %v5390_v40  ;;  %vm1862_vm11 = vcmp.gt.f32.partialorder %v3988_v31, %v5392_v8 }
 0x79d   :  { %v2982_v6 = vsel %vm1861_vm10, 1.0, %v3604_v17  ;;  %v2983_v58 = vsel %vm1862_vm11, 1.0, %v3604_v17  ;;  %v1941_v48 = vsel %vm1861_vm10, %v3971_v29, 0.0  ;;  %v1942_v57 = vsel %vm1862_vm11, %v3988_v31, 0.0 }
 0x79e   :  { %v1843_v39 = vmul.f32 %v3419_v56, %v2968_v20  ;;  %v1845_v2 = vmul.f32 %v3421_v1, %v2969_v61  ;;  %1918 = vadd.xlane.f32.xlu1 %v2982_v6  ;;  %1920 = vadd.xlane.f32.xlu0 %v2983_v58 }
 0x79f   :  { %v1799_v54 = vpop.xlane.xlu1 %1798  ;;  %v1801_v26 = vpop.xlane.xlu0 %1800 }
 0x7a0   :  { %v2970_v27 = vadd.f32 -1.0, %v1799_v54  ;;  %v2971_v33 = vadd.f32 -1.0, %v1801_v26  ;;  %vm1863_vm12 = vcmp.gt.f32.partialorder %v3985_v11, %v1843_v39  ;;  %vm1864_vm13 = vcmp.gt.f32.partialorder %v4002_v37, %v1845_v2 }
 0x7a1   :  { %v2984_v18 = vsel %vm1863_vm12, 1.0, %v3604_v17  ;;  %v2985_v53 = vsel %vm1864_vm13, 1.0, %v3604_v17  ;;  %v1943_v50 = vsel %vm1863_vm12, %v3985_v11, 0.0  ;;  %v1944_v35 = vsel %vm1864_vm13, %v4002_v37, 0.0 }
 0x7a2   :  { %v1847_v63 = vmul.f32 %v3423_v38, %v2970_v27  ;;  %v1849_v25 = vmul.f32 %v3425_v51, %v2971_v33  ;;  %1922 = vadd.xlane.f32.xlu1 %v2984_v18  ;;  %1924 = vadd.xlane.f32.xlu0 %v2985_v53 }
 0x7a3   :  { %v1803_v49 = vpop.xlane.xlu1 %1802 }
 0x7a4   :  { %v2972_v0 = vadd.f32 -1.0, %v1803_v49  ;;  %vm1865_vm14 = vcmp.gt.f32.partialorder %v3999_v36, %v1847_v63  ;;  %vm1866_vm15 = vcmp.gt.f32.partialorder %v4016_v42, %v1849_v25 }
 0x7a5   :  { %v2986_v30 = vsel %vm1865_vm14, 1.0, %v3604_v17  ;;  %v2987_v32 = vsel %vm1866_vm15, 1.0, %v3604_v17  ;;  %v1945_v59 = vsel %vm1865_vm14, %v3999_v36, 0.0  ;;  %v1946_v4 = vsel %vm1866_vm15, %v4016_v42, 0.0 }
 0x7a6   :  { %v1851_v43 = vmul.f32 %v3427_v3, %v2972_v0  ;;  %1926 = vadd.xlane.f32.xlu1 %v2986_v30  ;;  %1928 = vadd.xlane.f32.xlu0 %v2987_v32 }
 0x7a8   :  { %vm1867_vm0 = vcmp.gt.f32.partialorder %v4013_v41, %v1851_v43 }
 0x7a9   :  { %v2988_v44 = vsel %vm1867_vm0, 1.0, %v3604_v17  ;;  %v1947_v46 = vsel %vm1867_vm0, %v4013_v41, 0.0 }
 0x7aa   :  { %1930 = vadd.xlane.f32.xlu1 %v2988_v44  ;;  %1948 = vadd.xlane.f32.xlu0 %v1932_v45 }
 0x7ae   :  { %1950 = vadd.xlane.f32.xlu1 %v1933_v19  ;;  %1952 = vadd.xlane.f32.xlu0 %v1934_v60 }
 0x7b2   :  { %1954 = vadd.xlane.f32.xlu1 %v1935_v52  ;;  %1956 = vadd.xlane.f32.xlu0 %v1936_v15 }
 0x7b6   :  { %1958 = vadd.xlane.f32.xlu1 %v1937_v47  ;;  %1960 = vadd.xlane.f32.xlu0 %v1938_v12 }
 0x7ba   :  { %1962 = vadd.xlane.f32.xlu1 %v1939_v34  ;;  %1964 = vadd.xlane.f32.xlu0 %v1940_v16 }
 0x7be   :  { %1966 = vadd.xlane.f32.xlu1 %v1941_v48  ;;  %1968 = vadd.xlane.f32.xlu0 %v1942_v57 }
 0x7c2   :  { %1970 = vadd.xlane.f32.xlu1 %v1943_v50  ;;  %1972 = vadd.xlane.f32.xlu0 %v1944_v35 }
 0x7c6   :  { %1974 = vadd.xlane.f32.xlu1 %v1945_v59  ;;  %1976 = vadd.xlane.f32.xlu0 %v1946_v4 }
 0x7ca   :  { %1978 = vadd.xlane.f32.xlu1 %v1947_v46 }
 0x817   :  { %v1901_v7 = vpop.xlane.xlu0 %1900 }
 0x818   :  { %3428 = vrcp.f32 %v1901_v7 }
 0x81b   :  { %v1903_v9 = vpop.xlane.xlu1 %1902  ;;  %v1905_v40 = vpop.xlane.xlu0 %1904 }
 0x81c   :  { %3430 = vrcp.f32 %v1903_v9 }
 0x81d   :  { %3432 = vrcp.f32 %v1905_v40 }
 0x81f   :  { %v1907_v8 = vpop.xlane.xlu1 %1906  ;;  %v1909_v28 = vpop.xlane.xlu0 %1908 }
 0x820   :  { %3434 = vrcp.f32 %v1907_v8 }
 0x821   :  { %3436 = vrcp.f32 %v1909_v28 }
 0x822   :  { %v3429_v33 = vpop.eup %3428 }
 0x823   :  { %v1911_v55 = vpop.xlane.xlu1 %1910  ;;  %v1913_v56 = vpop.xlane.xlu0 %1912 }
 0x824   :  { %3438 = vrcp.f32 %v1911_v55 }
 0x825   :  { %3440 = vrcp.f32 %v1913_v56 }
 0x826   :  { %v3431_v63 = vpop.eup %3430 }
 0x827   :  { %v1915_v20 = vpop.xlane.xlu1 %1914  ;;  %v1917_v61 = vpop.xlane.xlu0 %1916 }
 0x828   :  { %v3433_v0 = vpop.eup %3432  ;;  %3442 = vrcp.f32 %v1915_v20 }
 0x829   :  { %3444 = vrcp.f32 %v1917_v61 }
 0x82a   :  { %v3435_v45 = vpop.eup %3434 }
 0x82b   :  { %v1919_v1 = vpop.xlane.xlu1 %1918  ;;  %v1921_v6 = vpop.xlane.xlu0 %1920 }
 0x82c   :  { %v3437_v52 = vpop.eup %3436  ;;  %3446 = vrcp.f32 %v1919_v1 }
 0x82d   :  { %3448 = vrcp.f32 %v1921_v6 }
 0x82e   :  { %v3439_v57 = vpop.eup %3438 }
 0x82f   :  { %v1923_v58 = vpop.xlane.xlu1 %1922  ;;  %v1925_v39 = vpop.xlane.xlu0 %1924 }
 0x830   :  { %v3441_v59 = vpop.eup %3440  ;;  %3450 = vrcp.f32 %v1923_v58 }
 0x831   :  { %3452 = vrcp.f32 %v1925_v39 }
 0x832   :  { %v3443_v28 = vpop.eup %3442 }
 0x833   :  { %v5486_v2 = vpop.xlane.xlu1 %1926  ;;  %v5488_v54 = vpop.xlane.xlu0 %1928 }
 0x834   :  { %v3445_v20 = vpop.eup %3444  ;;  %3454 = vrcp.f32 %v5486_v2 }
 0x835   :  { %3456 = vrcp.f32 %v5488_v54 }
 0x837   :  { %v5490_v26 = vpop.xlane.xlu1 %1930  ;;  %v1949_v38 = vpop.xlane.xlu0 %1948 }
 0x838   :  { %v2989_v27 = vadd.f32 -1.0, %v1949_v38  ;;  %3458 = vrcp.f32 %v5490_v26 }
 0x83a   :  { %v5492_v51 = vmul.f32 %v3429_v33, %v2989_v27  ;;  %v3447_v27 = vpop.eup %3446 }
 0x83b   :  { %v1951_v18 = vpop.xlane.xlu1 %1950  ;;  %v1953_v53 = vpop.xlane.xlu0 %1952 }
 0x83c   :  { %v2990_v25 = vadd.f32 -1.0, %v1951_v18  ;;  %v2991_v49 = vadd.f32 -1.0, %v1953_v53  ;;  %vm2028_vm1 = vcmp.gt.f32.partialorder %v3922_v14, %v5492_v51  ;;  %v3449_v2 = vpop.eup %3448 }
 0x83d   :  { %v3005_v3 = vsel %vm2028_vm1, 1.0, %v3604_v17 }
 0x83e   :  { %v5500_v30 = vmul.f32 %v3431_v63, %v2990_v25  ;;  %v5502_v32 = vmul.f32 %v3433_v0, %v2991_v49  ;;  %2076 = vadd.xlane.f32.xlu0 %v3005_v3  ;;  %v3451_v3 = vpop.eup %3450 }
 0x83f   :  { %v1955_v43 = vpop.xlane.xlu1 %1954  ;;  %v1957_v44 = vpop.xlane.xlu0 %1956 }
 0x840   :  { %v2992_v19 = vadd.f32 -1.0, %v1955_v43  ;;  %v2993_v60 = vadd.f32 -1.0, %v1957_v44  ;;  %vm2029_vm2 = vcmp.gt.f32.partialorder %v3932_v62, %v5500_v30  ;;  %vm2030_vm3 = vcmp.gt.f32.partialorder %v3919_v13, %v5502_v32 }
 0x841   :  { %v3006_v15 = vsel %vm2029_vm2, 1.0, %v3604_v17  ;;  %v3007_v47 = vsel %vm2030_vm3, 1.0, %v3604_v17 }
 0x842   :  { %v5516_v12 = vmul.f32 %v3435_v45, %v2992_v19  ;;  %v5518_v34 = vmul.f32 %v3437_v52, %v2993_v60  ;;  %2078 = vadd.xlane.f32.xlu1 %v3006_v15  ;;  %2080 = vadd.xlane.f32.xlu0 %v3007_v47  ;;  %v3453_v45 = vpop.eup %3452 }
 0x843   :  { %v1959_v16 = vpop.xlane.xlu1 %1958  ;;  %v1961_v48 = vpop.xlane.xlu0 %1960 }
 0x844   :  { %v2994_v50 = vadd.f32 -1.0, %v1959_v16  ;;  %v2995_v35 = vadd.f32 -1.0, %v1961_v48  ;;  %vm2031_vm4 = vcmp.gt.f32.partialorder %v3929_v10, %v5516_v12  ;;  %vm2032_vm5 = vcmp.gt.f32.partialorder %v3946_v22, %v5518_v34  ;;  %v3455_v16 = vpop.eup %3454 }
 0x845   :  { %v3008_v4 = vsel %vm2031_vm4, 1.0, %v3604_v17  ;;  %v3009_v46 = vsel %vm2032_vm5, 1.0, %v3604_v17  ;;  %v2111_v51 = vsel %vm2031_vm4, %v3929_v10, 0.0 }
 0x846   :  { %v5532_v7 = vmul.f32 %v3439_v57, %v2994_v50  ;;  %v5534_v9 = vmul.f32 %v3441_v59, %v2995_v35  ;;  %2082 = vadd.xlane.f32.xlu1 %v3008_v4  ;;  %2084 = vadd.xlane.f32.xlu0 %v3009_v46  ;;  %v3457_v50 = vpop.eup %3456 }
 0x847   :  { %v1963_v40 = vpop.xlane.xlu1 %1962  ;;  %v1965_v8 = vpop.xlane.xlu0 %1964 }
 0x848   :  { %v2996_v55 = vadd.f32 -1.0, %v1963_v40  ;;  %v2997_v56 = vadd.f32 -1.0, %v1965_v8  ;;  %vm2033_vm6 = vcmp.gt.f32.partialorder %v3943_v21, %v5532_v7  ;;  %vm2034_vm7 = vcmp.gt.f32.partialorder %v3960_v24, %v5534_v9 }
 0x849   :  { %v3010_v61 = vsel %vm2033_vm6, 1.0, %v3604_v17  ;;  %v3011_v1 = vsel %vm2034_vm7, 1.0, %v3604_v17  ;;  %v2113_v30 = vsel %vm2033_vm6, %v3943_v21, 0.0  ;;  %v2114_v32 = vsel %vm2034_vm7, %v3960_v24, 0.0 }
 0x84a   :  { %v5549_v6 = vmul.f32 %v3443_v28, %v2996_v55  ;;  %v5551_v58 = vmul.f32 %v3445_v20, %v2997_v56  ;;  %2086 = vadd.xlane.f32.xlu1 %v3010_v61  ;;  %2088 = vadd.xlane.f32.xlu0 %v3011_v1  ;;  %v3459_v28 = vpop.eup %3458  ;;  %v2108_v1 = vsel %vm2028_vm1, %v3922_v14, 0.0 }
 0x84b   :  { %v1967_v39 = vpop.xlane.xlu1 %1966  ;;  %v1969_v38 = vpop.xlane.xlu0 %1968 }
 0x84c   :  { %v2998_v33 = vadd.f32 -1.0, %v1967_v39  ;;  %v2999_v18 = vadd.f32 -1.0, %v1969_v38  ;;  %vm2035_vm8 = vcmp.gt.f32.partialorder %v3957_v23, %v5549_v6  ;;  %vm2036_vm9 = vcmp.gt.f32.partialorder %v3974_v5, %v5551_v58 }
 0x84d   :  { %v3012_v53 = vsel %vm2035_vm8, 1.0, %v3604_v17  ;;  %v3013_v54 = vsel %vm2036_vm9, 1.0, %v3604_v17  ;;  %v2109_v39 = vsel %vm2029_vm2, %v3932_v62, 0.0  ;;  %v2110_v38 = vsel %vm2030_vm3, %v3919_v13, 0.0 }
 0x84e   :  { %v5566_v63 = vmul.f32 %v3447_v27, %v2998_v33  ;;  %v5568_v25 = vmul.f32 %v3449_v2, %v2999_v18  ;;  %2090 = vadd.xlane.f32.xlu1 %v3012_v53  ;;  %2092 = vadd.xlane.f32.xlu0 %v3013_v54  ;;  %v2112_v27 = vsel %vm2032_vm5, %v3946_v22, 0.0  ;;  %v2115_v12 = vsel %vm2035_vm8, %v3957_v23, 0.0 }
 0x84f   :  { %v1971_v49 = vpop.xlane.xlu1 %1970  ;;  %v1973_v0 = vpop.xlane.xlu0 %1972  ;;  %v2116_v34 = vsel %vm2036_vm9, %v3974_v5, 0.0 }
 0x850   :  { %v3000_v43 = vadd.f32 -1.0, %v1971_v49  ;;  %v3001_v44 = vadd.f32 -1.0, %v1973_v0  ;;  %vm2037_vm10 = vcmp.gt.f32.partialorder %v3971_v29, %v5566_v63  ;;  %vm2038_vm11 = vcmp.gt.f32.partialorder %v3988_v31, %v5568_v25 }
 0x851   :  { %v3014_v19 = vsel %vm2037_vm10, 1.0, %v3604_v17  ;;  %v3015_v26 = vsel %vm2038_vm11, 1.0, %v3604_v17  ;;  %v2117_v7 = vsel %vm2037_vm10, %v3971_v29, 0.0  ;;  %v2118_v9 = vsel %vm2038_vm11, %v3988_v31, 0.0 }
 0x852   :  { %v2019_v60 = vmul.f32 %v3451_v3, %v3000_v43  ;;  %v2021_v52 = vmul.f32 %v3453_v45, %v3001_v44  ;;  %2094 = vadd.xlane.f32.xlu1 %v3014_v19  ;;  %2096 = vadd.xlane.f32.xlu0 %v3015_v26 }
 0x853   :  { %v1975_v15 = vpop.xlane.xlu1 %1974  ;;  %v1977_v47 = vpop.xlane.xlu0 %1976 }
 0x854   :  { %v3002_v48 = vadd.f32 -1.0, %v1975_v15  ;;  %v3003_v57 = vadd.f32 -1.0, %v1977_v47  ;;  %vm2039_vm12 = vcmp.gt.f32.partialorder %v3985_v11, %v2019_v60  ;;  %vm2040_vm13 = vcmp.gt.f32.partialorder %v4002_v37, %v2021_v52 }
 0x855   :  { %v3016_v35 = vsel %vm2039_vm12, 1.0, %v3604_v17  ;;  %v3017_v59 = vsel %vm2040_vm13, 1.0, %v3604_v17  ;;  %v2119_v6 = vsel %vm2039_vm12, %v3985_v11, 0.0  ;;  %v2120_v58 = vsel %vm2040_vm13, %v4002_v37, 0.0 }
 0x856   :  { %v2023_v4 = vmul.f32 %v3455_v16, %v3002_v48  ;;  %v2025_v46 = vmul.f32 %v3457_v50, %v3003_v57  ;;  %2098 = vadd.xlane.f32.xlu1 %v3016_v35  ;;  %2100 = vadd.xlane.f32.xlu0 %v3017_v59 }
 0x857   :  { %v1979_v40 = vpop.xlane.xlu1 %1978 }
 0x858   :  { %v3004_v8 = vadd.f32 -1.0, %v1979_v40  ;;  %vm2041_vm14 = vcmp.gt.f32.partialorder %v3999_v36, %v2023_v4  ;;  %vm2042_vm15 = vcmp.gt.f32.partialorder %v4016_v42, %v2025_v46 }
 0x859   :  { %v3018_v55 = vsel %vm2041_vm14, 1.0, %v3604_v17  ;;  %v3019_v56 = vsel %vm2042_vm15, 1.0, %v3604_v17  ;;  %v2121_v33 = vsel %vm2041_vm14, %v3999_v36, 0.0  ;;  %v2122_v18 = vsel %vm2042_vm15, %v4016_v42, 0.0 }
 0x85a   :  { %v2027_v20 = vmul.f32 %v3459_v28, %v3004_v8  ;;  %2102 = vadd.xlane.f32.xlu1 %v3018_v55  ;;  %2104 = vadd.xlane.f32.xlu0 %v3019_v56 }
 0x85c   :  { %vm2043_vm0 = vcmp.gt.f32.partialorder %v4013_v41, %v2027_v20 }
 0x85d   :  { %v3020_v61 = vsel %vm2043_vm0, 1.0, %v3604_v17  ;;  %v2123_v2 = vsel %vm2043_vm0, %v4013_v41, 0.0 }
 0x85e   :  { %2106 = vadd.xlane.f32.xlu1 %v3020_v61  ;;  %2124 = vadd.xlane.f32.xlu0 %v2108_v1 }
 0x862   :  { %2126 = vadd.xlane.f32.xlu1 %v2109_v39  ;;  %2128 = vadd.xlane.f32.xlu0 %v2110_v38 }
 0x866   :  { %2130 = vadd.xlane.f32.xlu1 %v2111_v51  ;;  %2132 = vadd.xlane.f32.xlu0 %v2112_v27 }
 0x86a   :  { %2134 = vadd.xlane.f32.xlu1 %v2113_v30  ;;  %2136 = vadd.xlane.f32.xlu0 %v2114_v32 }
 0x86e   :  { %2138 = vadd.xlane.f32.xlu1 %v2115_v12  ;;  %2140 = vadd.xlane.f32.xlu0 %v2116_v34 }
 0x872   :  { %2142 = vadd.xlane.f32.xlu1 %v2117_v7  ;;  %2144 = vadd.xlane.f32.xlu0 %v2118_v9 }
 0x876   :  { %2146 = vadd.xlane.f32.xlu1 %v2119_v6  ;;  %2148 = vadd.xlane.f32.xlu0 %v2120_v58 }
 0x87a   :  { %2150 = vadd.xlane.f32.xlu1 %v2121_v33  ;;  %2152 = vadd.xlane.f32.xlu0 %v2122_v18 }
 0x87e   :  { %2154 = vadd.xlane.f32.xlu1 %v2123_v2 }
 0x8cb   :  { %v2077_v53 = vpop.xlane.xlu0 %2076 }
 0x8cc   :  { %3460 = vrcp.f32 %v2077_v53 }
 0x8cf   :  { %v2079_v54 = vpop.xlane.xlu1 %2078  ;;  %v2081_v63 = vpop.xlane.xlu0 %2080 }
 0x8d0   :  { %3462 = vrcp.f32 %v2079_v54 }
 0x8d1   :  { %3464 = vrcp.f32 %v2081_v63 }
 0x8d3   :  { %v2083_v25 = vpop.xlane.xlu1 %2082  ;;  %v2085_v49 = vpop.xlane.xlu0 %2084 }
 0x8d4   :  { %3466 = vrcp.f32 %v2083_v25 }
 0x8d5   :  { %3468 = vrcp.f32 %v2085_v49 }
 0x8d6   :  { %v3461_v57 = vpop.eup %3460 }
 0x8d7   :  { %v2087_v0 = vpop.xlane.xlu1 %2086  ;;  %v2089_v3 = vpop.xlane.xlu0 %2088 }
 0x8d8   :  { %3470 = vrcp.f32 %v2087_v0 }
 0x8d9   :  { %3472 = vrcp.f32 %v2089_v3 }
 0x8da   :  { %v3463_v4 = vpop.eup %3462 }
 0x8db   :  { %v2091_v43 = vpop.xlane.xlu1 %2090  ;;  %v2093_v44 = vpop.xlane.xlu0 %2092 }
 0x8dc   :  { %v3465_v8 = vpop.eup %3464  ;;  %3474 = vrcp.f32 %v2091_v43 }
 0x8dd   :  { %3476 = vrcp.f32 %v2093_v44 }
 0x8de   :  { %v3467_v1 = vpop.eup %3466 }
 0x8df   :  { %v2095_v45 = vpop.xlane.xlu1 %2094  ;;  %v2097_v19 = vpop.xlane.xlu0 %2096 }
 0x8e0   :  { %v3469_v51 = vpop.eup %3468  ;;  %3478 = vrcp.f32 %v2095_v45 }
 0x8e1   :  { %3480 = vrcp.f32 %v2097_v19 }
 0x8e2   :  { %v3471_v9 = vpop.eup %3470 }
 0x8e3   :  { %v2099_v26 = vpop.xlane.xlu1 %2098  ;;  %v2101_v60 = vpop.xlane.xlu0 %2100 }
 0x8e4   :  { %v3473_v33 = vpop.eup %3472  ;;  %3482 = vrcp.f32 %v2099_v26 }
 0x8e5   :  { %3484 = vrcp.f32 %v2101_v60 }
 0x8e6   :  { %v3475_v49 = vpop.eup %3474 }
 0x8e7   :  { %v5662_v52 = vpop.xlane.xlu1 %2102  ;;  %v5664_v15 = vpop.xlane.xlu0 %2104 }
 0x8e8   :  { %v3477_v43 = vpop.eup %3476  ;;  %3486 = vrcp.f32 %v5662_v52 }
 0x8e9   :  { %3488 = vrcp.f32 %v5664_v15 }
 0x8eb   :  { %v5666_v47 = vpop.xlane.xlu1 %2106  ;;  %v2125_v16 = vpop.xlane.xlu0 %2124 }
 0x8ec   :  { %v3021_v48 = vadd.f32 -1.0, %v2125_v16  ;;  %3490 = vrcp.f32 %v5666_v47 }
 0x8ee   :  { %v5668_v50 = vmul.f32 %v3461_v57, %v3021_v48  ;;  %v3479_v48 = vpop.eup %3478 }
 0x8ef   :  { %v2127_v35 = vpop.xlane.xlu1 %2126  ;;  %v2129_v59 = vpop.xlane.xlu0 %2128 }
 0x8f0   :  { %v3022_v46 = vadd.f32 -1.0, %v2127_v35  ;;  %v3023_v40 = vadd.f32 -1.0, %v2129_v59  ;;  %vm2204_vm1 = vcmp.gt.f32.partialorder %v3922_v14, %v5668_v50  ;;  %v3481_v52 = vpop.eup %3480 }
 0x8f1   :  { %v3037_v28 = vsel %vm2204_vm1, 1.0, %v3604_v17 }
 0x8f2   :  { %v5676_v55 = vmul.f32 %v3463_v4, %v3022_v46  ;;  %v5678_v56 = vmul.f32 %v3465_v8, %v3023_v40  ;;  %2252 = vadd.xlane.f32.xlu0 %v3037_v28  ;;  %v3483_v28 = vpop.eup %3482 }
 0x8f3   :  { %v2131_v20 = vpop.xlane.xlu1 %2130  ;;  %v2133_v61 = vpop.xlane.xlu0 %2132 }
 0x8f4   :  { %v3024_v39 = vadd.f32 -1.0, %v2131_v20  ;;  %v3025_v38 = vadd.f32 -1.0, %v2133_v61  ;;  %vm2205_vm2 = vcmp.gt.f32.partialorder %v3932_v62, %v5676_v55  ;;  %vm2206_vm3 = vcmp.gt.f32.partialorder %v3919_v13, %v5678_v56 }
 0x8f5   :  { %v3038_v27 = vsel %vm2205_vm2, 1.0, %v3604_v17  ;;  %v3039_v30 = vsel %vm2206_vm3, 1.0, %v3604_v17 }
 0x8f6   :  { %v5692_v32 = vmul.f32 %v3467_v1, %v3024_v39  ;;  %v5694_v12 = vmul.f32 %v3469_v51, %v3025_v38  ;;  %2254 = vadd.xlane.f32.xlu1 %v3038_v27  ;;  %2256 = vadd.xlane.f32.xlu0 %v3039_v30  ;;  %v3485_v1 = vpop.eup %3484 }
 0x8f7   :  { %v2135_v34 = vpop.xlane.xlu1 %2134  ;;  %v2137_v7 = vpop.xlane.xlu0 %2136 }
 0x8f8   :  { %v3026_v6 = vadd.f32 -1.0, %v2135_v34  ;;  %v3027_v58 = vadd.f32 -1.0, %v2137_v7  ;;  %vm2207_vm4 = vcmp.gt.f32.partialorder %v3929_v10, %v5692_v32  ;;  %vm2208_vm5 = vcmp.gt.f32.partialorder %v3946_v22, %v5694_v12  ;;  %v3487_v34 = vpop.eup %3486 }
 0x8f9   :  { %v3040_v18 = vsel %vm2207_vm4, 1.0, %v3604_v17  ;;  %v3041_v2 = vsel %vm2208_vm5, 1.0, %v3604_v17  ;;  %v2287_v50 = vsel %vm2207_vm4, %v3929_v10, 0.0 }
 0x8fa   :  { %v5708_v53 = vmul.f32 %v3471_v9, %v3026_v6  ;;  %v5710_v54 = vmul.f32 %v3473_v33, %v3027_v58  ;;  %2258 = vadd.xlane.f32.xlu1 %v3040_v18  ;;  %2260 = vadd.xlane.f32.xlu0 %v3041_v2  ;;  %v3489_v6 = vpop.eup %3488 }
 0x8fb   :  { %v2139_v63 = vpop.xlane.xlu1 %2138  ;;  %v2141_v25 = vpop.xlane.xlu0 %2140 }
 0x8fc   :  { %v3028_v0 = vadd.f32 -1.0, %v2139_v63  ;;  %v3029_v3 = vadd.f32 -1.0, %v2141_v25  ;;  %vm2209_vm6 = vcmp.gt.f32.partialorder %v3943_v21, %v5708_v53  ;;  %vm2210_vm7 = vcmp.gt.f32.partialorder %v3960_v24, %v5710_v54 }
 0x8fd   :  { %v3042_v44 = vsel %vm2209_vm6, 1.0, %v3604_v17  ;;  %v3043_v45 = vsel %vm2210_vm7, 1.0, %v3604_v17  ;;  %v2289_v55 = vsel %vm2209_vm6, %v3943_v21, 0.0  ;;  %v2290_v56 = vsel %vm2210_vm7, %v3960_v24, 0.0 }
 0x8fe   :  { %v5725_v19 = vmul.f32 %v3475_v49, %v3028_v0  ;;  %v5727_v26 = vmul.f32 %v3477_v43, %v3029_v3  ;;  %2262 = vadd.xlane.f32.xlu1 %v3042_v44  ;;  %2264 = vadd.xlane.f32.xlu0 %v3043_v45  ;;  %v3491_v49 = vpop.eup %3490  ;;  %v2284_v45 = vsel %vm2204_vm1, %v3922_v14, 0.0 }
 0x8ff   :  { %v2143_v60 = vpop.xlane.xlu1 %2142  ;;  %v2145_v16 = vpop.xlane.xlu0 %2144 }
 0x900   :  { %v3030_v57 = vadd.f32 -1.0, %v2143_v60  ;;  %v3031_v35 = vadd.f32 -1.0, %v2145_v16  ;;  %vm2211_vm8 = vcmp.gt.f32.partialorder %v3957_v23, %v5725_v19  ;;  %vm2212_vm9 = vcmp.gt.f32.partialorder %v3974_v5, %v5727_v26 }
 0x901   :  { %v3044_v59 = vsel %vm2211_vm8, 1.0, %v3604_v17  ;;  %v3045_v15 = vsel %vm2212_vm9, 1.0, %v3604_v17  ;;  %v2285_v60 = vsel %vm2205_vm2, %v3932_v62, 0.0  ;;  %v2286_v16 = vsel %vm2206_vm3, %v3919_v13, 0.0 }
 0x902   :  { %v5742_v4 = vmul.f32 %v3479_v48, %v3030_v57  ;;  %v5744_v46 = vmul.f32 %v3481_v52, %v3031_v35  ;;  %2266 = vadd.xlane.f32.xlu1 %v3044_v59  ;;  %2268 = vadd.xlane.f32.xlu0 %v3045_v15  ;;  %v2288_v48 = vsel %vm2208_vm5, %v3946_v22, 0.0  ;;  %v2291_v32 = vsel %vm2211_vm8, %v3957_v23, 0.0 }
 0x903   :  { %v2147_v40 = vpop.xlane.xlu1 %2146  ;;  %v2149_v8 = vpop.xlane.xlu0 %2148  ;;  %v2292_v12 = vsel %vm2212_vm9, %v3974_v5, 0.0 }
 0x904   :  { %v3032_v20 = vadd.f32 -1.0, %v2147_v40  ;;  %v3033_v61 = vadd.f32 -1.0, %v2149_v8  ;;  %vm2213_vm10 = vcmp.gt.f32.partialorder %v3971_v29, %v5742_v4  ;;  %vm2214_vm11 = vcmp.gt.f32.partialorder %v3988_v31, %v5744_v46 }
 0x905   :  { %v3046_v39 = vsel %vm2213_vm10, 1.0, %v3604_v17  ;;  %v3047_v47 = vsel %vm2214_vm11, 1.0, %v3604_v17  ;;  %v2293_v53 = vsel %vm2213_vm10, %v3971_v29, 0.0  ;;  %v2294_v54 = vsel %vm2214_vm11, %v3988_v31, 0.0 }
 0x906   :  { %v2195_v38 = vmul.f32 %v3483_v28, %v3032_v20  ;;  %v2197_v51 = vmul.f32 %v3485_v1, %v3033_v61  ;;  %2270 = vadd.xlane.f32.xlu1 %v3046_v39  ;;  %2272 = vadd.xlane.f32.xlu0 %v3047_v47 }
 0x907   :  { %v2151_v27 = vpop.xlane.xlu1 %2150  ;;  %v2153_v30 = vpop.xlane.xlu0 %2152 }
 0x908   :  { %v3034_v7 = vadd.f32 -1.0, %v2151_v27  ;;  %v3035_v9 = vadd.f32 -1.0, %v2153_v30  ;;  %vm2215_vm12 = vcmp.gt.f32.partialorder %v3985_v11, %v2195_v38  ;;  %vm2216_vm13 = vcmp.gt.f32.partialorder %v4002_v37, %v2197_v51 }
 0x909   :  { %v3048_v58 = vsel %vm2215_vm12, 1.0, %v3604_v17  ;;  %v3049_v33 = vsel %vm2216_vm13, 1.0, %v3604_v17  ;;  %v2295_v19 = vsel %vm2215_vm12, %v3985_v11, 0.0  ;;  %v2296_v26 = vsel %vm2216_vm13, %v4002_v37, 0.0 }
 0x90a   :  { %v2199_v18 = vmul.f32 %v3487_v34, %v3034_v7  ;;  %v2201_v2 = vmul.f32 %v3489_v6, %v3035_v9  ;;  %2274 = vadd.xlane.f32.xlu1 %v3048_v58  ;;  %2276 = vadd.xlane.f32.xlu0 %v3049_v33 }
 0x90b   :  { %v2155_v63 = vpop.xlane.xlu1 %2154 }
 0x90c   :  { %v3036_v25 = vadd.f32 -1.0, %v2155_v63  ;;  %vm2217_vm14 = vcmp.gt.f32.partialorder %v3999_v36, %v2199_v18  ;;  %vm2218_vm15 = vcmp.gt.f32.partialorder %v4016_v42, %v2201_v2 }
 0x90d   :  { %v3050_v0 = vsel %vm2217_vm14, 1.0, %v3604_v17  ;;  %v3051_v3 = vsel %vm2218_vm15, 1.0, %v3604_v17  ;;  %v2297_v57 = vsel %vm2217_vm14, %v3999_v36, 0.0  ;;  %v2298_v35 = vsel %vm2218_vm15, %v4016_v42, 0.0 }
 0x90e   :  { %v2203_v43 = vmul.f32 %v3491_v49, %v3036_v25  ;;  %2278 = vadd.xlane.f32.xlu1 %v3050_v0  ;;  %2280 = vadd.xlane.f32.xlu0 %v3051_v3 }
 0x910   :  { %vm2219_vm0 = vcmp.gt.f32.partialorder %v4013_v41, %v2203_v43 }
 0x911   :  { %v3052_v44 = vsel %vm2219_vm0, 1.0, %v3604_v17  ;;  %v2299_v52 = vsel %vm2219_vm0, %v4013_v41, 0.0 }
 0x912   :  { %2282 = vadd.xlane.f32.xlu1 %v3052_v44  ;;  %2300 = vadd.xlane.f32.xlu0 %v2284_v45 }
 0x916   :  { %2302 = vadd.xlane.f32.xlu1 %v2285_v60  ;;  %2304 = vadd.xlane.f32.xlu0 %v2286_v16 }
 0x91a   :  { %2306 = vadd.xlane.f32.xlu1 %v2287_v50  ;;  %2308 = vadd.xlane.f32.xlu0 %v2288_v48 }
 0x91e   :  { %2310 = vadd.xlane.f32.xlu1 %v2289_v55  ;;  %2312 = vadd.xlane.f32.xlu0 %v2290_v56 }
 0x922   :  { %2314 = vadd.xlane.f32.xlu1 %v2291_v32  ;;  %2316 = vadd.xlane.f32.xlu0 %v2292_v12 }
 0x926   :  { %2318 = vadd.xlane.f32.xlu1 %v2293_v53  ;;  %2320 = vadd.xlane.f32.xlu0 %v2294_v54 }
 0x92a   :  { %2322 = vadd.xlane.f32.xlu1 %v2295_v19  ;;  %2324 = vadd.xlane.f32.xlu0 %v2296_v26 }
 0x92e   :  { %2326 = vadd.xlane.f32.xlu1 %v2297_v57  ;;  %2328 = vadd.xlane.f32.xlu0 %v2298_v35 }
 0x932   :  { %2330 = vadd.xlane.f32.xlu1 %v2299_v52 }
 0x97f   :  { %v2253_v59 = vpop.xlane.xlu0 %2252 }
 0x980   :  { %3492 = vrcp.f32 %v2253_v59 }
 0x983   :  { %v2255_v15 = vpop.xlane.xlu1 %2254  ;;  %v2257_v4 = vpop.xlane.xlu0 %2256 }
 0x984   :  { %3494 = vrcp.f32 %v2255_v15 }
 0x985   :  { %3496 = vrcp.f32 %v2257_v4 }
 0x987   :  { %v2259_v46 = vpop.xlane.xlu1 %2258  ;;  %v2261_v40 = vpop.xlane.xlu0 %2260 }
 0x988   :  { %3498 = vrcp.f32 %v2259_v46 }
 0x989   :  { %3500 = vrcp.f32 %v2261_v40 }
 0x98a   :  { %v3493_v9 = vpop.eup %3492 }
 0x98b   :  { %v2263_v8 = vpop.xlane.xlu1 %2262  ;;  %v2265_v28 = vpop.xlane.xlu0 %2264 }
 0x98c   :  { %3502 = vrcp.f32 %v2263_v8 }
 0x98d   :  { %3504 = vrcp.f32 %v2265_v28 }
 0x98e   :  { %v3495_v18 = vpop.eup %3494 }
 0x98f   :  { %v2267_v20 = vpop.xlane.xlu1 %2266  ;;  %v2269_v61 = vpop.xlane.xlu0 %2268 }
 0x990   :  { %v3497_v25 = vpop.eup %3496  ;;  %3506 = vrcp.f32 %v2267_v20 }
 0x991   :  { %3508 = vrcp.f32 %v2269_v61 }
 0x992   :  { %v3499_v45 = vpop.eup %3498 }
 0x993   :  { %v2271_v1 = vpop.xlane.xlu1 %2270  ;;  %v2273_v39 = vpop.xlane.xlu0 %2272 }
 0x994   :  { %v3501_v50 = vpop.eup %3500  ;;  %3510 = vrcp.f32 %v2271_v1 }
 0x995   :  { %3512 = vrcp.f32 %v2273_v39 }
 0x996   :  { %v3503_v54 = vpop.eup %3502 }
 0x997   :  { %v2275_v47 = vpop.xlane.xlu1 %2274  ;;  %v2277_v38 = vpop.xlane.xlu0 %2276 }
 0x998   :  { %v3505_v57 = vpop.eup %3504  ;;  %3514 = vrcp.f32 %v2275_v47 }
 0x999   :  { %3516 = vrcp.f32 %v2277_v38 }
 0x99a   :  { %v3507_v40 = vpop.eup %3506 }
 0x99b   :  { %v5838_v51 = vpop.xlane.xlu1 %2278  ;;  %v5840_v27 = vpop.xlane.xlu0 %2280 }
 0x99c   :  { %v3509_v20 = vpop.eup %3508  ;;  %3518 = vrcp.f32 %v5838_v51 }
 0x99d   :  { %3520 = vrcp.f32 %v5840_v27 }
 0x99f   :  { %v5842_v30 = vpop.xlane.xlu1 %2282  ;;  %v2301_v34 = vpop.xlane.xlu0 %2300 }
 0x9a0   :  { %v3053_v7 = vadd.f32 -1.0, %v2301_v34  ;;  %3522 = vrcp.f32 %v5842_v30 }
 0x9a2   :  { %v5844_v6 = vmul.f32 %v3493_v9, %v3053_v7  ;;  %v3511_v7 = vpop.eup %3510 }
 0x9a3   :  { %v2303_v58 = vpop.xlane.xlu1 %2302  ;;  %v2305_v33 = vpop.xlane.xlu0 %2304 }
 0x9a4   :  { %v3054_v2 = vadd.f32 -1.0, %v2303_v58  ;;  %v3055_v63 = vadd.f32 -1.0, %v2305_v33  ;;  %vm2380_vm1 = vcmp.gt.f32.partialorder %v3922_v14, %v5844_v6  ;;  %v3513_v51 = vpop.eup %3512 }
 0x9a5   :  { %v3069_v49 = vsel %vm2380_vm1, 1.0, %v3604_v17 }
 0x9a6   :  { %v5852_v0 = vmul.f32 %v3495_v18, %v3054_v2  ;;  %v5854_v3 = vmul.f32 %v3497_v25, %v3055_v63  ;;  %2428 = vadd.xlane.f32.xlu0 %v3069_v49  ;;  %v3515_v49 = vpop.eup %3514 }
 0x9a7   :  { %v2307_v43 = vpop.xlane.xlu1 %2306  ;;  %v2309_v44 = vpop.xlane.xlu0 %2308 }
 0x9a8   :  { %v3056_v60 = vadd.f32 -1.0, %v2307_v43  ;;  %v3057_v16 = vadd.f32 -1.0, %v2309_v44  ;;  %vm2381_vm2 = vcmp.gt.f32.partialorder %v3932_v62, %v5852_v0  ;;  %vm2382_vm3 = vcmp.gt.f32.partialorder %v3919_v13, %v5854_v3 }
 0x9a9   :  { %v3070_v48 = vsel %vm2381_vm2, 1.0, %v3604_v17  ;;  %v3071_v55 = vsel %vm2382_vm3, 1.0, %v3604_v17 }
 0x9aa   :  { %v5868_v56 = vmul.f32 %v3499_v45, %v3056_v60  ;;  %v5870_v32 = vmul.f32 %v3501_v50, %v3057_v16  ;;  %2430 = vadd.xlane.f32.xlu1 %v3070_v48  ;;  %2432 = vadd.xlane.f32.xlu0 %v3071_v55  ;;  %v3517_v45 = vpop.eup %3516 }
 0x9ab   :  { %v2311_v12 = vpop.xlane.xlu1 %2310  ;;  %v2313_v53 = vpop.xlane.xlu0 %2312 }
 0x9ac   :  { %v3058_v19 = vadd.f32 -1.0, %v2311_v12  ;;  %v3059_v26 = vadd.f32 -1.0, %v2313_v53  ;;  %vm2383_vm4 = vcmp.gt.f32.partialorder %v3929_v10, %v5868_v56  ;;  %vm2384_vm5 = vcmp.gt.f32.partialorder %v3946_v22, %v5870_v32  ;;  %v3519_v12 = vpop.eup %3518 }
 0x9ad   :  { %v3072_v35 = vsel %vm2383_vm4, 1.0, %v3604_v17  ;;  %v3073_v52 = vsel %vm2384_vm5, 1.0, %v3604_v17  ;;  %v2464_v6 = vsel %vm2384_vm5, %v3946_v22, 0.0 }
 0x9ae   :  { %v5884_v59 = vmul.f32 %v3503_v54, %v3058_v19  ;;  %v5886_v15 = vmul.f32 %v3505_v57, %v3059_v26  ;;  %2434 = vadd.xlane.f32.xlu1 %v3072_v35  ;;  %2436 = vadd.xlane.f32.xlu0 %v3073_v52  ;;  %v3521_v19 = vpop.eup %3520 }
 0x9af   :  { %v2315_v4 = vpop.xlane.xlu1 %2314  ;;  %v2317_v46 = vpop.xlane.xlu0 %2316 }
 0x9b0   :  { %v3060_v8 = vadd.f32 -1.0, %v2315_v4  ;;  %v3061_v28 = vadd.f32 -1.0, %v2317_v46  ;;  %vm2385_vm6 = vcmp.gt.f32.partialorder %v3943_v21, %v5884_v59  ;;  %vm2386_vm7 = vcmp.gt.f32.partialorder %v3960_v24, %v5886_v15 }
 0x9b1   :  { %v3074_v61 = vsel %vm2385_vm6, 1.0, %v3604_v17  ;;  %v3075_v1 = vsel %vm2386_vm7, 1.0, %v3604_v17  ;;  %v2465_v0 = vsel %vm2385_vm6, %v3943_v21, 0.0  ;;  %v2466_v3 = vsel %vm2386_vm7, %v3960_v24, 0.0 }
 0x9b2   :  { %v5901_v39 = vmul.f32 %v3507_v40, %v3060_v8  ;;  %v5903_v47 = vmul.f32 %v3509_v20, %v3061_v28  ;;  %2438 = vadd.xlane.f32.xlu1 %v3074_v61  ;;  %2440 = vadd.xlane.f32.xlu0 %v3075_v1  ;;  %v3523_v40 = vpop.eup %3522  ;;  %v2460_v1 = vsel %vm2380_vm1, %v3922_v14, 0.0 }
 0x9b3   :  { %v2319_v38 = vpop.xlane.xlu1 %2318  ;;  %v2321_v34 = vpop.xlane.xlu0 %2320 }
 0x9b4   :  { %v3062_v9 = vadd.f32 -1.0, %v2319_v38  ;;  %v3063_v58 = vadd.f32 -1.0, %v2321_v34  ;;  %vm2387_vm8 = vcmp.gt.f32.partialorder %v3957_v23, %v5901_v39  ;;  %vm2388_vm9 = vcmp.gt.f32.partialorder %v3974_v5, %v5903_v47 }
 0x9b5   :  { %v3076_v33 = vsel %vm2387_vm8, 1.0, %v3604_v17  ;;  %v3077_v27 = vsel %vm2388_vm9, 1.0, %v3604_v17  ;;  %v2461_v38 = vsel %vm2381_vm2, %v3932_v62, 0.0  ;;  %v2462_v34 = vsel %vm2382_vm3, %v3919_v13, 0.0 }
 0x9b6   :  { %v5918_v18 = vmul.f32 %v3511_v7, %v3062_v9  ;;  %v5920_v2 = vmul.f32 %v3513_v51, %v3063_v58  ;;  %2442 = vadd.xlane.f32.xlu1 %v3076_v33  ;;  %2444 = vadd.xlane.f32.xlu0 %v3077_v27  ;;  %v2467_v56 = vsel %vm2387_vm8, %v3957_v23, 0.0  ;;  %v2468_v32 = vsel %vm2388_vm9, %v3974_v5, 0.0 }
 0x9b7   :  { %v2323_v63 = vpop.xlane.xlu1 %2322  ;;  %v2325_v25 = vpop.xlane.xlu0 %2324 }
 0x9b8   :  { %v3064_v43 = vadd.f32 -1.0, %v2323_v63  ;;  %v3065_v44 = vadd.f32 -1.0, %v2325_v25  ;;  %vm2389_vm10 = vcmp.gt.f32.partialorder %v3971_v29, %v5918_v18  ;;  %vm2390_vm11 = vcmp.gt.f32.partialorder %v3988_v31, %v5920_v2 }
 0x9b9   :  { %v3078_v60 = vsel %vm2389_vm10, 1.0, %v3604_v17  ;;  %v3079_v30 = vsel %vm2390_vm11, 1.0, %v3604_v17  ;;  %v2469_v59 = vsel %vm2389_vm10, %v3971_v29, 0.0  ;;  %v2470_v15 = vsel %vm2390_vm11, %v3988_v31, 0.0 }
 0x9ba   :  { %v2371_v16 = vmul.f32 %v3515_v49, %v3064_v43  ;;  %v2373_v50 = vmul.f32 %v3517_v45, %v3065_v44  ;;  %2446 = vadd.xlane.f32.xlu1 %v3078_v60  ;;  %2448 = vadd.xlane.f32.xlu0 %v3079_v30 }
 0x9bb   :  { %v2327_v48 = vpop.xlane.xlu1 %2326  ;;  %v2329_v55 = vpop.xlane.xlu0 %2328 }
 0x9bc   :  { %v3066_v53 = vadd.f32 -1.0, %v2327_v48  ;;  %v3067_v54 = vadd.f32 -1.0, %v2329_v55  ;;  %vm2391_vm12 = vcmp.gt.f32.partialorder %v3985_v11, %v2371_v16  ;;  %vm2392_vm13 = vcmp.gt.f32.partialorder %v4002_v37, %v2373_v50 }
 0x9bd   :  { %v3080_v26 = vsel %vm2391_vm12, 1.0, %v3604_v17  ;;  %v3081_v57 = vsel %vm2392_vm13, 1.0, %v3604_v17  ;;  %v2471_v39 = vsel %vm2391_vm12, %v3985_v11, 0.0  ;;  %v2472_v47 = vsel %vm2392_vm13, %v4002_v37, 0.0 }
 0x9be   :  { %v2375_v35 = vmul.f32 %v3519_v12, %v3066_v53  ;;  %v2377_v52 = vmul.f32 %v3521_v19, %v3067_v54  ;;  %2450 = vadd.xlane.f32.xlu1 %v3080_v26  ;;  %2452 = vadd.xlane.f32.xlu0 %v3081_v57 }
 0x9bf   :  { %v2331_v4 = vpop.xlane.xlu1 %2330 }
 0x9c0   :  { %v3068_v46 = vadd.f32 -1.0, %v2331_v4  ;;  %vm2393_vm14 = vcmp.gt.f32.partialorder %v3999_v36, %v2375_v35  ;;  %vm2394_vm15 = vcmp.gt.f32.partialorder %v4016_v42, %v2377_v52 }
 0x9c1   :  { %v3082_v8 = vsel %vm2393_vm14, 1.0, %v3604_v17  ;;  %v3083_v28 = vsel %vm2394_vm15, 1.0, %v3604_v17  ;;  %v2473_v7 = vsel %vm2393_vm14, %v3999_v36, 0.0  ;;  %v2474_v9 = vsel %vm2394_vm15, %v4016_v42, 0.0 }
 0x9c2   :  { %v2379_v20 = vmul.f32 %v3523_v40, %v3068_v46  ;;  %2454 = vadd.xlane.f32.xlu1 %v3082_v8  ;;  %2456 = vadd.xlane.f32.xlu0 %v3083_v28 }
 0x9c4   :  { %vm2395_vm0 = vcmp.gt.f32.partialorder %v4013_v41, %v2379_v20  ;;  %v2604_v20 = vld [vmem:[%s6115_s1] sm:$0xff] }
 0x9c5   :  { %v3084_v61 = vsel %vm2395_vm0, 1.0, %v3604_v17  ;;  %v2463_v17 = vsel %vm2383_vm4, %v3929_v10, 0.0  ;;  %v2475_v58 = vsel %vm2395_vm0, %v4013_v41, 0.0 }
 0x9c6   :  { %2458 = vadd.xlane.f32.xlu1 %v3084_v61  ;;  %2476 = vadd.xlane.f32.xlu0 %v2460_v1 }
 0x9ca   :  { %2478 = vadd.xlane.f32.xlu1 %v2461_v38  ;;  %2480 = vadd.xlane.f32.xlu0 %v2462_v34 }
 0x9ce   :  { %2482 = vadd.xlane.f32.xlu1 %v2463_v17  ;;  %2484 = vadd.xlane.f32.xlu0 %v2464_v6 }
 0x9d2   :  { %2486 = vadd.xlane.f32.xlu1 %v2465_v0  ;;  %2488 = vadd.xlane.f32.xlu0 %v2466_v3 }
 0x9d6   :  { %2490 = vadd.xlane.f32.xlu1 %v2467_v56  ;;  %2492 = vadd.xlane.f32.xlu0 %v2468_v32 }
 0x9da   :  { %2494 = vadd.xlane.f32.xlu1 %v2469_v59  ;;  %2496 = vadd.xlane.f32.xlu0 %v2470_v15 }
 0x9de   :  { %2498 = vadd.xlane.f32.xlu1 %v2471_v39  ;;  %2500 = vadd.xlane.f32.xlu0 %v2472_v47  ;;  %v2605_v39 = vld [vmem:[%s6115_s1 + $0x8] sm:$0xff] }
 0x9e2   :  { %2502 = vadd.xlane.f32.xlu1 %v2473_v7  ;;  %2504 = vadd.xlane.f32.xlu0 %v2474_v9 }
 0x9e6   :  { %2506 = vadd.xlane.f32.xlu1 %v2475_v58 }
 0xa33   :  { %v2429_v51 = vpop.xlane.xlu0 %2428 }
 0xa34   :  { %3524 = vrcp.f32 %v2429_v51 }
 0xa37   :  { %v2431_v33 = vpop.xlane.xlu1 %2430  ;;  %v2433_v27 = vpop.xlane.xlu0 %2432 }
 0xa38   :  { %3526 = vrcp.f32 %v2431_v33 }
 0xa39   :  { %3528 = vrcp.f32 %v2433_v27 }
 0xa3b   :  { %v2435_v18 = vpop.xlane.xlu1 %2434  ;;  %v2437_v2 = vpop.xlane.xlu0 %2436 }
 0xa3c   :  { %3530 = vrcp.f32 %v2435_v18 }
 0xa3d   :  { %3532 = vrcp.f32 %v2437_v2 }
 0xa3e   :  { %v3525_v53 = vpop.eup %3524 }
 0xa3f   :  { %v2439_v63 = vpop.xlane.xlu1 %2438  ;;  %v2441_v25 = vpop.xlane.xlu0 %2440 }
 0xa40   :  { %3534 = vrcp.f32 %v2439_v63 }
 0xa41   :  { %3536 = vrcp.f32 %v2441_v25 }
 0xa42   :  { %v3527_v57 = vpop.eup %3526 }
 0xa43   :  { %v2443_v49 = vpop.xlane.xlu1 %2442  ;;  %v2445_v43 = vpop.xlane.xlu0 %2444 }
 0xa44   :  { %v3529_v46 = vpop.eup %3528  ;;  %3538 = vrcp.f32 %v2443_v49 }
 0xa45   :  { %3540 = vrcp.f32 %v2445_v43 }
 0xa46   :  { %v3531_v6 = vpop.eup %3530 }
 0xa47   :  { %v2447_v44 = vpop.xlane.xlu1 %2446  ;;  %v2449_v45 = vpop.xlane.xlu0 %2448 }
 0xa48   :  { %3542 = vrcp.f32 %v2447_v44  ;;  %v3533_v3 = vpop.eup %3532 }
 0xa49   :  { %3544 = vrcp.f32 %v2449_v45  ;;  %v2607_v45 = vld [vmem:[%s6115_s1 + $0x18] sm:$0xff] }
 0xa4a   :  { %v3535_v27 = vpop.eup %3534 }
 0xa4b   :  { %v2451_v60 = vpop.xlane.xlu1 %2450  ;;  %v6014_v30 = vpop.xlane.xlu0 %2452 }
 0xa4c   :  { %3546 = vrcp.f32 %v2451_v60  ;;  %v3537_v63 = vpop.eup %3536  ;;  %v2608_v60 = vld [vmem:[%s6115_s1 + $0x20] sm:$0xff] }
 0xa4d   :  { %3548 = vrcp.f32 %v6014_v30 }
 0xa4f   :  { %v6016_v16 = vpop.xlane.xlu1 %2454  ;;  %v6018_v50 = vpop.xlane.xlu0 %2456 }
 0xa50   :  { %3550 = vrcp.f32 %v6016_v16 }
 0xa51   :  { %3552 = vrcp.f32 %v6018_v50 }
 0xa53   :  { %v6020_v48 = vpop.xlane.xlu1 %2458  ;;  %v2477_v55 = vpop.xlane.xlu0 %2476 }
 0xa54   :  { %v3085_v12 = vadd.f32 -1.0, %v2477_v55  ;;  %3554 = vrcp.f32 %v6020_v48 }
 0xa56   :  { %v2525_v54 = vmul.f32 %v3525_v53, %v3085_v12 }
 0xa57   :  { %v2479_v19 = vpop.xlane.xlu1 %2478  ;;  %v2481_v26 = vpop.xlane.xlu0 %2480 }
 0xa58   :  { %v2556_v35 = vsub.f32 %v3922_v14, %v2525_v54  ;;  %v3086_v52 = vadd.f32 -1.0, %v2479_v19  ;;  %v3087_v4 = vadd.f32 -1.0, %v2481_v26  ;;  %v3539_v54 = vpop.eup %3538 }
 0xa5a   :  { %v2572_v40 = vmax.f32 %v2556_v35, 0.0  ;;  %v2527_v8 = vmul.f32 %v3527_v57, %v3086_v52  ;;  %v2529_v28 = vmul.f32 %v3529_v46, %v3087_v4  ;;  %v3541_v57 = vpop.eup %3540 }
 0xa5b   :  { %v2483_v61 = vpop.xlane.xlu1 %2482  ;;  %v2485_v1 = vpop.xlane.xlu0 %2484 }
 0xa5c   :  { %2588 = vst [vmem:[#allocation2] sm:$0xff] %v2572_v40  ;;  %v2620_v38 = vsub.f32 1.5, %v2572_v40  ;;  %v2557_v34 = vsub.f32 %v3932_v62, %v2527_v8  ;;  %v2558_v14 = vsub.f32 %v3919_v13, %v2529_v28  ;;  %v3088_v17 = vadd.f32 -1.0, %v2483_v61  ;;  %v2606_v62 = vld [vmem:[%s6115_s1 + $0x10] sm:$0xff]  ;;  %v3543_v28 = vpop.eup %3542 }
 0xa5d   :  { %v3089_v0 = vadd.f32 -1.0, %v2485_v1 }
 0xa5e   :  { %v2636_v56 = vmul.f32 %v2620_v38, %v2604_v20  ;;  %v2573_v32 = vmax.f32 %v2557_v34, 0.0  ;;  %v2574_v59 = vmax.f32 %v2558_v14, 0.0  ;;  %v2531_v15 = vmul.f32 %v3531_v6, %v3088_v17  ;;  %v3545_v17 = vpop.eup %3544 }
 0xa5f   :  { %v2533_v47 = vmul.f32 %v3533_v3, %v3089_v0  ;;  %v2487_v13 = vpop.xlane.xlu1 %2486  ;;  %v2489_v7 = vpop.xlane.xlu0 %2488 }
 0xa60   :  { %2652 = vst [vmem:[#allocation4] sm:$0xff] %v2636_v56  ;;  %2589 = vst [vmem:[#allocation2 + $0x8] sm:$0xff] %v2573_v32  ;;  %v2621_v9 = vsub.f32 1.5, %v2573_v32  ;;  %v2622_v58 = vsub.f32 1.5, %v2574_v59  ;;  %v2559_v51 = vsub.f32 %v3929_v10, %v2531_v15  ;;  %v3090_v33 = vadd.f32 -1.0, %v2487_v13  ;;  %v3547_v15 = vpop.eup %3546 }
 0xa61   :  { %2590 = vst [vmem:[#allocation2 + $0x10] sm:$0xff] %v2574_v59  ;;  %v2560_v18 = vsub.f32 %v3946_v22, %v2533_v47  ;;  %v3091_v2 = vadd.f32 -1.0, %v2489_v7 }
 0xa62   :  { %v2637_v25 = vmul.f32 %v2621_v9, %v2605_v39  ;;  %v2638_v49 = vmul.f32 %v2622_v58, %v2606_v62  ;;  %v2575_v43 = vmax.f32 %v2559_v51, 0.0  ;;  %v2535_v44 = vmul.f32 %v3535_v27, %v3090_v33  ;;  %v3549_v51 = vpop.eup %3548 }
 0xa63   :  { %v2576_v55 = vmax.f32 %v2560_v18, 0.0  ;;  %v2537_v12 = vmul.f32 %v3537_v63, %v3091_v2  ;;  %v2491_v10 = vpop.xlane.xlu1 %2490  ;;  %v2493_v53 = vpop.xlane.xlu0 %2492 }
 0xa64   :  { %2653 = vst [vmem:[#allocation4 + $0x8] sm:$0xff] %v2637_v25  ;;  %2654 = vst [vmem:[#allocation4 + $0x10] sm:$0xff] %v2638_v49  ;;  %v2623_v22 = vsub.f32 1.5, %v2575_v43  ;;  %v2561_v19 = vsub.f32 %v3943_v21, %v2535_v44  ;;  %v3092_v30 = vadd.f32 -1.0, %v2491_v10  ;;  %v3093_v26 = vadd.f32 -1.0, %v2493_v53  ;;  %v2609_v21 = vld [vmem:[%s6115_s1 + $0x28] sm:$0xff]  ;;  %v3551_v49 = vpop.eup %3550 }
 0xa65   :  { %2591 = vst [vmem:[#allocation2 + $0x18] sm:$0xff] %v2575_v43  ;;  %2592 = vst [vmem:[#allocation2 + $0x20] sm:$0xff] %v2576_v55  ;;  %v2624_v35 = vsub.f32 1.5, %v2576_v55  ;;  %v2562_v52 = vsub.f32 %v3960_v24, %v2537_v12  ;;  %v2610_v24 = vld [vmem:[%s6115_s1 + $0x30] sm:$0xff]  ;;  %v2613_v43 = vld [vmem:[%s6115_s1 + $0x48] sm:$0xff] }
 0xa66   :  { %v2639_v4 = vmul.f32 %v2623_v22, %v2607_v45  ;;  %v2577_v46 = vmax.f32 %v2561_v19, 0.0  ;;  %v2539_v40 = vmul.f32 %v3539_v54, %v3092_v30  ;;  %v2541_v8 = vmul.f32 %v3541_v57, %v3093_v26  ;;  %v3553_v22 = vpop.eup %3552 }
 0xa67   :  { %v2640_v20 = vmul.f32 %v2624_v35, %v2608_v60  ;;  %v2578_v61 = vmax.f32 %v2562_v52, 0.0  ;;  %v2495_v1 = vpop.xlane.xlu1 %2494  ;;  %v2497_v38 = vpop.xlane.xlu0 %2496 }
 0xa68   :  { %2655 = vst [vmem:[#allocation4 + $0x18] sm:$0xff] %v2639_v4  ;;  %2593 = vst [vmem:[#allocation2 + $0x28] sm:$0xff] %v2577_v46  ;;  %v2625_v16 = vsub.f32 1.5, %v2577_v46  ;;  %v2563_v34 = vsub.f32 %v3957_v23, %v2539_v40  ;;  %v2564_v14 = vsub.f32 %v3974_v5, %v2541_v8  ;;  %v3094_v50 = vadd.f32 -1.0, %v2495_v1  ;;  %v2611_v23 = vld [vmem:[%s6115_s1 + $0x38] sm:$0xff]  ;;  %v2612_v5 = vld [vmem:[%s6115_s1 + $0x40] sm:$0xff] }
 0xa69   :  { %2656 = vst [vmem:[#allocation4 + $0x20] sm:$0xff] %v2640_v20  ;;  %2594 = vst [vmem:[#allocation2 + $0x30] sm:$0xff] %v2578_v61  ;;  %v2626_v6 = vsub.f32 1.5, %v2578_v61  ;;  %v3095_v0 = vadd.f32 -1.0, %v2497_v38  ;;  %v2615_v4 = vld [vmem:[%s6115_s1 + $0x58] sm:$0xff]  ;;  %v2616_v8 = vld [vmem:[%s6115_s1 + $0x60] sm:$0xff] }
 0xa6a   :  { %v2641_v3 = vmul.f32 %v2625_v16, %v2609_v21  ;;  %v2579_v56 = vmax.f32 %v2563_v34, 0.0  ;;  %v2580_v32 = vmax.f32 %v2564_v14, 0.0  ;;  %v2543_v59 = vmul.f32 %v3543_v28, %v3094_v50  ;;  %v3555_v21 = vpop.eup %3554  ;;  %v2617_v14 = vld [vmem:[%s6115_s1 + $0x68] sm:$0xff] }
 0xa6b   :  { %v2642_v39 = vmul.f32 %v2626_v6, %v2610_v24  ;;  %v2545_v62 = vmul.f32 %v3545_v17, %v3095_v0  ;;  %v2499_v47 = vpop.xlane.xlu1 %2498  ;;  %v2501_v13 = vpop.xlane.xlu0 %2500 }
 0xa6c   :  { %2657 = vst [vmem:[#allocation4 + $0x28] sm:$0xff] %v2641_v3  ;;  %2595 = vst [vmem:[#allocation2 + $0x38] sm:$0xff] %v2579_v56  ;;  %v2627_v7 = vsub.f32 1.5, %v2579_v56  ;;  %v2628_v9 = vsub.f32 1.5, %v2580_v32  ;;  %v2565_v58 = vsub.f32 %v3971_v29, %v2543_v59  ;;  %v3096_v48 = vadd.f32 -1.0, %v2499_v47  ;;  %v2619_v56 = vld [vmem:[%s6115_s1 + $0x78] sm:$0xff] }
 0xa6d   :  { %2596 = vst [vmem:[#allocation2 + $0x40] sm:$0xff] %v2580_v32  ;;  %2658 = vst [vmem:[#allocation4 + $0x30] sm:$0xff] %v2642_v39  ;;  %v2566_v33 = vsub.f32 %v3988_v31, %v2545_v62  ;;  %v3097_v27 = vadd.f32 -1.0, %v2501_v13  ;;  %v2614_v31 = vld [vmem:[%s6115_s1 + $0x50] sm:$0xff] }
 0xa6e   :  { %v2643_v18 = vmul.f32 %v2627_v7, %v2611_v23  ;;  %v2644_v2 = vmul.f32 %v2628_v9, %v2612_v5  ;;  %v2581_v63 = vmax.f32 %v2565_v58, 0.0  ;;  %v2547_v25 = vmul.f32 %v3547_v15, %v3096_v48 }
 0xa6f   :  { %v2582_v44 = vmax.f32 %v2566_v33, 0.0  ;;  %v2549_v45 = vmul.f32 %v3549_v51, %v3097_v27  ;;  %v2503_v55 = vpop.xlane.xlu1 %2502  ;;  %v2505_v12 = vpop.xlane.xlu0 %2504 }
 0xa70   :  { %2659 = vst [vmem:[#allocation4 + $0x38] sm:$0xff] %v2643_v18  ;;  %2660 = vst [vmem:[#allocation4 + $0x40] sm:$0xff] %v2644_v2  ;;  %v2629_v29 = vsub.f32 1.5, %v2581_v63  ;;  %v2567_v10 = vsub.f32 %v3985_v11, %v2547_v25  ;;  %v3098_v53 = vadd.f32 -1.0, %v2503_v55  ;;  %v3099_v54 = vadd.f32 -1.0, %v2505_v12 }
 0xa71   :  { %2597 = vst [vmem:[#allocation2 + $0x48] sm:$0xff] %v2581_v63  ;;  %2598 = vst [vmem:[#allocation2 + $0x50] sm:$0xff] %v2582_v44  ;;  %v2630_v60 = vsub.f32 1.5, %v2582_v44  ;;  %v2568_v19 = vsub.f32 %v4002_v37, %v2549_v45 }
 0xa72   :  { %v2645_v30 = vmul.f32 %v2629_v29, %v2613_v43  ;;  %v2583_v26 = vmax.f32 %v2567_v10, 0.0  ;;  %v2551_v57 = vmul.f32 %v3551_v49, %v3098_v53  ;;  %v2553_v35 = vmul.f32 %v3553_v22, %v3099_v54 }
 0xa73   :  { %v2646_v52 = vmul.f32 %v2630_v60, %v2614_v31  ;;  %v2584_v46 = vmax.f32 %v2568_v19, 0.0  ;;  %v2507_v40 = vpop.xlane.xlu1 %2506 }
 0xa74   :  { %2661 = vst [vmem:[#allocation4 + $0x48] sm:$0xff] %v2645_v30  ;;  %2599 = vst [vmem:[#allocation2 + $0x58] sm:$0xff] %v2583_v26  ;;  %v2631_v11 = vsub.f32 1.5, %v2583_v26  ;;  %v2569_v37 = vsub.f32 %v3999_v36, %v2551_v57  ;;  %v2570_v28 = vsub.f32 %v4016_v42, %v2553_v35  ;;  %v3100_v20 = vadd.f32 -1.0, %v2507_v40  ;;  %v2618_v36 = vld [vmem:[%s6115_s1 + $0x70] sm:$0xff] }
 0xa75   :  { %2662 = vst [vmem:[#allocation4 + $0x50] sm:$0xff] %v2646_v52  ;;  %2600 = vst [vmem:[#allocation2 + $0x60] sm:$0xff] %v2584_v46  ;;  %v2632_v61 = vsub.f32 1.5, %v2584_v46 }
 0xa76   :  { %v2647_v1 = vmul.f32 %v2631_v11, %v2615_v4  ;;  %v2585_v38 = vmax.f32 %v2569_v37, 0.0  ;;  %v2586_v16 = vmax.f32 %v2570_v28, 0.0  ;;  %v2555_v24 = vmul.f32 %v3555_v21, %v3100_v20 }
 0xa77   :  { %v2648_v34 = vmul.f32 %v2632_v61, %v2616_v8 }
 0xa78   :  { %2663 = vst [vmem:[#allocation4 + $0x58] sm:$0xff] %v2647_v1  ;;  %2601 = vst [vmem:[#allocation2 + $0x68] sm:$0xff] %v2585_v38  ;;  %v2633_v42 = vsub.f32 1.5, %v2585_v38  ;;  %v2634_v50 = vsub.f32 1.5, %v2586_v16  ;;  %v2571_v17 = vsub.f32 %v4013_v41, %v2555_v24 }
 0xa79   :  { %2602 = vst [vmem:[#allocation2 + $0x70] sm:$0xff] %v2586_v16  ;;  %2664 = vst [vmem:[#allocation4 + $0x60] sm:$0xff] %v2648_v34 }
 0xa7a   :  { %v2649_v6 = vmul.f32 %v2633_v42, %v2617_v14  ;;  %v2650_v0 = vmul.f32 %v2634_v50, %v2618_v36  ;;  %v2587_v3 = vmax.f32 %v2571_v17, 0.0 }
 0xa7c   :  { %2665 = vst [vmem:[#allocation4 + $0x68] sm:$0xff] %v2649_v6  ;;  %2666 = vst [vmem:[#allocation4 + $0x70] sm:$0xff] %v2650_v0  ;;  %v2635_v32 = vsub.f32 1.5, %v2587_v3 }
 0xa7d   :  { %2603 = vst [vmem:[#allocation2 + $0x78] sm:$0xff] %v2587_v3 }
 0xa7e   :  { %3567 = shalt.err (!%p3564_p4)
}
 0xa7f   :  { %s3568_s27 = scalar_lea.hbm %s6119_s5, 2048 }
 0xa80   :  { %p3569_p5 = scmp.ne.s32.totalorder %s6119_s5, %s3568_s27  ;;  %p3572_p6 = scmp.lt.u32.totalorder %s3568_s27, %s6119_s5 }
 0xa82   :  { %p3574_p7 = pnand %p3572_p6, %p3569_p5 }
 0xa84   :  { %3577 = shalt.err (!%p3574_p7)
}
 0xa85   :  { %s3607_s7 = smov 128   ;;  %s3608_s8 = smov 8   ;;  %v2651_v41 = vmul.f32 %v2635_v32, %v2619_v56 }
 0xa86   :  { %2679 = dma.vmem_to_hbm [thread:$0]  %s2674_s19, 2048, %s6119_s5, [#allocation3], %s3607_s7, %s3607_s7, %s3608_s8  }
 0xa87   :  { %2667 = vst [vmem:[#allocation4 + $0x78] sm:$0xff] %v2651_v41  ;;  %s3578_s10 = scalar_lea.vmem %s2686_s23, 2048  ;;  %p3583_p9 = scmp.lt.s32.totalorder %s2686_s23, %s2686_s23 }
 0xa88   :  { %p3579_p8 = scmp.ne.s32.totalorder %s2686_s23, %s3578_s10  ;;  %p3584_p10 = scmp.lt.s32.totalorder %s3578_s10, %s3578_s10 }
 0xa8a   :  { %p3585_p11 = por %p3584_p10, %p3583_p9 }
 0xa8c   :  { %p3586_p12 = pnand %p3585_p11, %p3579_p8 }
 0xa8e   :  { %3589 = shalt.err (!%p3586_p12)
}
 0xa8f   :  { %s3590_s12 = scalar_lea.hbm %s6120_s6, 2048 }
 0xa90   :  { %p3591_p13 = scmp.ne.s32.totalorder %s6120_s6, %s3590_s12  ;;  %p3594_p0 = scmp.lt.u32.totalorder %s3590_s12, %s6120_s6 }
 0xa92   :  { %p3596_p1 = pnand %p3594_p0, %p3591_p13 }
 0xa94   :  { %3599 = shalt.err (!%p3596_p1)
}
 0xa95   :  { %2691 = dma.vmem_to_hbm [thread:$0]  %s2686_s23, 2048, %s6120_s6, [#allocation5], %s3607_s7, %s3607_s7, %s3608_s8  }
 0xa96   :  { %3600 = dma.done.wait [#allocation3], 2048  }
 0xa97   :  { %3601 = vsyncadd [#allocation3], 4294965248 }
 0xa98   :  { %3602 = dma.done.wait [#allocation5], 2048  }
 0xa99   :  { %3603 = vsyncadd [#allocation5], 4294965248 }
 0xa9a   :  { %2698 = vsyncpa [#allocation3], 1 }
 0xa9b   :  { %2699 = vsyncpa [#allocation5], 1 }

</bundles_post_ra>
